<compile_context>
chip_gen: v5e
topology: v5e:2x2
jax: 0.10.0
libtpu: 0.0.40
codegen_flags: <defaults>
</compile_context>

<pallas_src>
import functools
import math

import numpy as np

import jax
import jax.numpy as jnp
from jax.experimental import pallas as pl
from jax.experimental.pallas import tpu as pltpu


MA_KSIZE = 5      # moving-average kernel size for the series decomposition
TREND_PAD = 128   # trend / c_out path padded to a full 128-lane width


def _ma_matrix(n, ksize):
    """(n, n) linear operator == replicate-padded AvgPool1d(ksize, stride=1)."""
    pad = (ksize - 1) // 2
    a = np.zeros((n, n), np.float32)
    for i in range(n):
        for t in range(-pad, pad + 1):
            j = min(max(i + t, 0), n - 1)
            a[i, j] += 1.0 / ksize
    return a


# ----------------------------------------------------------------------------
# Fused whole-decoder kernel (all layers + trend accumulation + final norm)
# ----------------------------------------------------------------------------

def _decoder_kernel(
    # per-batch activations
    x_ref, cross_ref, trend_ref, ma_ref,
    # stacked (num_layers, ...) weights
    wqkv_ref, bqkv_ref, wo_ref, bo_ref,
    wq2_ref, bq2_ref, wkv2_ref, bkv2_ref, wo2_ref, bo2_ref,
    wf1_ref, bf1_ref, wf2_ref, bf2_ref,
    wproj_ref, bproj_ref, gamma_ref, beta_ref,
    # outputs
    x_out_ref, trend_out_ref, hidden_out_ref,
    *, num_layers, eps=1e-5,
):
    D = x_ref.shape[-1]

    xb = x_ref[0].astype(jnp.float32)        # (L, D)
    cb = cross_ref[0].astype(jnp.bfloat16)   # (S, D), cast once for all layers
    tr = trend_ref[0].astype(jnp.float32)    # (L, TREND_PAD) running trend
    ma = ma_ref[...]                         # (L, L) f32 moving-average operator

    def mm(a, w, b):
        # bf16 x bf16 matmul, f32 accumulate, f32 bias add.
        return jnp.dot(a.astype(jnp.bfloat16), w,
                       preferred_element_type=jnp.float32) + b

    def attention(q, k, v):
        # 1/sqrt(D) scale already folded into the Q projection weights.
        s = jax.lax.dot_general(
            q.astype(jnp.bfloat16), k.astype(jnp.bfloat16),
            dimension_numbers=(((1,), (1,)), ((), ())),
            preferred_element_type=jnp.float32)            # (Lq, Lk)
        m = jnp.max(s, axis=-1, keepdims=True)
        p = jnp.exp(s - m)
        denom = jnp.sum(p, axis=-1, keepdims=True)
        out = jnp.dot(p.astype(jnp.bfloat16), v.astype(jnp.bfloat16),
                      preferred_element_type=jnp.float32)  # (Lq, D)
        return out * (1.0 / denom)   # exact divide (closer parity w/ reference)

    def series_decomp(xv):
        # Replicate-padded moving average as one tiny (L,L)x(L,D) f32 matmul:
        # no concat temporary, no sublane-misaligned slices.
        trend = jnp.dot(ma, xv, preferred_element_type=jnp.float32)
        return xv - trend, trend

    hidden = None
    for l in range(num_layers):              # static unroll over layers
        # --- self attention (fused QKV projection) ---------------------------
        qkv = mm(xb, wqkv_ref[l], bqkv_ref[l])                     # (L, 3D)
        q, k, v = qkv[:, 0:D], qkv[:, D:2 * D], qkv[:, 2 * D:3 * D]
        a1 = mm(attention(q, k, v), wo_ref[l], bo_ref[l])
        x1, trend1 = series_decomp(xb + a1)

        # --- cross attention (fused KV projection) ---------------------------
        q2 = mm(x1, wq2_ref[l], bq2_ref[l])                        # (L, D)
        kv2 = jnp.dot(cb, wkv2_ref[l],
                      preferred_element_type=jnp.float32) + bkv2_ref[l]
        k2, v2 = kv2[:, 0:D], kv2[:, D:2 * D]
        a2 = mm(attention(q2, k2, v2), wo2_ref[l], bo2_ref[l])
        x2, trend2 = series_decomp(x1 + a2)

        # --- feed forward -----------------------------------------------------
        hidden = jnp.maximum(mm(x2, wf1_ref[l], bf1_ref[l]), 0.0)  # (L, F)
        y = mm(hidden, wf2_ref[l], bf2_ref[l])                     # (L, D)
        x3, trend3 = series_decomp(x2 + y)

        # --- trend projection + running-trend accumulation (lane-dense) ------
        tr = tr + mm(trend1 + trend2 + trend3, wproj_ref[l], bproj_ref[l])
        xb = x3

    # --- final LayerNorm (applied once, after the layer loop) -----------------
    mu = jnp.mean(xb, axis=-1, keepdims=True)
    xc = xb - mu
    var = jnp.mean(xc * xc, axis=-1, keepdims=True)
    xn = xc * jax.lax.rsqrt(var + eps) * gamma_ref[...] + beta_ref[...]

    x_out_ref[0] = xn.astype(x_out_ref.dtype)
    trend_out_ref[0] = tr.astype(trend_out_ref.dtype)
    hidden_out_ref[0] = hidden.astype(hidden_out_ref.dtype)


# ----------------------------------------------------------------------------
# Decoder forward (faithful to Decoder.forward)
# ----------------------------------------------------------------------------

def decoder_forward(params, x, cross, trend, x_mask=None, cross_mask=None):
    """Loop layers, accumulate trend, apply norm; return (x, trend, hidden).
    The layer loop, trend accumulation and final norm are fused into ONE
    pallas_call (grid over batch)."""
    if x_mask is not None or cross_mask is not None:
        # TODO(synk): attention masks are not supported in this fused kernel.
        raise NotImplementedError("x_mask / cross_mask are not supported")

    B, L, D = x.shape
    S = cross.shape[1]
    NL = params["Wqkv"].shape[0]
    F = params["Wf1"].shape[2]
    Cp = params["Wproj"].shape[2]
    c_out = trend.shape[-1]

    # Lane-dense trend path: pad c_out -> Cp (=128) once, outside the kernel.
    trend_p = jnp.pad(trend, ((0, 0), (0, 0), (0, Cp - c_out)))
    ma = jnp.asarray(_ma_matrix(L, MA_KSIZE))

    weight_names = ("Wqkv", "bqkv", "Wo", "bo", "Wq2", "bq2", "Wkv2", "bkv2",
                    "Wo2", "bo2", "Wf1", "bf1", "Wf2", "bf2", "Wproj", "bproj",
                    "gamma", "beta")
    weights = [params[n] for n in weight_names]

    def _full(arr):
        zeros = (0,) * arr.ndim
        return pl.BlockSpec(arr.shape, lambda b, _z=zeros: _z)

    in_specs = ([
        pl.BlockSpec((1, L, D), lambda b: (b, 0, 0)),
        pl.BlockSpec((1, S, D), lambda b: (b, 0, 0)),
        pl.BlockSpec((1, L, Cp), lambda b: (b, 0, 0)),
        _full(ma),
    ] + [_full(w) for w in weights])

    out_specs = [
        pl.BlockSpec((1, L, D), lambda b: (b, 0, 0)),
        pl.BlockSpec((1, L, Cp), lambda b: (b, 0, 0)),
        pl.BlockSpec((1, L, F), lambda b: (b, 0, 0)),
    ]
    out_shapes = (
        jax.ShapeDtypeStruct((B, L, D), jnp.float32),
        jax.ShapeDtypeStruct((B, L, Cp), jnp.float32),
        jax.ShapeDtypeStruct((B, L, F), jnp.float32),
    )

    # Advisory cost estimate so XLA can schedule around the custom call.
    flops = 2 * B * NL * (
        L * D * 3 * D + 2 * L * L * D + L * D * D                 # self attn
        + L * D * D + S * D * 2 * D + 2 * L * S * D + L * D * D   # cross attn
        + 2 * L * D * F                                           # feed forward
        + 3 * L * L * D                                           # decomps
        + L * D * Cp)                                             # trend proj
    bytes_w = sum(int(w.size) * w.dtype.itemsize for w in weights)
    bytes_act = 4 * (B * L * (2 * D + 2 * Cp + F) + B * S * D)
    cost = pl.CostEstimate(
        flops=flops,
        transcendentals=B * NL * (L * L + L * S) + B * L,
        bytes_accessed=bytes_w + bytes_act)

    kernel = functools.partial(_decoder_kernel, num_layers=NL)

    x_out, trend_out, hidden = pl.pallas_call(
        kernel,
        out_shape=out_shapes,
        grid=(B,),
        in_specs=in_specs,
        out_specs=out_specs,
        # Running trend accumulated in place (trend input 2 -> trend output 1).
        input_output_aliases={2: 1},
        compiler_params=pltpu.CompilerParams(
            dimension_semantics=("parallel",),   # one batch per TC on v7x
        ),
        cost_estimate=cost,
    )(x, cross, trend_p, ma, *weights)

    return x_out, trend_out[..., :c_out], hidden


# ----------------------------------------------------------------------------
# Deterministic parameter initialization (stacked over layers)
# ----------------------------------------------------------------------------

def init_decoder_params(key, num_layers, d_model, d_ff, c_out,
                        trend_pad=TREND_PAD):
    assert c_out <= trend_pad
    scale = 1.0 / math.sqrt(float(d_model))

    def one_layer(k):
        ks = jax.random.split(k, 8)

        def w(kk, fin, fout):
            return (jax.random.normal(kk, (fin, fout), jnp.float32)
                    / math.sqrt(float(fin)))

        def b(n):
            return jnp.zeros((1, n), jnp.float32)

        Wqkv = w(ks[0], d_model, 3 * d_model)
        # Fold the 1/sqrt(D) attention scale into the Q projection columns.
        Wqkv = Wqkv.at[:, :d_model].multiply(scale)
        # Trend projection padded to trend_pad lanes (zero beyond c_out).
        Wproj = jnp.zeros((d_model, trend_pad), jnp.float32)
        Wproj = Wproj.at[:, :c_out].set(w(ks[7], d_model, c_out))
        return dict(
            Wqkv=Wqkv.astype(jnp.bfloat16), bqkv=b(3 * d_model),
            Wo=w(ks[1], d_model, d_model).astype(jnp.bfloat16), bo=b(d_model),
            Wq2=(w(ks[2], d_model, d_model) * scale).astype(jnp.bfloat16),
            bq2=b(d_model),
            Wkv2=w(ks[3], d_model, 2 * d_model).astype(jnp.bfloat16),
            bkv2=b(2 * d_model),
            Wo2=w(ks[4], d_model, d_model).astype(jnp.bfloat16), bo2=b(d_model),
            Wf1=w(ks[5], d_model, d_ff).astype(jnp.bfloat16), bf1=b(d_ff),
            Wf2=w(ks[6], d_ff, d_model).astype(jnp.bfloat16), bf2=b(d_model),
            Wproj=Wproj.astype(jnp.bfloat16), bproj=b(trend_pad),
        )

    layers = [one_layer(k) for k in jax.random.split(key, num_layers)]
    stacked = {name: jnp.stack([lp[name] for lp in layers])
               for name in layers[0]}
    stacked["gamma"] = jnp.ones((1, d_model), jnp.float32)
    stacked["beta"] = jnp.zeros((1, d_model), jnp.float32)
    return stacked


# ----------------------------------------------------------------------------
# Main
# ----------------------------------------------------------------------------

if __name__ == "__main__":
    B, L, S = 2, 8, 8                    # batch, target seq len, cross seq len
    d_model, d_ff, c_out = 128, 256, 8   # lane-dense feature dims
    num_layers = 2

    key = jax.random.PRNGKey(0)
    kx, kc, kt, kp = jax.random.split(key, 4)
    x = jax.random.normal(kx, (B, L, d_model), jnp.float32)
    cross = jax.random.normal(kc, (B, S, d_model), jnp.float32)
    trend = jax.random.normal(kt, (B, L, c_out), jnp.float32)

    params = init_decoder_params(kp, num_layers, d_model, d_ff, c_out)

    fwd = jax.jit(decoder_forward)
    x_out, trend_out, hidden = fwd(params, x, cross, trend)
    jax.block_until_ready((x_out, trend_out, hidden))

    assert x_out.shape == (B, L, d_model)
    assert trend_out.shape == (B, L, c_out)
    assert hidden.shape == (B, L, d_ff)
    assert bool(jnp.all(jnp.isfinite(x_out)))
    assert bool(jnp.all(jnp.isfinite(trend_out)))
    assert bool(jnp.all(jnp.isfinite(hidden)))

    print("KERNEL_OK")
</pallas_src>

<mosaic_0001>
module attributes {stable_mosaic.version = 11 : i64} {
  func.func @_decoder_kernel(%arg0: i32, %arg1: memref<1x8x128xf32, #tpu.memory_space<vmem>>, %arg2: memref<1x8x128xf32, #tpu.memory_space<vmem>>, %arg3: memref<1x8x128xf32, #tpu.memory_space<vmem>>, %arg4: memref<8x8xf32, #tpu.memory_space<vmem>>, %arg5: memref<2x128x384xbf16, #tpu.memory_space<vmem>>, %arg6: memref<2x1x384xf32, #tpu.memory_space<vmem>>, %arg7: memref<2x128x128xbf16, #tpu.memory_space<vmem>>, %arg8: memref<2x1x128xf32, #tpu.memory_space<vmem>>, %arg9: memref<2x128x128xbf16, #tpu.memory_space<vmem>>, %arg10: memref<2x1x128xf32, #tpu.memory_space<vmem>>, %arg11: memref<2x128x256xbf16, #tpu.memory_space<vmem>>, %arg12: memref<2x1x256xf32, #tpu.memory_space<vmem>>, %arg13: memref<2x128x128xbf16, #tpu.memory_space<vmem>>, %arg14: memref<2x1x128xf32, #tpu.memory_space<vmem>>, %arg15: memref<2x128x256xbf16, #tpu.memory_space<vmem>>, %arg16: memref<2x1x256xf32, #tpu.memory_space<vmem>>, %arg17: memref<2x256x128xbf16, #tpu.memory_space<vmem>>, %arg18: memref<2x1x128xf32, #tpu.memory_space<vmem>>, %arg19: memref<2x128x128xbf16, #tpu.memory_space<vmem>>, %arg20: memref<2x1x128xf32, #tpu.memory_space<vmem>>, %arg21: memref<1x128xf32, #tpu.memory_space<vmem>>, %arg22: memref<1x128xf32, #tpu.memory_space<vmem>>, %arg23: memref<1x8x128xf32, #tpu.memory_space<vmem>>, %arg24: memref<1x8x128xf32, #tpu.memory_space<vmem>>, %arg25: memref<1x8x256xf32, #tpu.memory_space<vmem>>) attributes {dimension_semantics = [#tpu.dimension_semantics<parallel>], iteration_bounds = array<i64: 2>, scalar_prefetch = 0 : i64, scratch_operands = 0 : i64, tpu.core_type = #tpu.core_type<tc>, window_params = [{transform_indices = @transform_0, window_bounds = array<i64: 1, 8, 128>}, {transform_indices = @transform_1, window_bounds = array<i64: 1, 8, 128>}, {transform_indices = @transform_2, window_bounds = array<i64: 1, 8, 128>}, {pipeline_mode = #tpu.pipeline_mode<synchronous>, transform_indices = @transform_3, window_bounds = array<i64: 8, 8>}, {pipeline_mode = #tpu.pipeline_mode<synchronous>, transform_indices = @transform_4, window_bounds = array<i64: 2, 128, 384>}, {pipeline_mode = #tpu.pipeline_mode<synchronous>, transform_indices = @transform_5, window_bounds = array<i64: 2, 1, 384>}, {pipeline_mode = #tpu.pipeline_mode<synchronous>, transform_indices = @transform_6, window_bounds = array<i64: 2, 128, 128>}, {pipeline_mode = #tpu.pipeline_mode<synchronous>, transform_indices = @transform_7, window_bounds = array<i64: 2, 1, 128>}, {pipeline_mode = #tpu.pipeline_mode<synchronous>, transform_indices = @transform_8, window_bounds = array<i64: 2, 128, 128>}, {pipeline_mode = #tpu.pipeline_mode<synchronous>, transform_indices = @transform_9, window_bounds = array<i64: 2, 1, 128>}, {pipeline_mode = #tpu.pipeline_mode<synchronous>, transform_indices = @transform_10, window_bounds = array<i64: 2, 128, 256>}, {pipeline_mode = #tpu.pipeline_mode<synchronous>, transform_indices = @transform_11, window_bounds = array<i64: 2, 1, 256>}, {pipeline_mode = #tpu.pipeline_mode<synchronous>, transform_indices = @transform_12, window_bounds = array<i64: 2, 128, 128>}, {pipeline_mode = #tpu.pipeline_mode<synchronous>, transform_indices = @transform_13, window_bounds = array<i64: 2, 1, 128>}, {pipeline_mode = #tpu.pipeline_mode<synchronous>, transform_indices = @transform_14, window_bounds = array<i64: 2, 128, 256>}, {pipeline_mode = #tpu.pipeline_mode<synchronous>, transform_indices = @transform_15, window_bounds = array<i64: 2, 1, 256>}, {pipeline_mode = #tpu.pipeline_mode<synchronous>, transform_indices = @transform_16, window_bounds = array<i64: 2, 256, 128>}, {pipeline_mode = #tpu.pipeline_mode<synchronous>, transform_indices = @transform_17, window_bounds = array<i64: 2, 1, 128>}, {pipeline_mode = #tpu.pipeline_mode<synchronous>, transform_indices = @transform_18, window_bounds = array<i64: 2, 128, 128>}, {pipeline_mode = #tpu.pipeline_mode<synchronous>, transform_indices = @transform_19, window_bounds = array<i64: 2, 1, 128>}, {pipeline_mode = #tpu.pipeline_mode<synchronous>, transform_indices = @transform_20, window_bounds = array<i64: 1, 128>}, {pipeline_mode = #tpu.pipeline_mode<synchronous>, transform_indices = @transform_21, window_bounds = array<i64: 1, 128>}, {transform_indices = @transform_22, window_bounds = array<i64: 1, 8, 128>}, {transform_indices = @transform_23, window_bounds = array<i64: 1, 8, 128>}, {transform_indices = @transform_24, window_bounds = array<i64: 1, 8, 256>}]} {
    %c0 = arith.constant 0 : index
    %c0_0 = arith.constant 0 : index
    %c0_1 = arith.constant 0 : index
    %0 = vector.load %arg1[%c0, %c0_0, %c0_1] : memref<1x8x128xf32, #tpu.memory_space<vmem>>, vector<1x8x128xf32>
    %1 = vector.shape_cast %0 : vector<1x8x128xf32> to vector<8x128xf32>
    %c0_2 = arith.constant 0 : index
    %c0_3 = arith.constant 0 : index
    %c0_4 = arith.constant 0 : index
    %2 = vector.load %arg2[%c0_2, %c0_3, %c0_4] : memref<1x8x128xf32, #tpu.memory_space<vmem>>, vector<1x8x128xf32>
    %3 = vector.shape_cast %2 : vector<1x8x128xf32> to vector<8x128xf32>
    %4 = arith.truncf %3 : vector<8x128xf32> to vector<8x128xbf16>
    %c0_5 = arith.constant 0 : index
    %c0_6 = arith.constant 0 : index
    %c0_7 = arith.constant 0 : index
    %5 = vector.load %arg3[%c0_5, %c0_6, %c0_7] : memref<1x8x128xf32, #tpu.memory_space<vmem>>, vector<1x8x128xf32>
    %6 = vector.shape_cast %5 : vector<1x8x128xf32> to vector<8x128xf32>
    %c0_8 = arith.constant 0 : index
    %c0_9 = arith.constant 0 : index
    %7 = vector.load %arg4[%c0_8, %c0_9] : memref<8x8xf32, #tpu.memory_space<vmem>>, vector<8x8xf32>
    %c0_10 = arith.constant 0 : index
    %c0_11 = arith.constant 0 : index
    %c0_12 = arith.constant 0 : index
    %8 = vector.load %arg5[%c0_10, %c0_11, %c0_12] : memref<2x128x384xbf16, #tpu.memory_space<vmem>>, vector<1x128x384xbf16>
    %9 = vector.shape_cast %8 : vector<1x128x384xbf16> to vector<128x384xbf16>
    %c0_13 = arith.constant 0 : index
    %c0_14 = arith.constant 0 : index
    %c0_15 = arith.constant 0 : index
    %10 = vector.load %arg6[%c0_13, %c0_14, %c0_15] : memref<2x1x384xf32, #tpu.memory_space<vmem>>, vector<1x1x384xf32>
    %11 = vector.shape_cast %10 : vector<1x1x384xf32> to vector<1x384xf32>
    %12 = arith.truncf %1 : vector<8x128xf32> to vector<8x128xbf16>
    %cst = arith.constant dense<0.000000e+00> : vector<8x384xf32>
    %13 = tpu.matmul %12, %9, %cst {dimension_numbers = #tpu.dot_dimension_numbers<[1], [0], [0], [1], [0, 0, 1, 1], [], []>} : vector<8x128xbf16>, vector<128x384xbf16>, vector<8x384xf32> -> vector<8x384xf32>
    %14 = vector.broadcast %11 : vector<1x384xf32> to vector<8x384xf32>
    %15 = arith.addf %13, %14 : vector<8x384xf32>
    %16 = vector.extract_strided_slice %15 {offsets = [0, 0], sizes = [8, 128], strides = [1, 1]} : vector<8x384xf32> to vector<8x128xf32>
    %17 = vector.extract_strided_slice %15 {offsets = [0, 128], sizes = [8, 128], strides = [1, 1]} : vector<8x384xf32> to vector<8x128xf32>
    %18 = vector.extract_strided_slice %15 {offsets = [0, 256], sizes = [8, 128], strides = [1, 1]} : vector<8x384xf32> to vector<8x128xf32>
    %19 = arith.truncf %16 : vector<8x128xf32> to vector<8x128xbf16>
    %20 = arith.truncf %17 : vector<8x128xf32> to vector<8x128xbf16>
    %cst_16 = arith.constant dense<0.000000e+00> : vector<8x8xf32>
    %21 = tpu.matmul %19, %20, %cst_16 {dimension_numbers = #tpu.dot_dimension_numbers<[1], [1], [0], [0], [0, 0, 1, 0], [], []>} : vector<8x128xbf16>, vector<8x128xbf16>, vector<8x8xf32> -> vector<8x8xf32>
    %cst_17 = arith.constant dense<0xFF800000> : vector<8xf32>
    %22 = vector.multi_reduction <maximumf>, %21, %cst_17 [1] : vector<8x8xf32> to vector<8xf32>
    %23 = vector.shape_cast %22 : vector<8xf32> to vector<8x1xf32>
    %24 = vector.broadcast %23 : vector<8x1xf32> to vector<8x8xf32>
    %25 = arith.subf %21, %24 : vector<8x8xf32>
    %26 = math.exp %25 : vector<8x8xf32>
    %cst_18 = arith.constant dense<0.000000e+00> : vector<8xf32>
    %27 = vector.multi_reduction <add>, %26, %cst_18 [1] : vector<8x8xf32> to vector<8xf32>
    %28 = vector.shape_cast %27 : vector<8xf32> to vector<8x1xf32>
    %29 = arith.truncf %26 : vector<8x8xf32> to vector<8x8xbf16>
    %30 = arith.truncf %18 : vector<8x128xf32> to vector<8x128xbf16>
    %cst_19 = arith.constant dense<0.000000e+00> : vector<8x128xf32>
    %31 = tpu.matmul %29, %30, %cst_19 {dimension_numbers = #tpu.dot_dimension_numbers<[1], [0], [0], [1], [0, 0, 1, 1], [], []>} : vector<8x8xbf16>, vector<8x128xbf16>, vector<8x128xf32> -> vector<8x128xf32>
    %cst_20 = arith.constant 1.000000e+00 : f32
    %32 = vector.broadcast %cst_20 : f32 to vector<8x1xf32>
    %33 = arith.divf %32, %28 : vector<8x1xf32>
    %34 = vector.broadcast %33 : vector<8x1xf32> to vector<8x128xf32>
    %35 = arith.mulf %31, %34 : vector<8x128xf32>
    %c0_21 = arith.constant 0 : index
    %c0_22 = arith.constant 0 : index
    %c0_23 = arith.constant 0 : index
    %36 = vector.load %arg7[%c0_21, %c0_22, %c0_23] : memref<2x128x128xbf16, #tpu.memory_space<vmem>>, vector<1x128x128xbf16>
    %37 = vector.shape_cast %36 : vector<1x128x128xbf16> to vector<128x128xbf16>
    %c0_24 = arith.constant 0 : index
    %c0_25 = arith.constant 0 : index
    %c0_26 = arith.constant 0 : index
    %38 = vector.load %arg8[%c0_24, %c0_25, %c0_26] : memref<2x1x128xf32, #tpu.memory_space<vmem>>, vector<1x1x128xf32>
    %39 = vector.shape_cast %38 : vector<1x1x128xf32> to vector<1x128xf32>
    %40 = arith.truncf %35 : vector<8x128xf32> to vector<8x128xbf16>
    %cst_27 = arith.constant dense<0.000000e+00> : vector<8x128xf32>
    %41 = tpu.matmul %40, %37, %cst_27 {dimension_numbers = #tpu.dot_dimension_numbers<[1], [0], [0], [1], [0, 0, 1, 1], [], []>} : vector<8x128xbf16>, vector<128x128xbf16>, vector<8x128xf32> -> vector<8x128xf32>
    %42 = vector.broadcast %39 : vector<1x128xf32> to vector<8x128xf32>
    %43 = arith.addf %41, %42 : vector<8x128xf32>
    %44 = arith.addf %1, %43 : vector<8x128xf32>
    %cst_28 = arith.constant dense<0.000000e+00> : vector<8x128xf32>
    %45 = tpu.matmul %7, %44, %cst_28 {dimension_numbers = #tpu.dot_dimension_numbers<[1], [0], [0], [1], [0, 0, 1, 1], [], []>} : vector<8x8xf32>, vector<8x128xf32>, vector<8x128xf32> -> vector<8x128xf32>
    %46 = arith.subf %44, %45 : vector<8x128xf32>
    %c0_29 = arith.constant 0 : index
    %c0_30 = arith.constant 0 : index
    %c0_31 = arith.constant 0 : index
    %47 = vector.load %arg9[%c0_29, %c0_30, %c0_31] : memref<2x128x128xbf16, #tpu.memory_space<vmem>>, vector<1x128x128xbf16>
    %48 = vector.shape_cast %47 : vector<1x128x128xbf16> to vector<128x128xbf16>
    %c0_32 = arith.constant 0 : index
    %c0_33 = arith.constant 0 : index
    %c0_34 = arith.constant 0 : index
    %49 = vector.load %arg10[%c0_32, %c0_33, %c0_34] : memref<2x1x128xf32, #tpu.memory_space<vmem>>, vector<1x1x128xf32>
    %50 = vector.shape_cast %49 : vector<1x1x128xf32> to vector<1x128xf32>
    %51 = arith.truncf %46 : vector<8x128xf32> to vector<8x128xbf16>
    %cst_35 = arith.constant dense<0.000000e+00> : vector<8x128xf32>
    %52 = tpu.matmul %51, %48, %cst_35 {dimension_numbers = #tpu.dot_dimension_numbers<[1], [0], [0], [1], [0, 0, 1, 1], [], []>} : vector<8x128xbf16>, vector<128x128xbf16>, vector<8x128xf32> -> vector<8x128xf32>
    %53 = vector.broadcast %50 : vector<1x128xf32> to vector<8x128xf32>
    %54 = arith.addf %52, %53 : vector<8x128xf32>
    %c0_36 = arith.constant 0 : index
    %c0_37 = arith.constant 0 : index
    %c0_38 = arith.constant 0 : index
    %55 = vector.load %arg11[%c0_36, %c0_37, %c0_38] : memref<2x128x256xbf16, #tpu.memory_space<vmem>>, vector<1x128x256xbf16>
    %56 = vector.shape_cast %55 : vector<1x128x256xbf16> to vector<128x256xbf16>
    %cst_39 = arith.constant dense<0.000000e+00> : vector<8x256xf32>
    %57 = tpu.matmul %4, %56, %cst_39 {dimension_numbers = #tpu.dot_dimension_numbers<[1], [0], [0], [1], [0, 0, 1, 1], [], []>} : vector<8x128xbf16>, vector<128x256xbf16>, vector<8x256xf32> -> vector<8x256xf32>
    %c0_40 = arith.constant 0 : index
    %c0_41 = arith.constant 0 : index
    %c0_42 = arith.constant 0 : index
    %58 = vector.load %arg12[%c0_40, %c0_41, %c0_42] : memref<2x1x256xf32, #tpu.memory_space<vmem>>, vector<1x1x256xf32>
    %59 = vector.shape_cast %58 : vector<1x1x256xf32> to vector<1x256xf32>
    %60 = vector.broadcast %59 : vector<1x256xf32> to vector<8x256xf32>
    %61 = arith.addf %57, %60 : vector<8x256xf32>
    %62 = vector.extract_strided_slice %61 {offsets = [0, 0], sizes = [8, 128], strides = [1, 1]} : vector<8x256xf32> to vector<8x128xf32>
    %63 = vector.extract_strided_slice %61 {offsets = [0, 128], sizes = [8, 128], strides = [1, 1]} : vector<8x256xf32> to vector<8x128xf32>
    %64 = arith.truncf %54 : vector<8x128xf32> to vector<8x128xbf16>
    %65 = arith.truncf %62 : vector<8x128xf32> to vector<8x128xbf16>
    %cst_43 = arith.constant dense<0.000000e+00> : vector<8x8xf32>
    %66 = tpu.matmul %64, %65, %cst_43 {dimension_numbers = #tpu.dot_dimension_numbers<[1], [1], [0], [0], [0, 0, 1, 0], [], []>} : vector<8x128xbf16>, vector<8x128xbf16>, vector<8x8xf32> -> vector<8x8xf32>
    %cst_44 = arith.constant dense<0xFF800000> : vector<8xf32>
    %67 = vector.multi_reduction <maximumf>, %66, %cst_44 [1] : vector<8x8xf32> to vector<8xf32>
    %68 = vector.shape_cast %67 : vector<8xf32> to vector<8x1xf32>
    %69 = vector.broadcast %68 : vector<8x1xf32> to vector<8x8xf32>
    %70 = arith.subf %66, %69 : vector<8x8xf32>
    %71 = math.exp %70 : vector<8x8xf32>
    %cst_45 = arith.constant dense<0.000000e+00> : vector<8xf32>
    %72 = vector.multi_reduction <add>, %71, %cst_45 [1] : vector<8x8xf32> to vector<8xf32>
    %73 = vector.shape_cast %72 : vector<8xf32> to vector<8x1xf32>
    %74 = arith.truncf %71 : vector<8x8xf32> to vector<8x8xbf16>
    %75 = arith.truncf %63 : vector<8x128xf32> to vector<8x128xbf16>
    %cst_46 = arith.constant dense<0.000000e+00> : vector<8x128xf32>
    %76 = tpu.matmul %74, %75, %cst_46 {dimension_numbers = #tpu.dot_dimension_numbers<[1], [0], [0], [1], [0, 0, 1, 1], [], []>} : vector<8x8xbf16>, vector<8x128xbf16>, vector<8x128xf32> -> vector<8x128xf32>
    %cst_47 = arith.constant 1.000000e+00 : f32
    %77 = vector.broadcast %cst_47 : f32 to vector<8x1xf32>
    %78 = arith.divf %77, %73 : vector<8x1xf32>
    %79 = vector.broadcast %78 : vector<8x1xf32> to vector<8x128xf32>
    %80 = arith.mulf %76, %79 : vector<8x128xf32>
    %c0_48 = arith.constant 0 : index
    %c0_49 = arith.constant 0 : index
    %c0_50 = arith.constant 0 : index
    %81 = vector.load %arg13[%c0_48, %c0_49, %c0_50] : memref<2x128x128xbf16, #tpu.memory_space<vmem>>, vector<1x128x128xbf16>
    %82 = vector.shape_cast %81 : vector<1x128x128xbf16> to vector<128x128xbf16>
    %c0_51 = arith.constant 0 : index
    %c0_52 = arith.constant 0 : index
    %c0_53 = arith.constant 0 : index
    %83 = vector.load %arg14[%c0_51, %c0_52, %c0_53] : memref<2x1x128xf32, #tpu.memory_space<vmem>>, vector<1x1x128xf32>
    %84 = vector.shape_cast %83 : vector<1x1x128xf32> to vector<1x128xf32>
    %85 = arith.truncf %80 : vector<8x128xf32> to vector<8x128xbf16>
    %cst_54 = arith.constant dense<0.000000e+00> : vector<8x128xf32>
    %86 = tpu.matmul %85, %82, %cst_54 {dimension_numbers = #tpu.dot_dimension_numbers<[1], [0], [0], [1], [0, 0, 1, 1], [], []>} : vector<8x128xbf16>, vector<128x128xbf16>, vector<8x128xf32> -> vector<8x128xf32>
    %87 = vector.broadcast %84 : vector<1x128xf32> to vector<8x128xf32>
    %88 = arith.addf %86, %87 : vector<8x128xf32>
    %89 = arith.addf %46, %88 : vector<8x128xf32>
    %cst_55 = arith.constant dense<0.000000e+00> : vector<8x128xf32>
    %90 = tpu.matmul %7, %89, %cst_55 {dimension_numbers = #tpu.dot_dimension_numbers<[1], [0], [0], [1], [0, 0, 1, 1], [], []>} : vector<8x8xf32>, vector<8x128xf32>, vector<8x128xf32> -> vector<8x128xf32>
    %91 = arith.subf %89, %90 : vector<8x128xf32>
    %c0_56 = arith.constant 0 : index
    %c0_57 = arith.constant 0 : index
    %c0_58 = arith.constant 0 : index
    %92 = vector.load %arg15[%c0_56, %c0_57, %c0_58] : memref<2x128x256xbf16, #tpu.memory_space<vmem>>, vector<1x128x256xbf16>
    %93 = vector.shape_cast %92 : vector<1x128x256xbf16> to vector<128x256xbf16>
    %c0_59 = arith.constant 0 : index
    %c0_60 = arith.constant 0 : index
    %c0_61 = arith.constant 0 : index
    %94 = vector.load %arg16[%c0_59, %c0_60, %c0_61] : memref<2x1x256xf32, #tpu.memory_space<vmem>>, vector<1x1x256xf32>
    %95 = vector.shape_cast %94 : vector<1x1x256xf32> to vector<1x256xf32>
    %96 = arith.truncf %91 : vector<8x128xf32> to vector<8x128xbf16>
    %cst_62 = arith.constant dense<0.000000e+00> : vector<8x256xf32>
    %97 = tpu.matmul %96, %93, %cst_62 {dimension_numbers = #tpu.dot_dimension_numbers<[1], [0], [0], [1], [0, 0, 1, 1], [], []>} : vector<8x128xbf16>, vector<128x256xbf16>, vector<8x256xf32> -> vector<8x256xf32>
    %98 = vector.broadcast %95 : vector<1x256xf32> to vector<8x256xf32>
    %99 = arith.addf %97, %98 : vector<8x256xf32>
    %cst_63 = arith.constant 0.000000e+00 : f32
    %100 = vector.broadcast %cst_63 : f32 to vector<8x256xf32>
    %101 = arith.maximumf %99, %100 : vector<8x256xf32>
    %c0_64 = arith.constant 0 : index
    %c0_65 = arith.constant 0 : index
    %c0_66 = arith.constant 0 : index
    %102 = vector.load %arg17[%c0_64, %c0_65, %c0_66] : memref<2x256x128xbf16, #tpu.memory_space<vmem>>, vector<1x256x128xbf16>
    %103 = vector.shape_cast %102 : vector<1x256x128xbf16> to vector<256x128xbf16>
    %c0_67 = arith.constant 0 : index
    %c0_68 = arith.constant 0 : index
    %c0_69 = arith.constant 0 : index
    %104 = vector.load %arg18[%c0_67, %c0_68, %c0_69] : memref<2x1x128xf32, #tpu.memory_space<vmem>>, vector<1x1x128xf32>
    %105 = vector.shape_cast %104 : vector<1x1x128xf32> to vector<1x128xf32>
    %106 = arith.truncf %101 : vector<8x256xf32> to vector<8x256xbf16>
    %cst_70 = arith.constant dense<0.000000e+00> : vector<8x128xf32>
    %107 = tpu.matmul %106, %103, %cst_70 {dimension_numbers = #tpu.dot_dimension_numbers<[1], [0], [0], [1], [0, 0, 1, 1], [], []>} : vector<8x256xbf16>, vector<256x128xbf16>, vector<8x128xf32> -> vector<8x128xf32>
    %108 = vector.broadcast %105 : vector<1x128xf32> to vector<8x128xf32>
    %109 = arith.addf %107, %108 : vector<8x128xf32>
    %110 = arith.addf %91, %109 : vector<8x128xf32>
    %cst_71 = arith.constant dense<0.000000e+00> : vector<8x128xf32>
    %111 = tpu.matmul %7, %110, %cst_71 {dimension_numbers = #tpu.dot_dimension_numbers<[1], [0], [0], [1], [0, 0, 1, 1], [], []>} : vector<8x8xf32>, vector<8x128xf32>, vector<8x128xf32> -> vector<8x128xf32>
    %112 = arith.subf %110, %111 : vector<8x128xf32>
    %113 = arith.addf %45, %90 : vector<8x128xf32>
    %114 = arith.addf %113, %111 : vector<8x128xf32>
    %c0_72 = arith.constant 0 : index
    %c0_73 = arith.constant 0 : index
    %c0_74 = arith.constant 0 : index
    %115 = vector.load %arg19[%c0_72, %c0_73, %c0_74] : memref<2x128x128xbf16, #tpu.memory_space<vmem>>, vector<1x128x128xbf16>
    %116 = vector.shape_cast %115 : vector<1x128x128xbf16> to vector<128x128xbf16>
    %c0_75 = arith.constant 0 : index
    %c0_76 = arith.constant 0 : index
    %c0_77 = arith.constant 0 : index
    %117 = vector.load %arg20[%c0_75, %c0_76, %c0_77] : memref<2x1x128xf32, #tpu.memory_space<vmem>>, vector<1x1x128xf32>
    %118 = vector.shape_cast %117 : vector<1x1x128xf32> to vector<1x128xf32>
    %119 = arith.truncf %114 : vector<8x128xf32> to vector<8x128xbf16>
    %cst_78 = arith.constant dense<0.000000e+00> : vector<8x128xf32>
    %120 = tpu.matmul %119, %116, %cst_78 {dimension_numbers = #tpu.dot_dimension_numbers<[1], [0], [0], [1], [0, 0, 1, 1], [], []>} : vector<8x128xbf16>, vector<128x128xbf16>, vector<8x128xf32> -> vector<8x128xf32>
    %121 = vector.broadcast %118 : vector<1x128xf32> to vector<8x128xf32>
    %122 = arith.addf %120, %121 : vector<8x128xf32>
    %123 = arith.addf %6, %122 : vector<8x128xf32>
    %c1 = arith.constant 1 : index
    %c0_79 = arith.constant 0 : index
    %c0_80 = arith.constant 0 : index
    %124 = vector.load %arg5[%c1, %c0_79, %c0_80] : memref<2x128x384xbf16, #tpu.memory_space<vmem>>, vector<1x128x384xbf16>
    %125 = vector.shape_cast %124 : vector<1x128x384xbf16> to vector<128x384xbf16>
    %c1_81 = arith.constant 1 : index
    %c0_82 = arith.constant 0 : index
    %c0_83 = arith.constant 0 : index
    %126 = vector.load %arg6[%c1_81, %c0_82, %c0_83] : memref<2x1x384xf32, #tpu.memory_space<vmem>>, vector<1x1x384xf32>
    %127 = vector.shape_cast %126 : vector<1x1x384xf32> to vector<1x384xf32>
    %128 = arith.truncf %112 : vector<8x128xf32> to vector<8x128xbf16>
    %cst_84 = arith.constant dense<0.000000e+00> : vector<8x384xf32>
    %129 = tpu.matmul %128, %125, %cst_84 {dimension_numbers = #tpu.dot_dimension_numbers<[1], [0], [0], [1], [0, 0, 1, 1], [], []>} : vector<8x128xbf16>, vector<128x384xbf16>, vector<8x384xf32> -> vector<8x384xf32>
    %130 = vector.broadcast %127 : vector<1x384xf32> to vector<8x384xf32>
    %131 = arith.addf %129, %130 : vector<8x384xf32>
    %132 = vector.extract_strided_slice %131 {offsets = [0, 0], sizes = [8, 128], strides = [1, 1]} : vector<8x384xf32> to vector<8x128xf32>
    %133 = vector.extract_strided_slice %131 {offsets = [0, 128], sizes = [8, 128], strides = [1, 1]} : vector<8x384xf32> to vector<8x128xf32>
    %134 = vector.extract_strided_slice %131 {offsets = [0, 256], sizes = [8, 128], strides = [1, 1]} : vector<8x384xf32> to vector<8x128xf32>
    %135 = arith.truncf %132 : vector<8x128xf32> to vector<8x128xbf16>
    %136 = arith.truncf %133 : vector<8x128xf32> to vector<8x128xbf16>
    %cst_85 = arith.constant dense<0.000000e+00> : vector<8x8xf32>
    %137 = tpu.matmul %135, %136, %cst_85 {dimension_numbers = #tpu.dot_dimension_numbers<[1], [1], [0], [0], [0, 0, 1, 0], [], []>} : vector<8x128xbf16>, vector<8x128xbf16>, vector<8x8xf32> -> vector<8x8xf32>
    %cst_86 = arith.constant dense<0xFF800000> : vector<8xf32>
    %138 = vector.multi_reduction <maximumf>, %137, %cst_86 [1] : vector<8x8xf32> to vector<8xf32>
    %139 = vector.shape_cast %138 : vector<8xf32> to vector<8x1xf32>
    %140 = vector.broadcast %139 : vector<8x1xf32> to vector<8x8xf32>
    %141 = arith.subf %137, %140 : vector<8x8xf32>
    %142 = math.exp %141 : vector<8x8xf32>
    %cst_87 = arith.constant dense<0.000000e+00> : vector<8xf32>
    %143 = vector.multi_reduction <add>, %142, %cst_87 [1] : vector<8x8xf32> to vector<8xf32>
    %144 = vector.shape_cast %143 : vector<8xf32> to vector<8x1xf32>
    %145 = arith.truncf %142 : vector<8x8xf32> to vector<8x8xbf16>
    %146 = arith.truncf %134 : vector<8x128xf32> to vector<8x128xbf16>
    %cst_88 = arith.constant dense<0.000000e+00> : vector<8x128xf32>
    %147 = tpu.matmul %145, %146, %cst_88 {dimension_numbers = #tpu.dot_dimension_numbers<[1], [0], [0], [1], [0, 0, 1, 1], [], []>} : vector<8x8xbf16>, vector<8x128xbf16>, vector<8x128xf32> -> vector<8x128xf32>
    %cst_89 = arith.constant 1.000000e+00 : f32
    %148 = vector.broadcast %cst_89 : f32 to vector<8x1xf32>
    %149 = arith.divf %148, %144 : vector<8x1xf32>
    %150 = vector.broadcast %149 : vector<8x1xf32> to vector<8x128xf32>
    %151 = arith.mulf %147, %150 : vector<8x128xf32>
    %c1_90 = arith.constant 1 : index
    %c0_91 = arith.constant 0 : index
    %c0_92 = arith.constant 0 : index
    %152 = vector.load %arg7[%c1_90, %c0_91, %c0_92] : memref<2x128x128xbf16, #tpu.memory_space<vmem>>, vector<1x128x128xbf16>
    %153 = vector.shape_cast %152 : vector<1x128x128xbf16> to vector<128x128xbf16>
    %c1_93 = arith.constant 1 : index
    %c0_94 = arith.constant 0 : index
    %c0_95 = arith.constant 0 : index
    %154 = vector.load %arg8[%c1_93, %c0_94, %c0_95] : memref<2x1x128xf32, #tpu.memory_space<vmem>>, vector<1x1x128xf32>
    %155 = vector.shape_cast %154 : vector<1x1x128xf32> to vector<1x128xf32>
    %156 = arith.truncf %151 : vector<8x128xf32> to vector<8x128xbf16>
    %cst_96 = arith.constant dense<0.000000e+00> : vector<8x128xf32>
    %157 = tpu.matmul %156, %153, %cst_96 {dimension_numbers = #tpu.dot_dimension_numbers<[1], [0], [0], [1], [0, 0, 1, 1], [], []>} : vector<8x128xbf16>, vector<128x128xbf16>, vector<8x128xf32> -> vector<8x128xf32>
    %158 = vector.broadcast %155 : vector<1x128xf32> to vector<8x128xf32>
    %159 = arith.addf %157, %158 : vector<8x128xf32>
    %160 = arith.addf %112, %159 : vector<8x128xf32>
    %cst_97 = arith.constant dense<0.000000e+00> : vector<8x128xf32>
    %161 = tpu.matmul %7, %160, %cst_97 {dimension_numbers = #tpu.dot_dimension_numbers<[1], [0], [0], [1], [0, 0, 1, 1], [], []>} : vector<8x8xf32>, vector<8x128xf32>, vector<8x128xf32> -> vector<8x128xf32>
    %162 = arith.subf %160, %161 : vector<8x128xf32>
    %c1_98 = arith.constant 1 : index
    %c0_99 = arith.constant 0 : index
    %c0_100 = arith.constant 0 : index
    %163 = vector.load %arg9[%c1_98, %c0_99, %c0_100] : memref<2x128x128xbf16, #tpu.memory_space<vmem>>, vector<1x128x128xbf16>
    %164 = vector.shape_cast %163 : vector<1x128x128xbf16> to vector<128x128xbf16>
    %c1_101 = arith.constant 1 : index
    %c0_102 = arith.constant 0 : index
    %c0_103 = arith.constant 0 : index
    %165 = vector.load %arg10[%c1_101, %c0_102, %c0_103] : memref<2x1x128xf32, #tpu.memory_space<vmem>>, vector<1x1x128xf32>
    %166 = vector.shape_cast %165 : vector<1x1x128xf32> to vector<1x128xf32>
    %167 = arith.truncf %162 : vector<8x128xf32> to vector<8x128xbf16>
    %cst_104 = arith.constant dense<0.000000e+00> : vector<8x128xf32>
    %168 = tpu.matmul %167, %164, %cst_104 {dimension_numbers = #tpu.dot_dimension_numbers<[1], [0], [0], [1], [0, 0, 1, 1], [], []>} : vector<8x128xbf16>, vector<128x128xbf16>, vector<8x128xf32> -> vector<8x128xf32>
    %169 = vector.broadcast %166 : vector<1x128xf32> to vector<8x128xf32>
    %170 = arith.addf %168, %169 : vector<8x128xf32>
    %c1_105 = arith.constant 1 : index
    %c0_106 = arith.constant 0 : index
    %c0_107 = arith.constant 0 : index
    %171 = vector.load %arg11[%c1_105, %c0_106, %c0_107] : memref<2x128x256xbf16, #tpu.memory_space<vmem>>, vector<1x128x256xbf16>
    %172 = vector.shape_cast %171 : vector<1x128x256xbf16> to vector<128x256xbf16>
    %cst_108 = arith.constant dense<0.000000e+00> : vector<8x256xf32>
    %173 = tpu.matmul %4, %172, %cst_108 {dimension_numbers = #tpu.dot_dimension_numbers<[1], [0], [0], [1], [0, 0, 1, 1], [], []>} : vector<8x128xbf16>, vector<128x256xbf16>, vector<8x256xf32> -> vector<8x256xf32>
    %c1_109 = arith.constant 1 : index
    %c0_110 = arith.constant 0 : index
    %c0_111 = arith.constant 0 : index
    %174 = vector.load %arg12[%c1_109, %c0_110, %c0_111] : memref<2x1x256xf32, #tpu.memory_space<vmem>>, vector<1x1x256xf32>
    %175 = vector.shape_cast %174 : vector<1x1x256xf32> to vector<1x256xf32>
    %176 = vector.broadcast %175 : vector<1x256xf32> to vector<8x256xf32>
    %177 = arith.addf %173, %176 : vector<8x256xf32>
    %178 = vector.extract_strided_slice %177 {offsets = [0, 0], sizes = [8, 128], strides = [1, 1]} : vector<8x256xf32> to vector<8x128xf32>
    %179 = vector.extract_strided_slice %177 {offsets = [0, 128], sizes = [8, 128], strides = [1, 1]} : vector<8x256xf32> to vector<8x128xf32>
    %180 = arith.truncf %170 : vector<8x128xf32> to vector<8x128xbf16>
    %181 = arith.truncf %178 : vector<8x128xf32> to vector<8x128xbf16>
    %cst_112 = arith.constant dense<0.000000e+00> : vector<8x8xf32>
    %182 = tpu.matmul %180, %181, %cst_112 {dimension_numbers = #tpu.dot_dimension_numbers<[1], [1], [0], [0], [0, 0, 1, 0], [], []>} : vector<8x128xbf16>, vector<8x128xbf16>, vector<8x8xf32> -> vector<8x8xf32>
    %cst_113 = arith.constant dense<0xFF800000> : vector<8xf32>
    %183 = vector.multi_reduction <maximumf>, %182, %cst_113 [1] : vector<8x8xf32> to vector<8xf32>
    %184 = vector.shape_cast %183 : vector<8xf32> to vector<8x1xf32>
    %185 = vector.broadcast %184 : vector<8x1xf32> to vector<8x8xf32>
    %186 = arith.subf %182, %185 : vector<8x8xf32>
    %187 = math.exp %186 : vector<8x8xf32>
    %cst_114 = arith.constant dense<0.000000e+00> : vector<8xf32>
    %188 = vector.multi_reduction <add>, %187, %cst_114 [1] : vector<8x8xf32> to vector<8xf32>
    %189 = vector.shape_cast %188 : vector<8xf32> to vector<8x1xf32>
    %190 = arith.truncf %187 : vector<8x8xf32> to vector<8x8xbf16>
    %191 = arith.truncf %179 : vector<8x128xf32> to vector<8x128xbf16>
    %cst_115 = arith.constant dense<0.000000e+00> : vector<8x128xf32>
    %192 = tpu.matmul %190, %191, %cst_115 {dimension_numbers = #tpu.dot_dimension_numbers<[1], [0], [0], [1], [0, 0, 1, 1], [], []>} : vector<8x8xbf16>, vector<8x128xbf16>, vector<8x128xf32> -> vector<8x128xf32>
    %cst_116 = arith.constant 1.000000e+00 : f32
    %193 = vector.broadcast %cst_116 : f32 to vector<8x1xf32>
    %194 = arith.divf %193, %189 : vector<8x1xf32>
    %195 = vector.broadcast %194 : vector<8x1xf32> to vector<8x128xf32>
    %196 = arith.mulf %192, %195 : vector<8x128xf32>
    %c1_117 = arith.constant 1 : index
    %c0_118 = arith.constant 0 : index
    %c0_119 = arith.constant 0 : index
    %197 = vector.load %arg13[%c1_117, %c0_118, %c0_119] : memref<2x128x128xbf16, #tpu.memory_space<vmem>>, vector<1x128x128xbf16>
    %198 = vector.shape_cast %197 : vector<1x128x128xbf16> to vector<128x128xbf16>
    %c1_120 = arith.constant 1 : index
    %c0_121 = arith.constant 0 : index
    %c0_122 = arith.constant 0 : index
    %199 = vector.load %arg14[%c1_120, %c0_121, %c0_122] : memref<2x1x128xf32, #tpu.memory_space<vmem>>, vector<1x1x128xf32>
    %200 = vector.shape_cast %199 : vector<1x1x128xf32> to vector<1x128xf32>
    %201 = arith.truncf %196 : vector<8x128xf32> to vector<8x128xbf16>
    %cst_123 = arith.constant dense<0.000000e+00> : vector<8x128xf32>
    %202 = tpu.matmul %201, %198, %cst_123 {dimension_numbers = #tpu.dot_dimension_numbers<[1], [0], [0], [1], [0, 0, 1, 1], [], []>} : vector<8x128xbf16>, vector<128x128xbf16>, vector<8x128xf32> -> vector<8x128xf32>
    %203 = vector.broadcast %200 : vector<1x128xf32> to vector<8x128xf32>
    %204 = arith.addf %202, %203 : vector<8x128xf32>
    %205 = arith.addf %162, %204 : vector<8x128xf32>
    %cst_124 = arith.constant dense<0.000000e+00> : vector<8x128xf32>
    %206 = tpu.matmul %7, %205, %cst_124 {dimension_numbers = #tpu.dot_dimension_numbers<[1], [0], [0], [1], [0, 0, 1, 1], [], []>} : vector<8x8xf32>, vector<8x128xf32>, vector<8x128xf32> -> vector<8x128xf32>
    %207 = arith.subf %205, %206 : vector<8x128xf32>
    %c1_125 = arith.constant 1 : index
    %c0_126 = arith.constant 0 : index
    %c0_127 = arith.constant 0 : index
    %208 = vector.load %arg15[%c1_125, %c0_126, %c0_127] : memref<2x128x256xbf16, #tpu.memory_space<vmem>>, vector<1x128x256xbf16>
    %209 = vector.shape_cast %208 : vector<1x128x256xbf16> to vector<128x256xbf16>
    %c1_128 = arith.constant 1 : index
    %c0_129 = arith.constant 0 : index
    %c0_130 = arith.constant 0 : index
    %210 = vector.load %arg16[%c1_128, %c0_129, %c0_130] : memref<2x1x256xf32, #tpu.memory_space<vmem>>, vector<1x1x256xf32>
    %211 = vector.shape_cast %210 : vector<1x1x256xf32> to vector<1x256xf32>
    %212 = arith.truncf %207 : vector<8x128xf32> to vector<8x128xbf16>
    %cst_131 = arith.constant dense<0.000000e+00> : vector<8x256xf32>
    %213 = tpu.matmul %212, %209, %cst_131 {dimension_numbers = #tpu.dot_dimension_numbers<[1], [0], [0], [1], [0, 0, 1, 1], [], []>} : vector<8x128xbf16>, vector<128x256xbf16>, vector<8x256xf32> -> vector<8x256xf32>
    %214 = vector.broadcast %211 : vector<1x256xf32> to vector<8x256xf32>
    %215 = arith.addf %213, %214 : vector<8x256xf32>
    %cst_132 = arith.constant 0.000000e+00 : f32
    %216 = vector.broadcast %cst_132 : f32 to vector<8x256xf32>
    %217 = arith.maximumf %215, %216 : vector<8x256xf32>
    %c1_133 = arith.constant 1 : index
    %c0_134 = arith.constant 0 : index
    %c0_135 = arith.constant 0 : index
    %218 = vector.load %arg17[%c1_133, %c0_134, %c0_135] : memref<2x256x128xbf16, #tpu.memory_space<vmem>>, vector<1x256x128xbf16>
    %219 = vector.shape_cast %218 : vector<1x256x128xbf16> to vector<256x128xbf16>
    %c1_136 = arith.constant 1 : index
    %c0_137 = arith.constant 0 : index
    %c0_138 = arith.constant 0 : index
    %220 = vector.load %arg18[%c1_136, %c0_137, %c0_138] : memref<2x1x128xf32, #tpu.memory_space<vmem>>, vector<1x1x128xf32>
    %221 = vector.shape_cast %220 : vector<1x1x128xf32> to vector<1x128xf32>
    %222 = arith.truncf %217 : vector<8x256xf32> to vector<8x256xbf16>
    %cst_139 = arith.constant dense<0.000000e+00> : vector<8x128xf32>
    %223 = tpu.matmul %222, %219, %cst_139 {dimension_numbers = #tpu.dot_dimension_numbers<[1], [0], [0], [1], [0, 0, 1, 1], [], []>} : vector<8x256xbf16>, vector<256x128xbf16>, vector<8x128xf32> -> vector<8x128xf32>
    %224 = vector.broadcast %221 : vector<1x128xf32> to vector<8x128xf32>
    %225 = arith.addf %223, %224 : vector<8x128xf32>
    %226 = arith.addf %207, %225 : vector<8x128xf32>
    %cst_140 = arith.constant dense<0.000000e+00> : vector<8x128xf32>
    %227 = tpu.matmul %7, %226, %cst_140 {dimension_numbers = #tpu.dot_dimension_numbers<[1], [0], [0], [1], [0, 0, 1, 1], [], []>} : vector<8x8xf32>, vector<8x128xf32>, vector<8x128xf32> -> vector<8x128xf32>
    %228 = arith.subf %226, %227 : vector<8x128xf32>
    %229 = arith.addf %161, %206 : vector<8x128xf32>
    %230 = arith.addf %229, %227 : vector<8x128xf32>
    %c1_141 = arith.constant 1 : index
    %c0_142 = arith.constant 0 : index
    %c0_143 = arith.constant 0 : index
    %231 = vector.load %arg19[%c1_141, %c0_142, %c0_143] : memref<2x128x128xbf16, #tpu.memory_space<vmem>>, vector<1x128x128xbf16>
    %232 = vector.shape_cast %231 : vector<1x128x128xbf16> to vector<128x128xbf16>
    %c1_144 = arith.constant 1 : index
    %c0_145 = arith.constant 0 : index
    %c0_146 = arith.constant 0 : index
    %233 = vector.load %arg20[%c1_144, %c0_145, %c0_146] : memref<2x1x128xf32, #tpu.memory_space<vmem>>, vector<1x1x128xf32>
    %234 = vector.shape_cast %233 : vector<1x1x128xf32> to vector<1x128xf32>
    %235 = arith.truncf %230 : vector<8x128xf32> to vector<8x128xbf16>
    %cst_147 = arith.constant dense<0.000000e+00> : vector<8x128xf32>
    %236 = tpu.matmul %235, %232, %cst_147 {dimension_numbers = #tpu.dot_dimension_numbers<[1], [0], [0], [1], [0, 0, 1, 1], [], []>} : vector<8x128xbf16>, vector<128x128xbf16>, vector<8x128xf32> -> vector<8x128xf32>
    %237 = vector.broadcast %234 : vector<1x128xf32> to vector<8x128xf32>
    %238 = arith.addf %236, %237 : vector<8x128xf32>
    %239 = arith.addf %123, %238 : vector<8x128xf32>
    %cst_148 = arith.constant dense<0.000000e+00> : vector<8xf32>
    %240 = vector.multi_reduction <add>, %228, %cst_148 [1] : vector<8x128xf32> to vector<8xf32>
    %241 = vector.shape_cast %240 : vector<8xf32> to vector<8x1xf32>
    %cst_149 = arith.constant 1.280000e+02 : f32
    %242 = vector.broadcast %cst_149 : f32 to vector<8x1xf32>
    %243 = arith.divf %241, %242 : vector<8x1xf32>
    %244 = vector.broadcast %243 : vector<8x1xf32> to vector<8x128xf32>
    %245 = arith.subf %228, %244 : vector<8x128xf32>
    %246 = arith.mulf %245, %245 : vector<8x128xf32>
    %cst_150 = arith.constant dense<0.000000e+00> : vector<8xf32>
    %247 = vector.multi_reduction <add>, %246, %cst_150 [1] : vector<8x128xf32> to vector<8xf32>
    %248 = vector.shape_cast %247 : vector<8xf32> to vector<8x1xf32>
    %cst_151 = arith.constant 1.280000e+02 : f32
    %249 = vector.broadcast %cst_151 : f32 to vector<8x1xf32>
    %250 = arith.divf %248, %249 : vector<8x1xf32>
    %cst_152 = arith.constant 9.99999974E-6 : f32
    %251 = vector.broadcast %cst_152 : f32 to vector<8x1xf32>
    %252 = arith.addf %250, %251 : vector<8x1xf32>
    %253 = math.rsqrt %252 : vector<8x1xf32>
    %254 = vector.broadcast %253 : vector<8x1xf32> to vector<8x128xf32>
    %255 = arith.mulf %245, %254 : vector<8x128xf32>
    %c0_153 = arith.constant 0 : index
    %c0_154 = arith.constant 0 : index
    %256 = vector.load %arg21[%c0_153, %c0_154] : memref<1x128xf32, #tpu.memory_space<vmem>>, vector<1x128xf32>
    %257 = vector.broadcast %256 : vector<1x128xf32> to vector<8x128xf32>
    %258 = arith.mulf %255, %257 : vector<8x128xf32>
    %c0_155 = arith.constant 0 : index
    %c0_156 = arith.constant 0 : index
    %259 = vector.load %arg22[%c0_155, %c0_156] : memref<1x128xf32, #tpu.memory_space<vmem>>, vector<1x128xf32>
    %260 = vector.broadcast %259 : vector<1x128xf32> to vector<8x128xf32>
    %261 = arith.addf %258, %260 : vector<8x128xf32>
    %c0_157 = arith.constant 0 : index
    %c0_158 = arith.constant 0 : index
    %c0_159 = arith.constant 0 : index
    %262 = vector.load %arg23[%c0_157, %c0_158, %c0_159] : memref<1x8x128xf32, #tpu.memory_space<vmem>>, vector<1x8x128xf32>
    %263 = vector.shape_cast %262 : vector<1x8x128xf32> to vector<8x128xf32>
    %264 = vector.shape_cast %261 : vector<8x128xf32> to vector<1x8x128xf32>
    tpu.vector_store %arg23[%c0_157, %c0_158, %c0_159], %264 {strides = array<i32>} : memref<1x8x128xf32, #tpu.memory_space<vmem>>, vector<1x8x128xf32>,
    %c0_160 = arith.constant 0 : index
    %c0_161 = arith.constant 0 : index
    %c0_162 = arith.constant 0 : index
    %265 = vector.load %arg24[%c0_160, %c0_161, %c0_162] : memref<1x8x128xf32, #tpu.memory_space<vmem>>, vector<1x8x128xf32>
    %266 = vector.shape_cast %265 : vector<1x8x128xf32> to vector<8x128xf32>
    %267 = vector.shape_cast %239 : vector<8x128xf32> to vector<1x8x128xf32>
    tpu.vector_store %arg24[%c0_160, %c0_161, %c0_162], %267 {strides = array<i32>} : memref<1x8x128xf32, #tpu.memory_space<vmem>>, vector<1x8x128xf32>,
    %c0_163 = arith.constant 0 : index
    %c0_164 = arith.constant 0 : index
    %c0_165 = arith.constant 0 : index
    %268 = vector.load %arg25[%c0_163, %c0_164, %c0_165] : memref<1x8x256xf32, #tpu.memory_space<vmem>>, vector<1x8x256xf32>
    %269 = vector.shape_cast %268 : vector<1x8x256xf32> to vector<8x256xf32>
    %270 = vector.shape_cast %217 : vector<8x256xf32> to vector<1x8x256xf32>
    tpu.vector_store %arg25[%c0_163, %c0_164, %c0_165], %270 {strides = array<i32>} : memref<1x8x256xf32, #tpu.memory_space<vmem>>, vector<1x8x256xf32>,
    return
  }
  func.func @transform_0(%arg0: i32) -> (i32, i32, i32) {
    %c0_i32 = arith.constant 0 : i32
    %c0_i32_0 = arith.constant 0 : i32
    %c0_i32_1 = arith.constant 0 : i32
    return %arg0, %c0_i32, %c0_i32_0 : i32, i32, i32
  }
  func.func @transform_1(%arg0: i32) -> (i32, i32, i32) {
    %c0_i32 = arith.constant 0 : i32
    %c0_i32_0 = arith.constant 0 : i32
    %c0_i32_1 = arith.constant 0 : i32
    return %arg0, %c0_i32, %c0_i32_0 : i32, i32, i32
  }
  func.func @transform_2(%arg0: i32) -> (i32, i32, i32) {
    %c0_i32 = arith.constant 0 : i32
    %c0_i32_0 = arith.constant 0 : i32
    %c0_i32_1 = arith.constant 0 : i32
    return %arg0, %c0_i32, %c0_i32_0 : i32, i32, i32
  }
  func.func @transform_3(%arg0: i32) -> (i32, i32) {
    %c0_i32 = arith.constant 0 : i32
    %c0_i32_0 = arith.constant 0 : i32
    %c0_i32_1 = arith.constant 0 : i32
    return %c0_i32, %c0_i32_0 : i32, i32
  }
  func.func @transform_4(%arg0: i32) -> (i32, i32, i32) {
    %c0_i32 = arith.constant 0 : i32
    %c0_i32_0 = arith.constant 0 : i32
    %c0_i32_1 = arith.constant 0 : i32
    %c0_i32_2 = arith.constant 0 : i32
    return %c0_i32, %c0_i32_0, %c0_i32_1 : i32, i32, i32
  }
  func.func @transform_5(%arg0: i32) -> (i32, i32, i32) {
    %c0_i32 = arith.constant 0 : i32
    %c0_i32_0 = arith.constant 0 : i32
    %c0_i32_1 = arith.constant 0 : i32
    %c0_i32_2 = arith.constant 0 : i32
    return %c0_i32, %c0_i32_0, %c0_i32_1 : i32, i32, i32
  }
  func.func @transform_6(%arg0: i32) -> (i32, i32, i32) {
    %c0_i32 = arith.constant 0 : i32
    %c0_i32_0 = arith.constant 0 : i32
    %c0_i32_1 = arith.constant 0 : i32
    %c0_i32_2 = arith.constant 0 : i32
    return %c0_i32, %c0_i32_0, %c0_i32_1 : i32, i32, i32
  }
  func.func @transform_7(%arg0: i32) -> (i32, i32, i32) {
    %c0_i32 = arith.constant 0 : i32
    %c0_i32_0 = arith.constant 0 : i32
    %c0_i32_1 = arith.constant 0 : i32
    %c0_i32_2 = arith.constant 0 : i32
    return %c0_i32, %c0_i32_0, %c0_i32_1 : i32, i32, i32
  }
  func.func @transform_8(%arg0: i32) -> (i32, i32, i32) {
    %c0_i32 = arith.constant 0 : i32
    %c0_i32_0 = arith.constant 0 : i32
    %c0_i32_1 = arith.constant 0 : i32
    %c0_i32_2 = arith.constant 0 : i32
    return %c0_i32, %c0_i32_0, %c0_i32_1 : i32, i32, i32
  }
  func.func @transform_9(%arg0: i32) -> (i32, i32, i32) {
    %c0_i32 = arith.constant 0 : i32
    %c0_i32_0 = arith.constant 0 : i32
    %c0_i32_1 = arith.constant 0 : i32
    %c0_i32_2 = arith.constant 0 : i32
    return %c0_i32, %c0_i32_0, %c0_i32_1 : i32, i32, i32
  }
  func.func @transform_10(%arg0: i32) -> (i32, i32, i32) {
    %c0_i32 = arith.constant 0 : i32
    %c0_i32_0 = arith.constant 0 : i32
    %c0_i32_1 = arith.constant 0 : i32
    %c0_i32_2 = arith.constant 0 : i32
    return %c0_i32, %c0_i32_0, %c0_i32_1 : i32, i32, i32
  }
  func.func @transform_11(%arg0: i32) -> (i32, i32, i32) {
    %c0_i32 = arith.constant 0 : i32
    %c0_i32_0 = arith.constant 0 : i32
    %c0_i32_1 = arith.constant 0 : i32
    %c0_i32_2 = arith.constant 0 : i32
    return %c0_i32, %c0_i32_0, %c0_i32_1 : i32, i32, i32
  }
  func.func @transform_12(%arg0: i32) -> (i32, i32, i32) {
    %c0_i32 = arith.constant 0 : i32
    %c0_i32_0 = arith.constant 0 : i32
    %c0_i32_1 = arith.constant 0 : i32
    %c0_i32_2 = arith.constant 0 : i32
    return %c0_i32, %c0_i32_0, %c0_i32_1 : i32, i32, i32
  }
  func.func @transform_13(%arg0: i32) -> (i32, i32, i32) {
    %c0_i32 = arith.constant 0 : i32
    %c0_i32_0 = arith.constant 0 : i32
    %c0_i32_1 = arith.constant 0 : i32
    %c0_i32_2 = arith.constant 0 : i32
    return %c0_i32, %c0_i32_0, %c0_i32_1 : i32, i32, i32
  }
  func.func @transform_14(%arg0: i32) -> (i32, i32, i32) {
    %c0_i32 = arith.constant 0 : i32
    %c0_i32_0 = arith.constant 0 : i32
    %c0_i32_1 = arith.constant 0 : i32
    %c0_i32_2 = arith.constant 0 : i32
    return %c0_i32, %c0_i32_0, %c0_i32_1 : i32, i32, i32
  }
  func.func @transform_15(%arg0: i32) -> (i32, i32, i32) {
    %c0_i32 = arith.constant 0 : i32
    %c0_i32_0 = arith.constant 0 : i32
    %c0_i32_1 = arith.constant 0 : i32
    %c0_i32_2 = arith.constant 0 : i32
    return %c0_i32, %c0_i32_0, %c0_i32_1 : i32, i32, i32
  }
  func.func @transform_16(%arg0: i32) -> (i32, i32, i32) {
    %c0_i32 = arith.constant 0 : i32
    %c0_i32_0 = arith.constant 0 : i32
    %c0_i32_1 = arith.constant 0 : i32
    %c0_i32_2 = arith.constant 0 : i32
    return %c0_i32, %c0_i32_0, %c0_i32_1 : i32, i32, i32
  }
  func.func @transform_17(%arg0: i32) -> (i32, i32, i32) {
    %c0_i32 = arith.constant 0 : i32
    %c0_i32_0 = arith.constant 0 : i32
    %c0_i32_1 = arith.constant 0 : i32
    %c0_i32_2 = arith.constant 0 : i32
    return %c0_i32, %c0_i32_0, %c0_i32_1 : i32, i32, i32
  }
  func.func @transform_18(%arg0: i32) -> (i32, i32, i32) {
    %c0_i32 = arith.constant 0 : i32
    %c0_i32_0 = arith.constant 0 : i32
    %c0_i32_1 = arith.constant 0 : i32
    %c0_i32_2 = arith.constant 0 : i32
    return %c0_i32, %c0_i32_0, %c0_i32_1 : i32, i32, i32
  }
  func.func @transform_19(%arg0: i32) -> (i32, i32, i32) {
    %c0_i32 = arith.constant 0 : i32
    %c0_i32_0 = arith.constant 0 : i32
    %c0_i32_1 = arith.constant 0 : i32
    %c0_i32_2 = arith.constant 0 : i32
    return %c0_i32, %c0_i32_0, %c0_i32_1 : i32, i32, i32
  }
  func.func @transform_20(%arg0: i32) -> (i32, i32) {
    %c0_i32 = arith.constant 0 : i32
    %c0_i32_0 = arith.constant 0 : i32
    %c0_i32_1 = arith.constant 0 : i32
    return %c0_i32, %c0_i32_0 : i32, i32
  }
  func.func @transform_21(%arg0: i32) -> (i32, i32) {
    %c0_i32 = arith.constant 0 : i32
    %c0_i32_0 = arith.constant 0 : i32
    %c0_i32_1 = arith.constant 0 : i32
    return %c0_i32, %c0_i32_0 : i32, i32
  }
  func.func @transform_22(%arg0: i32) -> (i32, i32, i32) {
    %c0_i32 = arith.constant 0 : i32
    %c0_i32_0 = arith.constant 0 : i32
    %c0_i32_1 = arith.constant 0 : i32
    return %arg0, %c0_i32, %c0_i32_0 : i32, i32, i32
  }
  func.func @transform_23(%arg0: i32) -> (i32, i32, i32) {
    %c0_i32 = arith.constant 0 : i32
    %c0_i32_0 = arith.constant 0 : i32
    %c0_i32_1 = arith.constant 0 : i32
    return %arg0, %c0_i32, %c0_i32_0 : i32, i32, i32
  }
  func.func @transform_24(%arg0: i32) -> (i32, i32, i32) {
    %c0_i32 = arith.constant 0 : i32
    %c0_i32_0 = arith.constant 0 : i32
    %c0_i32_1 = arith.constant 0 : i32
    return %arg0, %c0_i32, %c0_i32_0 : i32, i32, i32
  }
}

</mosaic_0001>

<bundles_post_ra>
// kernel: decoder_forward.1
= control target key start
LH: loop header
LB: loop body
LE: loop exit
PB: predicated region body
PF: predicated region fallthrough
CT: control target
= control target key end

     0   :  { %s6397_s0 = inlined_call_operand.vmem [shape: f32[2,8,128], index: 0, kind: input, shape index: {}]   ;;  %s6398_s1 = inlined_call_operand.vmem [shape: f32[2,8,128], index: 1, kind: input, shape index: {}]   ;;  %s6399_s2 = inlined_call_operand.vmem [shape: f32[2,8,128], index: 2, kind: input, shape index: {}, may-alias: {2,23}]   ;;  %s6400_s3 = inlined_call_operand.hbm [shape: f32[8,8], index: 3, kind: input, shape index: {}]   ;;  %s6401_s4 = inlined_call_operand.hbm [shape: bf16[2,128,384], index: 4, kind: input, shape index: {}]   ;;  %s6402_s5 = inlined_call_operand.hbm [shape: f32[2,1,384], index: 5, kind: input, shape index: {}]   ;;  %s6403_s6 = inlined_call_operand.hbm [shape: bf16[2,128,128], index: 6, kind: input, shape index: {}]   ;;  %s6404_s7 = inlined_call_operand.hbm [shape: f32[2,1,128], index: 7, kind: input, shape index: {}]   ;;  %s6405_s8 = inlined_call_operand.hbm [shape: bf16[2,128,128], index: 8, kind: input, shape index: {}]   ;;  %s6406_s9 = inlined_call_operand.hbm [shape: f32[2,1,128], index: 9, kind: input, shape index: {}]   ;;  %s6407_s10 = inlined_call_operand.hbm [shape: bf16[2,128,256], index: 10, kind: input, shape index: {}]   ;;  %s6408_s11 = inlined_call_operand.vmem [shape: f32[2,1,256], index: 11, kind: input, shape index: {}]   ;;  %s6409_s12 = inlined_call_operand.hbm [shape: bf16[2,128,128], index: 12, kind: input, shape index: {}]   ;;  %s6410_s13 = inlined_call_operand.hbm [shape: f32[2,1,128], index: 13, kind: input, shape index: {}]   ;;  %s6411_s14 = inlined_call_operand.hbm [shape: bf16[2,128,256], index: 14, kind: input, shape index: {}]   ;;  %s6412_s15 = inlined_call_operand.hbm [shape: f32[2,1,256], index: 15, kind: input, shape index: {}]   ;;  %s6413_s16 = inlined_call_operand.hbm [shape: bf16[2,256,128], index: 16, kind: input, shape index: {}]   ;;  %s6414_s17 = inlined_call_operand.hbm [shape: f32[2,1,128], index: 17, kind: input, shape index: {}]   ;;  %s6415_s18 = inlined_call_operand.hbm [shape: bf16[2,128,128], index: 18, kind: input, shape index: {}]   ;;  %s6416_s19 = inlined_call_operand.hbm [shape: f32[2,1,128], index: 19, kind: input, shape index: {}]   ;;  %s6417_s20 = inlined_call_operand.hbm [shape: f32[1,128], index: 20, kind: input, shape index: {}]   ;;  %s6418_s21 = inlined_call_operand.hbm [shape: f32[1,128], index: 21, kind: input, shape index: {}]   ;;  %s6419_s22 = inlined_call_operand.hbm [shape: f32[2,8,128], index: 22, kind: output, shape index: {0}]   ;;  %s6420_s23 = inlined_call_operand.vmem [shape: f32[2,8,128], index: 23, kind: output, shape index: {1}, may-alias: {2,23}]   ;;  %s6421_s24 = inlined_call_operand.hbm [shape: f32[2,8,256], index: 24, kind: output, shape index: {2}]  }
   0x1   :  { %6443 = sst [smem:[#allocation54_spill]] %s6397_s0 }
   0x2   :  { %6444 = sst [smem:[#allocation55_spill]] %s6398_s1 }
   0x3   :  { %6445 = sst [smem:[#allocation56_spill]] %s6399_s2 }
   0x4   :  { %6446 = sst [smem:[#allocation57_spill]] %s6400_s3 }
   0x5   :  { %6447 = sst [smem:[#allocation58_spill]] %s6401_s4 }
   0x6   :  { %6448 = sst [smem:[#allocation59_spill]] %s6402_s5 }
   0x7   :  { %6449 = sst [smem:[#allocation60_spill]] %s6403_s6 }
   0x8   :  { %6450 = sst [smem:[#allocation61_spill]] %s6404_s7 }
   0x9   :  { %6451 = sst [smem:[#allocation62_spill]] %s6405_s8 }
   0xa   :  { %6452 = sst [smem:[#allocation63_spill]] %s6406_s9 }
   0xb   :  { %6453 = sst [smem:[#allocation64_spill]] %s6419_s22 }
   0xc   :  { %6454 = sst [smem:[#allocation65_spill]] %s6420_s23 }
   0xd   :  { %6455 = sst [smem:[#allocation66_spill]] %s6421_s24 }
   0xe   :  { %30 = vsyncpa [#allocation3], 0 }
   0xf   :  { %31 = vsyncpa [#allocation6], 0 }
  0x10   :  { %32 = vsyncpa [#allocation9], 0 }
  0x11   :  { %33 = vsyncpa [#allocation12], 0 }
  0x12   :  { %34 = vsyncpa [#allocation15], 0 }
  0x13   :  { %35 = vsyncpa [#allocation18], 0 }
  0x14   :  { %36 = vsyncpa [#allocation21], 0 }
  0x15   :  { %37 = vsyncpa [#allocation24], 0 }
  0x16   :  { %38 = vsyncpa [#allocation27], 0 }
  0x17   :  { %39 = vsyncpa [#allocation30], 0 }
  0x18   :  { %40 = vsyncpa [#allocation4], 0 }
  0x19   :  { %42 = vsyncpa [#allocation4 + $0x1], 0 }
  0x1a   :  { %43 = vsyncpa [#allocation33], 0 }
  0x1b   :  { %45 = vsyncpa [#allocation33 + $0x1], 0  ;;  %s6005_s5 = smov 0   ;;  %s6007_s26 = smov 0  }
  0x1c   :  { %s6009_s27 = smov 0   ;;  %s6011_s28 = smov 0  }
  0x1d LB: > { %6456 = sst [smem:[#allocation46_spill]] %s5835_s5  ;;  %s6026_s6 = sadd.s32 4294967295, %s5847_s28   ;;  %s5847_s28 = sphi %s6011_s28, %s6492_s28   ;;  %s5843_s27 = sphi %s6009_s27, %s6495_s27   ;;  %s5839_s26 = sphi %s6007_s26, %s6494_s26   ;;  %s5835_s5 = sphi %s6005_s5, %s6493_s5  }
  0x1e   : > { %6457 = sst [smem:[#allocation47_spill]] %s5839_s26  ;;  %s3797_s2 = sadd.s32 4294967294, %s5847_s28  }
  0x1f   : > { %6458 = sst [smem:[#allocation48_spill]] %s5843_s27  ;;  %s6030_s29 = sadd.s32 1, %s5847_s28  }
  0x20   : > { %6459 = sst [smem:[#allocation49_spill]] %s5847_s28  ;;  %s535_s0 = sadd.s32 1, %s5843_s27 }
  0x21   : > { %6460 = sst [smem:[#allocation50_spill]] %s6030_s29  ;;  %s532_s7 = ssub.s32 %s5847_s28, %s6030_s29 }
  0x22   : > { %p545_p0 = scmp.ne.s32.totalorder %s5843_s27, %s5839_s26  ;;  %p533_p1 = scmp.eq.s32.totalorder %s532_s7, 0 }
  0x23   : > { %p546_p2 = scmp.eq.s32.totalorder %s6026_s6, 1  ;;  %p551_p3 = scmp.ne.s32.totalorder %s5839_s26, %s5835_s5 }
  0x24   : > { %p552_p4 = scmp.eq.s32.totalorder %s3797_s2, 1  ;;  %p3798_p7 = scmp.ge.s32.totalorder %s5847_s28, 1 }
  0x25   : > { %s6041_s30 = scalar_select %p533_p1, %s5843_s27, %s535_s0  }
  0x26   : > { %p6043_p5 = por %p546_p2, %p545_p0  ;;  %p6047_p6 = por %p552_p4, %p551_p3 }
  0x27   : > { %6461 = sst [smem:[#allocation51_spill]] %s6041_s30  ;;  %p611_p8 = scmp.lt.s32.totalorder %s5847_s28, 3 }
  0x28   : > { %s6462_s3 = scalar_select %p6043_p5, 1, 0 }
  0x29   : > { %s6464_s25 = scalar_select %p6047_p6, 1, 0 }
  0x2a   : > { %6463 = sst [smem:[#allocation52_spill]] %s6462_s3  ;;  %p5040_p9 = scmp.eq.s32.totalorder %s6026_s6, 0 }
  0x2b   : > { %6465 = sst [smem:[#allocation53_spill]] %s6464_s25  ;;  %p6054_p10 = pnand %p3798_p7, %p611_p8 }
  0x2c   : > { %s6467_s2 = sld [smem:[#allocation58_spill]]  ;;  %s5849_s7 = smov [#allocation5]  }
  0x2d   : > { %p4978_p11 = pneg %p6054_p10  ;;  %s636_s30 = sshll.u32 %s5849_s7, 4  ;;  %s637_s30 = int_to_ptr.vmem [resolvable:$true] %s636_s30 }
  0x2e   : > { %s6469_s5 = sld [smem:[#allocation60_spill]]  ;;  %s5850_s4 = smov 192  }
  0x2f   : > { %p6065_p12 = pnand %p5040_p9, %p4978_p11  ;;  %s5851_s1 = smov 12  }
  0x30   : > { %s6433_s22 = smov 64   ;;  %s6437_s24 = smov 4  }
  0x31   : > { %s5855_s23 = smov [#allocation11]   ;;  %s749_s25 = sshll.u32 %s6410_s13, 4  ;;  %s750_s25 = int_to_ptr.hbm [resolvable:$true] %s749_s25 }
  0x32   : > { %s634_s0 = sshll.u32 %s6467_s2, 4  ;;  %s5852_s2 = smov [#allocation8]   ;;  %s635_s0 = int_to_ptr.hbm [resolvable:$true] %s634_s0 }
  0x33   : > { %4984 = dma.hbm_to_vmem [thread:$0]  (!%p6065_p12), %s635_s0, 6144, %s637_s30, [#allocation6], %s5850_s4, %s5850_s4, %s5851_s1  }
  0x34   : > { %s662_s28 = sshll.u32 %s6469_s5, 4  ;;  %s664_s7 = sshll.u32 %s5852_s2, 4  ;;  %s663_s28 = int_to_ptr.hbm [resolvable:$true] %s662_s28  ;;  %s665_s7 = int_to_ptr.vmem [resolvable:$true] %s664_s7 }
  0x35   : > { %4990 = dma.hbm_to_vmem [thread:$0]  (!%p6065_p12), %s663_s28, 2048, %s665_s7, [#allocation9], %s6433_s22, %s6433_s22, %s6437_s24  }
  0x36   : > { %s6470_s5 = sld [smem:[#allocation62_spill]]  ;;  %s692_s26 = sshll.u32 %s5855_s23, 4  ;;  %s693_s26 = int_to_ptr.vmem [resolvable:$true] %s692_s26 }
  0x37   : > { %s718_s4 = sshll.u32 %s6407_s10, 4  ;;  %s5856_s28 = smov [#allocation14]   ;;  %s719_s4 = int_to_ptr.hbm [resolvable:$true] %s718_s4 }
  0x38   : > { %s720_s1 = sshll.u32 %s5856_s28, 4  ;;  %s6435_s2 = smov 128   ;;  %s721_s1 = int_to_ptr.vmem [resolvable:$true] %s720_s1 }
  0x39   : > { %s6436_s7 = smov 8   ;;  %s777_s0 = sshll.u32 %s6412_s15, 4  ;;  %s778_s0 = int_to_ptr.hbm [resolvable:$true] %s777_s0 }
  0x3a   : > { %5002 = dma.hbm_to_vmem [thread:$0]  (!%p6065_p12), %s719_s4, 4096, %s721_s1, [#allocation15], %s6435_s2, %s6435_s2, %s6436_s7  }
  0x3b   : > { %s6439_s28 = smov 16   ;;  %s5862_s4 = smov [#allocation20]  }
  0x3c   : > { %s690_s3 = sshll.u32 %s6470_s5, 4  ;;  %s5859_s5 = smov [#allocation17]   ;;  %s691_s3 = int_to_ptr.hbm [resolvable:$true] %s690_s3 }
  0x3d   : > { %4996 = dma.hbm_to_vmem [thread:$0]  (!%p6065_p12), %s691_s3, 2048, %s693_s26, [#allocation12], %s6433_s22, %s6433_s22, %s6437_s24  }
  0x3e   : > { %s751_s26 = sshll.u32 %s5859_s5, 4  ;;  %s6441_s22 = smov 1   ;;  %s752_s26 = int_to_ptr.vmem [resolvable:$true] %s751_s26 }
  0x3f   : > { %5008 = dma.hbm_to_vmem [thread:$0]  (!%p6065_p12), %s750_s25, 32, %s752_s26, [#allocation18], %s6439_s28, %s6439_s28, %s6441_s22  }
  0x40   : > { %s779_s1 = sshll.u32 %s5862_s4, 4  ;;  %s5863_s23 = smov 32   ;;  %s780_s1 = int_to_ptr.vmem [resolvable:$true] %s779_s1 }
  0x41   : > { %s5864_s29 = smov 2   ;;  %s805_s30 = sshll.u32 %s6414_s17, 4  ;;  %s806_s30 = int_to_ptr.hbm [resolvable:$true] %s805_s30 }
  0x42   : > { %5014 = dma.hbm_to_vmem [thread:$0]  (!%p6065_p12), %s778_s0, 64, %s780_s1, [#allocation21], %s5863_s23, %s5863_s23, %s5864_s29  }
  0x43   : > { %s5865_s2 = smov [#allocation23]   ;;  %s833_s26 = sshll.u32 %s6416_s19, 4  ;;  %s834_s26 = int_to_ptr.hbm [resolvable:$true] %s833_s26 }
  0x44   : > { %s807_s7 = sshll.u32 %s5865_s2, 4  ;;  %s5866_s0 = smov [#allocation26]   ;;  %s808_s7 = int_to_ptr.vmem [resolvable:$true] %s807_s7 }
  0x45   : > { %5020 = dma.hbm_to_vmem [thread:$0]  (!%p6065_p12), %s806_s30, 32, %s808_s7, [#allocation24], %s6439_s28, %s6439_s28, %s6441_s22  }
  0x46   : > { %s835_s4 = sshll.u32 %s5866_s0, 4  ;;  %s6471_s29 = sld [smem:[#allocation57_spill]]  ;;  %s836_s4 = int_to_ptr.vmem [resolvable:$true] %s835_s4 }
  0x47   : > { %5026 = dma.hbm_to_vmem [thread:$0]  (!%p6065_p12), %s834_s26, 32, %s836_s4, [#allocation27], %s6439_s28, %s6439_s28, %s6441_s22  }
  0x48   : > { %s6472_s3 = sld [smem:[#allocation59_spill]]  ;;  %s5867_s7 = smov [#allocation2]  }
  0x49   : > { %s625_s30 = sshll.u32 %s5867_s7, 4  ;;  %s5868_s0 = smov [#allocation7]   ;;  %s626_s30 = int_to_ptr.vmem [resolvable:$true] %s625_s30 }
  0x4a   : > { %s650_s1 = sshll.u32 %s5868_s0, 4  ;;  %s5869_s23 = smov 48   ;;  %s651_s1 = int_to_ptr.vmem [resolvable:$true] %s650_s1 }
  0x4b   : > { %s6473_s28 = sld [smem:[#allocation61_spill]]  ;;  %s5871_s2 = smov [#allocation10]  }
  0x4c   : > { %s623_s5 = sshll.u32 %s6471_s29, 4  ;;  %s5870_s29 = smov 3   ;;  %s624_s5 = int_to_ptr.hbm [resolvable:$true] %s623_s5 }
  0x4d   : > { %4981 = dma.hbm_to_vmem [thread:$0]  (!%p6065_p12), %s624_s5, 128, %s626_s30, [#allocation3]  }
  0x4e   : > { %s648_s25 = sshll.u32 %s6472_s3, 4  ;;  %s678_s3 = sshll.u32 %s5871_s2, 4  ;;  %s649_s25 = int_to_ptr.hbm [resolvable:$true] %s648_s25  ;;  %s679_s3 = int_to_ptr.vmem [resolvable:$true] %s678_s3 }
  0x4f   : > { %4987 = dma.hbm_to_vmem [thread:$0]  (!%p6065_p12), %s649_s25, 96, %s651_s1, [#allocation6], %s5869_s23, %s5869_s23, %s5870_s29  }
  0x50   : > { %s6474_s9 = sld [smem:[#allocation63_spill]]  ;;  %s6475_s30 = smov 1  }
  0x51   : > { %s676_s24 = sshll.u32 %s6473_s28, 4  ;;  %s6476_s0 = smov 16   ;;  %s677_s24 = int_to_ptr.hbm [resolvable:$true] %s676_s24 }
  0x52   : > { %4993 = dma.hbm_to_vmem [thread:$0]  (!%p6065_p12), %s677_s24, 32, %s679_s3, [#allocation9], %s6476_s0, %s6476_s0, %s6475_s30  }
  0x53   : > { %s5872_s25 = smov [#allocation13]   ;;  %s735_s28 = sshll.u32 %s6409_s12, 4  ;;  %s736_s28 = int_to_ptr.hbm [resolvable:$true] %s735_s28 }
  0x54   : > { %s706_s1 = sshll.u32 %s5872_s25, 4  ;;  %s763_s4 = sshll.u32 %s6411_s14, 4  ;;  %s707_s1 = int_to_ptr.vmem [resolvable:$true] %s706_s1  ;;  %s764_s4 = int_to_ptr.hbm [resolvable:$true] %s763_s4 }
  0x55   : > { %s5873_s24 = smov [#allocation16]   ;;  %s6477_s3 = smov 4  }
  0x56   : > { %s704_s5 = sshll.u32 %s6474_s9, 4  ;;  %s737_s2 = sshll.u32 %s5873_s24, 4  ;;  %s705_s5 = int_to_ptr.hbm [resolvable:$true] %s704_s5  ;;  %s738_s2 = int_to_ptr.vmem [resolvable:$true] %s737_s2 }
  0x57   : > { %4999 = dma.hbm_to_vmem [thread:$0]  (!%p6065_p12), %s705_s5, 32, %s707_s1, [#allocation12], %s6476_s0, %s6476_s0, %s6475_s30  }
  0x58   : > { %s6478_s7 = smov 64   ;;  %s5874_s25 = smov [#allocation19]  }
  0x59   : > { %5005 = dma.hbm_to_vmem [thread:$0]  (!%p6065_p12), %s736_s28, 2048, %s738_s2, [#allocation15], %s6478_s7, %s6478_s7, %s6477_s3  }
  0x5a   : > { %s765_s23 = sshll.u32 %s5874_s25, 4  ;;  %s791_s5 = sshll.u32 %s6413_s16, 4  ;;  %s766_s23 = int_to_ptr.vmem [resolvable:$true] %s765_s23  ;;  %s792_s5 = int_to_ptr.hbm [resolvable:$true] %s791_s5 }
  0x5b   : > { %s6479_s30 = smov 8   ;;  %s6480_s0 = smov 128  }
  0x5c   : > { %5011 = dma.hbm_to_vmem [thread:$0]  (!%p6065_p12), %s764_s4, 4096, %s766_s23, [#allocation18], %s6480_s0, %s6480_s0, %s6479_s30  }
  0x5d   : > { %s819_s26 = sshll.u32 %s6415_s18, 4  ;;  %s5875_s24 = smov [#allocation22]   ;;  %s820_s26 = int_to_ptr.hbm [resolvable:$true] %s819_s26 }
  0x5e   : > { %s793_s28 = sshll.u32 %s5875_s24, 4  ;;  %s5876_s9 = smov [#allocation25]   ;;  %s794_s28 = int_to_ptr.vmem [resolvable:$true] %s793_s28 }
  0x5f   : > { %5017 = dma.hbm_to_vmem [thread:$0]  (!%p6065_p12), %s792_s5, 4096, %s794_s28, [#allocation21], %s6478_s7, %s6478_s7, %s6477_s3  }
  0x60   : > { %s821_s2 = sshll.u32 %s5876_s9, 4  ;;  %s848_s4 = sshll.u32 %s6417_s20, 4  ;;  %s822_s2 = int_to_ptr.vmem [resolvable:$true] %s821_s2  ;;  %s849_s4 = int_to_ptr.hbm [resolvable:$true] %s848_s4 }
  0x61   : > { %5023 = dma.hbm_to_vmem [thread:$0]  (!%p6065_p12), %s820_s26, 2048, %s822_s2, [#allocation24], %s6478_s7, %s6478_s7, %s6477_s3  }
  0x62   : > { %s860_s0 = sshll.u32 %s6418_s21, 4  ;;  %s5877_s1 = smov [#allocation28]   ;;  %s861_s0 = int_to_ptr.hbm [resolvable:$true] %s860_s0 }
  0x63   : > { %s850_s5 = sshll.u32 %s5877_s1, 4  ;;  %s5878_s22 = smov [#allocation29]   ;;  %s851_s5 = int_to_ptr.vmem [resolvable:$true] %s850_s5 }
  0x64   : > { %5029 = dma.hbm_to_vmem [thread:$0]  (!%p6065_p12), %s849_s4, 16, %s851_s5, [#allocation27]  }
  0x65   : > { %s862_s24 = sshll.u32 %s5878_s22, 4  ;;  %896 = sbr.rel (%p6054_p10) target bundleno = 4422 (0x1146), region = 108  ;;  %s863_s24 = int_to_ptr.vmem [resolvable:$true] %s862_s24 }
  0x66   : > { %5032 = dma.hbm_to_vmem [thread:$0]  (!%p6065_p12), %s861_s0, 16, %s863_s24, [#allocation30]  }
  0x6a   : > { %5786 = dma.done.wait (%p5040_p9), [#allocation3], 128  }
  0x6b   : > { %5788 = vsyncadd (%p5040_p9), [#allocation3], 4294967168 }
  0x6c   : > { %5790 = dma.done.wait (%p5040_p9), [#allocation6], 6240  }
  0x6d   : > { %5792 = vsyncadd (%p5040_p9), [#allocation6], 4294961056 }
  0x6e   : > { %5794 = dma.done.wait (%p5040_p9), [#allocation9], 2080  }
  0x6f   : > { %5796 = vsyncadd (%p5040_p9), [#allocation9], 4294965216 }
  0x70   : > { %5798 = dma.done.wait (%p5040_p9), [#allocation12], 2080  }
  0x71   : > { %5800 = vsyncadd (%p5040_p9), [#allocation12], 4294965216 }
  0x72   : > { %5802 = dma.done.wait (%p5040_p9), [#allocation15], 6144  }
  0x73   : > { %5804 = vsyncadd (%p5040_p9), [#allocation15], 4294961152 }
  0x74   : > { %5806 = dma.done.wait (%p5040_p9), [#allocation18], 4128  }
  0x75   : > { %5808 = vsyncadd (%p5040_p9), [#allocation18], 4294963168 }
  0x76   : > { %5810 = dma.done.wait (%p5040_p9), [#allocation21], 4160  }
  0x77   : > { %5812 = vsyncadd (%p5040_p9), [#allocation21], 4294963136 }
  0x78   : > { %5814 = dma.done.wait (%p5040_p9), [#allocation24], 2080  }
  0x79   : > { %5816 = vsyncadd (%p5040_p9), [#allocation24], 4294965216 }
  0x7a   : > { %5818 = dma.done.wait (%p5040_p9), [#allocation27], 48  }
  0x7b   : > { %5820 = vsyncadd (%p5040_p9), [#allocation27], 4294967248 }
  0x7c   : > { %5822 = dma.done.wait (%p5040_p9), [#allocation30], 16  }
  0x7d   : > { %5824 = vsyncadd (%p5040_p9), [#allocation30], 4294967280  ;;  %v3929_v0 = vld [vmem:[#allocation5 + $0xa8] sm:$0xf]  ;;  %v4715_v1 = vld [vmem:[#allocation5 + $0xb0] sm:$0xf0] }
  0x7e   : > { %v4714_v2 = vld [vmem:[#allocation5 + $0xac] sm:$0xf]  ;;  %v3930_v3 = vor.u32 %v4715_v1, %v3929_v0  ;;  %v3931_v4 = vld [vmem:[#allocation5 + $0xb4] sm:$0xf0]  ;;  %v3917_v5 = vld [vmem:[#allocation5 + $0x90] sm:$0xf] }
  0x7f   : > { %v4712_v6 = vld [vmem:[#allocation5 + $0x98] sm:$0xf0]  ;;  %v3934_v7 = vor.u32 %v4714_v2, %v3931_v4  ;;  %v4711_v8 = vld [vmem:[#allocation5 + $0x94] sm:$0xf]  ;;  %v3919_v9 = vld [vmem:[#allocation5 + $0x9c] sm:$0xf0] }
  0x80   : > { %1255 = vmatpush.bf16.msra.mxu0 %v3930_v3  ;;  %v3918_v10 = vor.u32 %v4712_v6, %v3917_v5  ;;  %v3922_v11 = vor.u32 %v4711_v8, %v3919_v9  ;;  %v3905_v12 = vld [vmem:[#allocation5 + $0x78] sm:$0xf]  ;;  %v4709_v13 = vld [vmem:[#allocation5 + $0x80] sm:$0xf0]  ;;  %v4708_v14 = vld [vmem:[#allocation5 + $0x7c] sm:$0xf] }
  0x81   : > { %1268 = vmatpush.bf16.msra.mxu1 %v3934_v7  ;;  %v3907_v15 = vld [vmem:[#allocation5 + $0x84] sm:$0xf0]  ;;  %v3906_v16 = vor.u32 %v4709_v13, %v3905_v12  ;;  %v3893_v18 = vld [vmem:[#allocation5 + $0x60] sm:$0xf]  ;;  %v4706_v19 = vld [vmem:[#allocation5 + $0x68] sm:$0xf0] }
  0x82   : > { %v3910_v17 = vor.u32 %v4708_v14, %v3907_v15  ;;  %v4705_v20 = vld [vmem:[#allocation5 + $0x64] sm:$0xf]  ;;  %v3895_v21 = vld [vmem:[#allocation5 + $0x6c] sm:$0xf0]  ;;  %v3881_v22 = vld [vmem:[#allocation5 + $0x48] sm:$0xf]  ;;  %v3894_v24 = vor.u32 %v4706_v19, %v3893_v18 }
  0x83   : > { %v4703_v23 = vld [vmem:[#allocation5 + $0x50] sm:$0xf0]  ;;  %p1064_p13 = scmp.lt.s32.totalorder %s6026_s6, 1  ;;  %v4702_v25 = vld [vmem:[#allocation5 + $0x4c] sm:$0xf]  ;;  %v3898_v26 = vor.u32 %v4705_v20, %v3895_v21  ;;  %s6481_s26 = sld [smem:[#allocation54_spill]] }
  0x84   : > { %1256 = vmatpush.bf16.msra.mxu0 %v3918_v10  ;;  %v3883_v27 = vld [vmem:[#allocation5 + $0x54] sm:$0xf0]  ;;  %v3882_v28 = vor.u32 %v4703_v23, %v3881_v22  ;;  %v3869_v30 = vld [vmem:[#allocation5 + $0x30] sm:$0xf]  ;;  %v4700_v31 = vld [vmem:[#allocation5 + $0x38] sm:$0xf0] }
  0x85   : > { %1269 = vmatpush.bf16.msra.mxu1 %v3922_v11  ;;  %v3886_v29 = vor.u32 %v4702_v25, %v3883_v27  ;;  %v4699_v32 = vld [vmem:[#allocation5 + $0x34] sm:$0xf]  ;;  %v3871_v33 = vld [vmem:[#allocation5 + $0x3c] sm:$0xf0]  ;;  %s1065_s27 = scalar_select %p1064_p13, %s6026_s6, 1  ;;  %v3870_v34 = vor.u32 %v4700_v31, %v3869_v30  ;;  %vm1309_vm0 = vcmask 64512  }
  0x86   : > { %v3874_v35 = vor.u32 %v4699_v32, %v3871_v33  ;;  %v3857_v36 = vld [vmem:[#allocation5 + $0x18] sm:$0xf]  ;;  %v4697_v37 = vld [vmem:[#allocation5 + $0x20] sm:$0xf0]  ;;  %v4696_v38 = vld [vmem:[#allocation5 + $0x1c] sm:$0xf] }
  0x87   : > { %v3859_v39 = vld [vmem:[#allocation5 + $0x24] sm:$0xf0]  ;;  %s6238_s8 = sshll.u32 %s1065_s27, 3  ;;  %v3858_v40 = vor.u32 %v4697_v37, %v3857_v36  ;;  %v3845_v42 = vld [vmem:[#allocation5] sm:$0xf]  ;;  %vm1324_vm1 = vcmask 1043456  }
  0x88   : > { %1257 = vmatpush.bf16.msra.mxu0 %v3906_v16  ;;  %v3862_v41 = vor.u32 %v4696_v38, %v3859_v39  ;;  %v4694_v43 = vld [vmem:[#allocation5 + $0x8] sm:$0xf0]  ;;  %v4693_v44 = vld [vmem:[#allocation5 + $0x4] sm:$0xf]  ;;  %v3847_v45 = vld [vmem:[#allocation5 + $0xc] sm:$0xf0] }
  0x89   : > { %1270 = vmatpush.bf16.msra.mxu1 %v3910_v17  ;;  %s1067_s28 = scalar_lea.vmem %s6481_s26, %s6238_s8  ;;  %v3846_v46 = vor.u32 %v4694_v43, %v3845_v42  ;;  %v3850_v48 = vor.u32 %v4693_v44, %v3847_v45  ;;  %v3937_v50 = vld [vmem:[#allocation5 + $0xb0] sm:$0xf]  ;;  %v4716_v51 = vld [vmem:[#allocation5 + $0xb8] sm:$0xf0]  ;;  %v3925_v52 = vld [vmem:[#allocation5 + $0x98] sm:$0xf] }
  0x8a   : > { %v6244_v47 = vld [vmem:[%s1067_s28] sm:$0xff]  ;;  %v3938_v53 = vor.u32 %v4716_v51, %v3937_v50  ;;  %v4713_v54 = vld [vmem:[#allocation5 + $0xa0] sm:$0xf0]  ;;  %v3913_v56 = vld [vmem:[#allocation5 + $0x80] sm:$0xf]  ;;  %s6482_s25 = sld [smem:[#allocation55_spill]] }
  0x8b   : > { %v1119_v49 = vpack.c.bf16 %v6244_v47, %v6244_v47  ;;  %v3926_v55 = vor.u32 %v4713_v54, %v3925_v52  ;;  %v4710_v57 = vld [vmem:[#allocation5 + $0x88] sm:$0xf0]  ;;  %v3901_v59 = vld [vmem:[#allocation5 + $0x68] sm:$0xf]  ;;  %v4707_v60 = vld [vmem:[#allocation5 + $0x70] sm:$0xf0] }
  0x8c   : > { %1258 = vmatpush.bf16.msra.mxu0 %v3894_v24  ;;  %1281 = vmatpush.bf16.msra.mxu2 %v3938_v53  ;;  %v3914_v58 = vor.u32 %v4710_v57, %v3913_v56  ;;  %v3902_v61 = vor.u32 %v4707_v60, %v3901_v59  ;;  %v3889_v62 = vld [vmem:[#allocation5 + $0x50] sm:$0xf]  ;;  %v4704_v63 = vld [vmem:[#allocation5 + $0x58] sm:$0xf0]  ;;  %v1118_v0 = vld [vmem:[#allocation7] sm:$0x7] }
  0x8d   : > { %1271 = vmatpush.bf16.msra.mxu1 %v3898_v26  ;;  %v3890_v1 = vor.u32 %v4704_v63, %v3889_v62  ;;  %v3877_v2 = vld [vmem:[#allocation5 + $0x38] sm:$0xf]  ;;  %v4701_v3 = vld [vmem:[#allocation5 + $0x40] sm:$0xf0]  ;;  %v1122_v4 = vperm.slane %v1118_v0, 1  ;;  %v1121_v7 = vperm.slane %v1118_v0, 0 }
  0x8e   : > { %v3878_v6 = vor.u32 %v4701_v3, %v3877_v2  ;;  %v3865_v9 = vld [vmem:[#allocation5 + $0x20] sm:$0xf]  ;;  %v4698_v10 = vld [vmem:[#allocation5 + $0x28] sm:$0xf0]  ;;  %v3853_v15 = vld [vmem:[#allocation5 + $0x8] sm:$0xf] }
  0x8f   : > { %v3866_v13 = vor.u32 %v4698_v10, %v3865_v9  ;;  %v4695_v16 = vld [vmem:[#allocation5 + $0x10] sm:$0xf0]  ;;  %v1123_v26 = vperm.slane %v1118_v0, 2  ;;  %v4724_v30 = vld [vmem:[#allocation8 + $0x38] sm:$0xff]  ;;  %v4721_v39 = vld [vmem:[#allocation8 + $0x20] sm:$0xff]  ;;  %s6483_s1 = sld [smem:[#allocation47_spill]] }
  0x90   : > { %1259 = vmatpush.bf16.msra.mxu0 %v3882_v28  ;;  %1282 = vmatpush.bf16.msra.mxu2 %v3926_v55  ;;  %v3854_v18 = vor.u32 %v4695_v16, %v3853_v15  ;;  %v4723_v31 = vld [vmem:[#allocation8 + $0x30] sm:$0xff]  ;;  %v4722_v32 = vld [vmem:[#allocation8 + $0x28] sm:$0xff]  ;;  %v4717_v43 = vld [vmem:[#allocation8] sm:$0xff]  ;;  %s1071_s29 = scalar_lea.vmem %s6482_s25, %s6238_s8  ;;  %s6484_s7 = sld [smem:[#allocation56_spill]] }
  0x91   : > { %1272 = vmatpush.bf16.msra.mxu1 %v3886_v29  ;;  %v4718_v42 = vld [vmem:[#allocation8 + $0x8] sm:$0xff]  ;;  %v4063_v60 = vld [vmem:[#allocation14 + $0x70] sm:$0xf]  ;;  %v4055_v62 = vld [vmem:[#allocation14 + $0x60] sm:$0xf]  ;;  %s6485_s2 = sld [smem:[#allocation65_spill]] }
  0x92   : > { %v4746_v0 = vld [vmem:[#allocation14 + $0x64] sm:$0xf0]  ;;  %v4047_v2 = vld [vmem:[#allocation14 + $0x50] sm:$0xf]  ;;  %v4744_v3 = vld [vmem:[#allocation14 + $0x54] sm:$0xf0] }
  0x93   : > { %v4730_v9 = vld [vmem:[#allocation11 + $0x28] sm:$0xff]  ;;  %v4023_v15 = vld [vmem:[#allocation14 + $0x20] sm:$0xf]  ;;  %s4901_s4 = sshll.u32 %s6026_s6, 4  ;;  %s6487_s0 = sld [smem:[#allocation66_spill]] }
  0x94   : > { %1260 = vmatpush.bf16.msra.mxu0 %v3870_v34  ;;  %1283 = vmatpush.bf16.msra.mxu2 %v3914_v58  ;;  %v4738_v16 = vld [vmem:[#allocation14 + $0x24] sm:$0xf0] }
  0x95   : > { %1273 = vmatpush.bf16.msra.mxu1 %v3874_v35  ;;  %s6329_s5 = sand.u32 1, %s6483_s1  }
  0x96   : > { %s3838_s22 = sshll.u32 %s6329_s5, 4  ;;  %s1075_s26 = scalar_lea.vmem %s6484_s7, %s6238_s8 }
  0x97   : > { %s6332_s24 = scalar_lea.vmem [#allocation32], %s3838_s22  ;;  %s3450_s3 = scalar_lea.sflag [#allocation33], %s6329_s5 }
  0x98   : > { %1261 = vmatpush.bf16.msra.mxu0 %v3858_v40  ;;  %1284 = vmatpush.bf16.msra.mxu2 %v3902_v61  ;;  %v4720_v40 = vld [vmem:[#allocation8 + $0x18] sm:$0xff]  ;;  %s3480_s22 = sshll.u32 %s6332_s24, 4  ;;  %s3481_s22 = int_to_ptr.vmem [resolvable:$true] %s3480_s22 }
  0x99   : > { %1274 = vmatpush.bf16.msra.mxu1 %v3862_v41  ;;  %v4719_v41 = vld [vmem:[#allocation8 + $0x10] sm:$0xff]  ;;  %v4748_v61 = vld [vmem:[#allocation14 + $0x74] sm:$0xf0]  ;;  %s3478_s1 = scalar_lea.hbm %s6487_s0, %s4901_s4  ;;  %s5733_s9 = scalar_lea.hbm %s6487_s0, 32 }
  0x9a   : > { %v4064_v63 = vor.u32 %v4748_v61, %v4063_v60  ;;  %v4737_v60 = vld [vmem:[#allocation14 + $0x24] sm:$0xf]  ;;  %v4025_v61 = vld [vmem:[#allocation14 + $0x28] sm:$0xf0]  ;;  %s3482_s27 = sshll.u32 %s3478_s1, 4  ;;  %s3483_s27 = int_to_ptr.hbm [resolvable:$true] %s3482_s27 }
  0x9b   : > { %s5727_s7 = sshra.s32 %s3483_s27, 4  ;;  %s5728_s7 = int_to_ptr.hbm [resolvable:$true] %s5727_s7 }
  0x9c   : > { %1262 = vmatpush.bf16.msra.mxu0 %v3846_v46  ;;  %1285 = vmatpush.bf16.msra.mxu2 %v3890_v1  ;;  %v4056_v1 = vor.u32 %v4746_v0, %v4055_v62  ;;  %v4028_v62 = vor.u32 %v4737_v60, %v4025_v61  ;;  %v4017_v0 = vld [vmem:[#allocation14 + $0x18] sm:$0xf0]  ;;  %v4769_v60 = vld [vmem:[#allocation19 + $0x64] sm:$0xf]  ;;  %v4155_v61 = vld [vmem:[#allocation19 + $0x68] sm:$0xf0]  ;;  %p5734_p3 = scmp.lt.s32.totalorder %s5728_s7, %s6487_s0 }
  0x9d   : > { %1275 = vmatpush.bf16.msra.mxu1 %v3850_v48 }
  0x9f   : > { %1263 = vmatmul.bf16.vlgmr.msra.gmra.mxu0 %v1119_v49 }
  0xa0   : > { %1276 = vmatmul.bf16.vlgmr.msra.gmra.mxu1 %v1119_v49  ;;  %1286 = vmatpush.bf16.msra.mxu2 %v3878_v6  ;;  %v4048_v6 = vor.u32 %v4744_v3, %v4047_v2 }
  0xa4   : > { %1287 = vmatpush.bf16.msra.mxu2 %v3866_v13  ;;  %v4729_v13 = vld [vmem:[#allocation11 + $0x20] sm:$0xff] }
  0xa8   : > { %1288 = vmatpush.bf16.msra.mxu2 %v3854_v18  ;;  %v4024_v18 = vor.u32 %v4738_v16, %v4023_v15 }
  0xab   : > { %1289 = vmatmul.bf16.vlgmr.msra.gmra.mxu2 %v1119_v49 }
  0xac   : > { %1648 = vmatpush.bf16.msrb.mxu2 %v4064_v63  ;;  %v4735_v63 = vld [vmem:[#allocation14 + $0x14] sm:$0xf] }
  0xad   : > { %v4020_v2 = vor.u32 %v4735_v63, %v4017_v0  ;;  %v4158_v63 = vor.u32 %v4769_v60, %v4155_v61  ;;  %v4145_v0 = vld [vmem:[#allocation19 + $0x50] sm:$0xf]  ;;  %v4773_v61 = vld [vmem:[#allocation22] sm:$0xff] }
  0xae   : > { %v4782_v60 = vld [vmem:[#allocation22 + $0x48] sm:$0xff] }
  0xb0   : > { %1649 = vmatpush.bf16.msrb.mxu2 %v4056_v1  ;;  %v5141_v1 = vld [vmem:[#allocation13] ss:$0 sm:$0xff] }
  0xb4   : > { %1650 = vmatpush.bf16.msrb.mxu2 %v4048_v6 }
 0x11c   : > { %v1264_v5 = vpop.f32.mrf.mxu0 }
 0x11d   : > { %v1277_v8 = vpop.f32.mrf.mxu1  ;;  %v1265_v14 = vadd.f32 %v1264_v5, %v1121_v7  ;;  %v4731_v5 = vld [vmem:[#allocation11 + $0x30] sm:$0xff]  ;;  %v4039_v7 = vld [vmem:[#allocation14 + $0x40] sm:$0xf] }
 0x11e   : > { %v1278_v11 = vadd.f32 %v1277_v8, %v1122_v4  ;;  %v4732_v4 = vld [vmem:[#allocation11 + $0x38] sm:$0xff]  ;;  %v4742_v8 = vld [vmem:[#allocation14 + $0x44] sm:$0xf0] }
 0x11f   : > { %v1294_v19 = vpack.c.bf16 %v1265_v14, %v1265_v14  ;;  %1533 = vmatpush.bf16.msrb.mxu1 %v4732_v4  ;;  %v4040_v10 = vor.u32 %v4742_v8, %v4039_v7  ;;  %v4733_v4 = vld [vmem:[#allocation14 + $0x4] sm:$0xf] }
 0x120   : > { %v1295_v12 = vpack.c.bf16 %v1278_v11, %v1278_v11  ;;  %v4031_v11 = vld [vmem:[#allocation14 + $0x30] sm:$0xf] }
 0x121   : > { %1651 = vmatpush.bf16.msrb.mxu2 %v4040_v10 }
 0x122   : > { %1303 = vmatpush.bf16.xpose.msra.mxu3 %v1295_v12  ;;  %v4740_v12 = vld [vmem:[#allocation14 + $0x34] sm:$0xf0] }
 0x123   : > { %1534 = vmatpush.bf16.msrb.mxu1 %v4731_v5  ;;  %v4032_v14 = vor.u32 %v4740_v12, %v4031_v11  ;;  %v4009_v5 = vld [vmem:[#allocation14 + $0x8] sm:$0xf0] }
 0x124   : > { %v1266_v17 = vpop.f32.mrf.mxu0  ;;  %v4012_v8 = vor.u32 %v4733_v4, %v4009_v5 }
 0x125   : > { %v1279_v20 = vpop.f32.mrf.mxu1  ;;  %v4728_v17 = vld [vmem:[#allocation11 + $0x18] sm:$0xff]  ;;  %1652 = vmatpush.bf16.msrb.mxu2 %v4032_v14 }
 0x126   : > { %v4736_v20 = vld [vmem:[#allocation14 + $0x14] sm:$0xf0] }
 0x127   : > { %1535 = vmatpush.bf16.msrb.mxu1 %v4730_v9 }
 0x129   : > { %1304 = vmatmul.bf16.vlgmr.msra.gmra.mxu3 %v1294_v19  ;;  %v4015_v19 = vld [vmem:[#allocation14 + $0x10] sm:$0xf]  ;;  %1653 = vmatpush.bf16.msrb.mxu2 %v4024_v18 }
 0x12b   : > { %1536 = vmatpush.bf16.msrb.mxu1 %v4729_v13 }
 0x12e   : > { %v1290_v23 = vpop.f32.mrf.mxu2 }
 0x12f   : > { %v1291_v27 = vadd.f32 %v1290_v23, %v1123_v26  ;;  %1537 = vmatpush.bf16.msrb.mxu1 %v4728_v17  ;;  %v4016_v23 = vor.u32 %v4736_v20, %v4015_v19  ;;  %v4734_v26 = vld [vmem:[#allocation14 + $0x4] sm:$0xf0]  ;;  %v4756_v19 = vld [vmem:[#allocation16 + $0x38] sm:$0xff]  ;;  %v4755_v20 = vld [vmem:[#allocation16 + $0x30] sm:$0xff] }
 0x131   : > { %v1320_v28 = vpack.c.bf16 %v1291_v27, %v1291_v27  ;;  %1654 = vmatpush.bf16.msrb.mxu2 %v4016_v23 }
 0x133   : > { %v1326_v29 = vsel %vm1324_vm1, %v1320_v28, 0  ;;  %v4726_v28 = vld [vmem:[#allocation11 + $0x8] sm:$0xff] }
 0x134   : > { %1335 = vmatpush.bf16.msrb.mxu3 %v1326_v29 }
 0x136   : > { %v1292_v25 = vpop.f32.mrf.mxu2 }
 0x137   : > { %v4007_v25 = vld [vmem:[#allocation14] sm:$0xf] }
 0x138   : > { %1426 = vmatpush.bf16.msra.mxu3 %v4724_v30  ;;  %v6257_v30 = vld [vmem:[#allocation2] sm:$0xff] }
 0x13c   : > { %1427 = vmatpush.bf16.msra.mxu3 %v4723_v31  ;;  %v4008_v31 = vor.u32 %v4734_v26, %v4007_v25 }
 0x13e   : > { %1655 = vmatpush.bf16.msrb.mxu2 %v4008_v31  ;;  %v4751_v31 = vld [vmem:[#allocation16 + $0x10] sm:$0xff] }
 0x140   : > { %1428 = vmatpush.bf16.msra.mxu3 %v4722_v32  ;;  %v1082_v32 = vld [vmem:[%s1071_s29] sm:$0xff]  ;;  %s1079_s29 = scalar_lea.vmem %s6485_s2, %s6238_s8 }
 0x142   : > { %1804 = vmatpush.bf16.msra.mxu2 %v4756_v19  ;;  %v4762_v19 = vld [vmem:[#allocation19 + $0x24] sm:$0xf0] }
 0x144   : > { %1429 = vmatpush.bf16.msra.mxu3 %v4721_v39 }
 0x146   : > { %1805 = vmatpush.bf16.msra.mxu2 %v4755_v20  ;;  %v4761_v20 = vld [vmem:[#allocation19 + $0x24] sm:$0xf] }
 0x148   : > { %1430 = vmatpush.bf16.msra.mxu3 %v4720_v40 }
 0x14c   : > { %1431 = vmatpush.bf16.msra.mxu3 %v4719_v41 }
 0x150   : > { %1432 = vmatpush.bf16.msra.mxu3 %v4718_v42 }
 0x154   : > { %1433 = vmatpush.bf16.msra.mxu3 %v4717_v43 }
 0x1ac   : > { %v1305_v21 = vpop.f32.mrf.mxu3 }
 0x1ad   : > { %v1310_v22 = vsel %vm1309_vm0, %v1305_v21, -inf }
 0x1ae   : > { %1311 = vmax.xlane.f32.xlu0 %v1310_v22  ;;  %v4727_v22 = vld [vmem:[#allocation11 + $0x10] sm:$0xff] }
 0x1af   : > { %1538 = vmatpush.bf16.msrb.mxu1 %v4727_v22 }
 0x1b3   : > { %1539 = vmatpush.bf16.msrb.mxu1 %v4726_v28  ;;  %v4753_v28 = vld [vmem:[#allocation16 + $0x20] sm:$0xff] }
 0x1b4   : > { %v1307_v24 = vpop.f32.mrf.mxu3 }
 0x221   : > { %v1312_v33 = vpop.xlane.xlu0 %1311 }
 0x222   : > { %v1313_v34 = vsub.f32 %v1305_v21, %v1312_v33  ;;  %v5140_v21 = vld [vmem:[#allocation10] ss:$0 sm:$0xff]  ;;  %v6261_v33 = vpack.c.bf16 %v1082_v32, %v1082_v32  ;;  %v4750_v32 = vld [vmem:[#allocation16 + $0x8] sm:$0xff] }
 0x224   : > { %v1314_v35 = vmul.f32 1.442695, %v1313_v34  ;;  %1656 = vmatmul.bf16.vlgmr.msrb.gmra.mxu2 %v6261_v33 }
 0x226   : > { %5152 = vpow2.f32 %v1314_v35  ;;  %v4725_v35 = vld [vmem:[#allocation11] sm:$0xff] }
 0x227   : > { %1540 = vmatpush.bf16.msrb.mxu1 %v4725_v35 }
 0x22c   : > { %v5153_v36 = vpop.eup %5152 }
 0x22d   : > { %v1316_v37 = vsel %vm1309_vm0, %v5153_v36, 0.0  ;;  %v1319_v38 = vpack.c.bf16 %v5153_v36, %v5153_v36 }
 0x22e   : > { %1317 = vadd.xlane.f32.xlu0 %v1316_v37 }
 0x22f   : > { %3939 = vmatmul.msk.bf16.vlgmr.msrb.gmra.mxu3 %vm1309_vm0, %v1319_v38  ;;  %v1562_v38 = vld [vmem:[%s6408_s11] sm:$0x3] }
 0x230   : > { %v1564_v39 = vperm.slane %v1562_v38, 0  ;;  %v1565_v14 = vperm.slane %v1562_v38, 1 }
 0x2a1   : > { %v1318_v44 = vpop.xlane.xlu0 %1317 }
 0x2a2   : > { %5154 = vrcp.f32 %v1318_v44  ;;  %v1352_v49 = vand.u32 2147483648, %v1318_v44  ;;  %v1350_v51 = vand.u32 2147483647, %v1318_v44  ;;  %vm1346_vm3 = vweird.f32 %v1318_v44 }
 0x2a4   : > { %v1353_v53 = vor.u32 1.1754944e-38, %v1352_v49  ;;  %vm1351_vm5 = vcmp.eq.f32.partialorder %v1350_v51, 8.507059e+37  ;;  %v4057_v49 = vld [vmem:[#allocation14 + $0x68] sm:$0xf0]  ;;  %v4743_v51 = vld [vmem:[#allocation14 + $0x54] sm:$0xf] }
 0x2a7   : > { %v1657_v40 = vpop.f32.mrf.mxu2 }
 0x2a8   : > { %v5155_v45 = vpop.eup %5154  ;;  %v1658_v41 = vadd.f32 %v1657_v40, %v1564_v39 }
 0x2a9   : > { %v1342_v46 = vmul.f32 %v5155_v45, %v1318_v44  ;;  %vm1347_vm2 = vweird.f32 %v5155_v45  ;;  %v4747_v44 = vld [vmem:[#allocation14 + $0x74] sm:$0xf] }
 0x2aa   : > { %vm1348_vm4 = vmor %vm1346_vm3, %vm1347_vm2  ;;  %v1675_v42 = vpack.c.bf16 %v1658_v41, %v1658_v41 }
 0x2ab   : > { %v1343_v48 = vsub.f32 1.0, %v1342_v46  ;;  %v4745_v46 = vld [vmem:[#allocation14 + $0x64] sm:$0xf] }
 0x2ac   : > { %1683 = vmatpush.bf16.xpose.msrb.mxu3 %v1675_v42 }
 0x2ad   : > { %v1344_v50 = vmul.f32 %v5155_v45, %v1343_v48 }
 0x2af   : > { %v1345_v52 = vadd.f32 %v5155_v45, %v1344_v50  ;;  %v1659_v43 = vpop.f32.mrf.mxu2  ;;  %v4060_v50 = vor.u32 %v4745_v46, %v4057_v49 }
 0x2b1   : > { %v1349_v54 = vsel %vm1348_vm4, %v5155_v45, %v1345_v52  ;;  %v4065_v45 = vld [vmem:[#allocation14 + $0x78] sm:$0xf0] }
 0x2b2   : > { %v1337_v55 = vpop.f32.mrf.mxu3  ;;  %v1354_v56 = vsel %vm1351_vm5, %v1353_v53, %v1349_v54  ;;  %v4068_v48 = vor.u32 %v4747_v44, %v4065_v45  ;;  %v4049_v52 = vld [vmem:[#allocation14 + $0x58] sm:$0xf0]  ;;  %v4741_v54 = vld [vmem:[#allocation14 + $0x44] sm:$0xf] }
 0x2b3   : > { %v1356_v57 = vmul.f32 %v1354_v56, %v1337_v55  ;;  %v4052_v53 = vor.u32 %v4743_v51, %v4049_v52  ;;  %v4041_v55 = vld [vmem:[#allocation14 + $0x48] sm:$0xf0]  ;;  %v4161_v52 = vld [vmem:[#allocation19 + $0x70] sm:$0xf] }
 0x2b4   : > { %v4044_v56 = vor.u32 %v4741_v54, %v4041_v55  ;;  %v4771_v54 = vld [vmem:[#allocation19 + $0x74] sm:$0xf] }
 0x2b5   : > { %v1374_v58 = vpack.c.bf16 %v1356_v57, %v1356_v57  ;;  %v4739_v57 = vld [vmem:[#allocation14 + $0x34] sm:$0xf] }
 0x2b7   : > { %1434 = vmatmul.bf16.vlgmr.msra.gmra.mxu3 %v1374_v58  ;;  %v4033_v58 = vld [vmem:[#allocation14 + $0x38] sm:$0xf0] }
 0x2ba   : > { %v1339_v59 = vpop.f32.mrf.mxu3 }
 0x2bb   : > { %v4036_v59 = vor.u32 %v4739_v57, %v4033_v58  ;;  %v4153_v57 = vld [vmem:[#allocation19 + $0x60] sm:$0xf]  ;;  %v4770_v58 = vld [vmem:[#allocation19 + $0x64] sm:$0xf0] }
 0x33a   : > { %v1435_v24 = vpop.f32.mrf.mxu3 }
 0x33b   : > { %v1436_v27 = vadd.f32 %v5140_v21, %v1435_v24  ;;  %v4754_v21 = vld [vmem:[#allocation16 + $0x28] sm:$0xff] }
 0x33c   : > { %1806 = vmatpush.bf16.msra.mxu2 %v4754_v21  ;;  %v4123_v21 = vld [vmem:[#allocation19 + $0x28] sm:$0xf0] }
 0x33d   : > { %v1439_v29 = vadd.f32 %v1436_v27, %v6244_v47 }
 0x33f   : > { %1458 = vmatpush.msrb.mxu0 %v1439_v29 }
 0x340   : > { %3972 = vmatmul.msk.f32.vlgmr.msrb.gmra.mxu0 %vm1309_vm0, %v6257_v30  ;;  %1807 = vmatpush.bf16.msra.mxu2 %v4753_v28  ;;  %v4115_v28 = vld [vmem:[#allocation19 + $0x18] sm:$0xf0] }
 0x341   : > { %1661 = vmatpush.bf16.msra.mxu0 %v4068_v48 }
 0x342   : > { %v1437_v34 = vpop.f32.mrf.mxu3 }
 0x343   : > { %v4749_v34 = vld [vmem:[#allocation16] sm:$0xff] }
 0x345   : > { %1662 = vmatpush.bf16.msra.mxu0 %v4060_v50 }
 0x349   : > { %1663 = vmatpush.bf16.msra.mxu0 %v4052_v53  ;;  %v4772_v53 = vld [vmem:[#allocation19 + $0x74] sm:$0xf0] }
 0x34a   : > { %v4162_v55 = vor.u32 %v4772_v53, %v4161_v52  ;;  %v4776_v52 = vld [vmem:[#allocation22 + $0x18] sm:$0xff] }
 0x34b   : > { %v4784_v53 = vld [vmem:[#allocation22 + $0x58] sm:$0xff] }
 0x34d   : > { %1664 = vmatpush.bf16.msra.mxu0 %v4044_v56  ;;  %v4163_v56 = vld [vmem:[#allocation19 + $0x78] sm:$0xf0] }
 0x351   : > { %1665 = vmatpush.bf16.msra.mxu0 %v4036_v59  ;;  %v4166_v59 = vor.u32 %v4771_v54, %v4163_v56  ;;  %v4775_v54 = vld [vmem:[#allocation22 + $0x10] sm:$0xff] }
 0x355   : > { %1666 = vmatpush.bf16.msra.mxu0 %v4028_v62  ;;  %v4154_v62 = vor.u32 %v4770_v58, %v4153_v57 }
 0x359   : > { %1667 = vmatpush.bf16.msra.mxu0 %v4020_v2  ;;  %v4767_v2 = vld [vmem:[#allocation19 + $0x54] sm:$0xf] }
 0x35d   : > { %1668 = vmatpush.bf16.msra.mxu0 %v4012_v8  ;;  %v4765_v8 = vld [vmem:[#allocation19 + $0x44] sm:$0xf] }
 0x360   : > { %1669 = vmatmul.bf16.vlgmr.msra.gmra.mxu0 %v6261_v33 }
 0x361   : > { %1942 = vmatpush.bf16.msrb.mxu0 %v4162_v55  ;;  %v4783_v55 = vld [vmem:[#allocation22 + $0x50] sm:$0xff] }
 0x365   : > { %1943 = vmatpush.bf16.msrb.mxu0 %v4154_v62  ;;  %v4781_v62 = vld [vmem:[#allocation22 + $0x40] sm:$0xff] }
 0x3bd   : > { %v6264_v36 = vpop.f32.mrf.mxu0 }
 0x3be   : > { %v6267_v47 = vsub.f32 %v1439_v29, %v6264_v36  ;;  %v4752_v29 = vld [vmem:[#allocation16 + $0x18] sm:$0xff] }
 0x3bf   : > { %1808 = vmatpush.bf16.msra.mxu2 %v4752_v29 }
 0x3c0   : > { %v1481_v37 = vpack.c.bf16 %v6267_v47, %v6267_v47 }
 0x3c2   : > { %1541 = vmatmul.bf16.vlgmr.msrb.gmra.mxu1 %v1481_v37 }
 0x3c3   : > { %1809 = vmatpush.bf16.msra.mxu2 %v4751_v31 }
 0x3c7   : > { %1810 = vmatpush.bf16.msra.mxu2 %v4750_v32 }
 0x3cb   : > { %1811 = vmatpush.bf16.msra.mxu2 %v4749_v34 }
 0x3dd   : > { %v1670_v13 = vpop.f32.mrf.mxu0 }
 0x3de   : > { %v1671_v15 = vadd.f32 %v1670_v13, %v1565_v14  ;;  %v4764_v13 = vld [vmem:[#allocation19 + $0x34] sm:$0xf0]  ;;  %v4763_v14 = vld [vmem:[#allocation19 + $0x34] sm:$0xf] }
 0x3e0   : > { %v1699_v16 = vpack.c.bf16 %v1671_v15, %v1671_v15  ;;  %v4131_v15 = vld [vmem:[#allocation19 + $0x38] sm:$0xf0] }
 0x3e2   : > { %v1704_v17 = vsel %vm1324_vm1, %v1699_v16, 0 }
 0x3e3   : > { %1713 = vmatpush.bf16.msra.mxu1 %v1704_v17  ;;  %v4134_v17 = vor.u32 %v4763_v14, %v4131_v15  ;;  %v4819_v14 = vld [vmem:[#allocation5 + $0x170] sm:$0xf0] }
 0x3e5   : > { %v1672_v18 = vpop.f32.mrf.mxu0 }
 0x3e6   : > { %v4121_v18 = vld [vmem:[#allocation19 + $0x20] sm:$0xf] }
 0x3e7   : > { %1955 = vmatpush.bf16.msrb.mxu1 %v4166_v59  ;;  %v4774_v59 = vld [vmem:[#allocation22 + $0x8] sm:$0xff] }
 0x3eb   : > { %1956 = vmatpush.bf16.msrb.mxu1 %v4158_v63  ;;  %v1855_v63 = vld [vmem:[#allocation20] sm:$0x3] }
 0x43f   : > { %v1542_v3 = vpop.f32.mrf.mxu1 }
 0x440   : > { %v1543_v6 = vadd.f32 %v5141_v1, %v1542_v3  ;;  %v4768_v1 = vld [vmem:[#allocation19 + $0x54] sm:$0xf0]  ;;  %v4147_v3 = vld [vmem:[#allocation19 + $0x58] sm:$0xf0] }
 0x441   : > { %v4146_v4 = vor.u32 %v4768_v1, %v4145_v0  ;;  %v4150_v5 = vor.u32 %v4767_v2, %v4147_v3  ;;  %v1858_v0 = vperm.slane %v1855_v63, 0  ;;  %v1859_v1 = vperm.slane %v1855_v63, 1 }
 0x442   : > { %v1674_v7 = vpack.c.bf16 %v1543_v6, %v1543_v6  ;;  %v4137_v6 = vld [vmem:[#allocation19 + $0x40] sm:$0xf] }
 0x443   : > { %1944 = vmatpush.bf16.msrb.mxu0 %v4146_v4  ;;  %1957 = vmatpush.bf16.msrb.mxu1 %v4150_v5 }
 0x444   : > { %1684 = vmatmul.bf16.vlgmr.msrb.gmra.mxu3 %v1674_v7  ;;  %v4766_v7 = vld [vmem:[#allocation19 + $0x44] sm:$0xf0] }
 0x447   : > { %v1544_v9 = vpop.f32.mrf.mxu1 }
 0x448   : > { %v4139_v9 = vld [vmem:[#allocation19 + $0x48] sm:$0xf0] }
 0x4c7   : > { %v1685_v10 = vpop.f32.mrf.mxu3 }
 0x4c8   : > { %v1689_v11 = vsel %vm1309_vm0, %v1685_v10, -inf }
 0x4c9   : > { %1690 = vmax.xlane.f32.xlu1 %v1689_v11  ;;  %v4142_v11 = vor.u32 %v4765_v8, %v4139_v9 }
 0x4cb   : > { %1958 = vmatpush.bf16.msrb.mxu1 %v4142_v11 }
 0x4cf   : > { %v1687_v12 = vpop.f32.mrf.mxu3  ;;  %1959 = vmatpush.bf16.msrb.mxu1 %v4134_v17  ;;  %v4820_v17 = vld [vmem:[#allocation5 + $0x178] sm:$0xf0] }
 0x4d0   : > { %v4129_v12 = vld [vmem:[#allocation19 + $0x30] sm:$0xf] }
 0x4d1   : > { %v4130_v16 = vor.u32 %v4764_v13, %v4129_v12  ;;  %v4796_v12 = vld [vmem:[#allocation25 + $0x38] sm:$0xff] }
 0x4d2   : > { %v4350_v13 = vld [vmem:[#allocation5 + $0x168] sm:$0xf] }
 0x4d3   : > { %v4351_v15 = vor.u32 %v4819_v14, %v4350_v13 }
 0x53c   : > { %v1691_v22 = vpop.xlane.xlu1 %1690 }
 0x53d   : > { %v1692_v23 = vsub.f32 %v1685_v10, %v1691_v22  ;;  %v4138_v10 = vor.u32 %v4766_v7, %v4137_v6  ;;  %v4122_v22 = vor.u32 %v4762_v19, %v4121_v18  ;;  %v4795_v18 = vld [vmem:[#allocation25 + $0x30] sm:$0xff]  ;;  %v4338_v19 = vld [vmem:[#allocation5 + $0x150] sm:$0xf] }
 0x53f   : > { %v1693_v24 = vmul.f32 1.442695, %v1692_v23  ;;  %1945 = vmatpush.bf16.msrb.mxu0 %v4138_v10  ;;  %v4126_v23 = vor.u32 %v4761_v20, %v4123_v21  ;;  %v4816_v21 = vld [vmem:[#allocation5 + $0x158] sm:$0xf0] }
 0x541   : > { %5156 = vpow2.f32 %v1693_v24  ;;  %v4113_v24 = vld [vmem:[#allocation19 + $0x10] sm:$0xf]  ;;  %1960 = vmatpush.bf16.msrb.mxu1 %v4126_v23  ;;  %v4346_v23 = vld [vmem:[#allocation5 + $0x158] sm:$0xf] }
 0x543   : > { %1946 = vmatpush.bf16.msrb.mxu0 %v4130_v16  ;;  %v4358_v16 = vld [vmem:[#allocation5 + $0x170] sm:$0xf] }
 0x544   : > { %v4359_v20 = vor.u32 %v4820_v17, %v4358_v16  ;;  %v4812_v16 = vld [vmem:[#allocation5 + $0x13c] sm:$0xf]  ;;  %v4328_v17 = vld [vmem:[#allocation5 + $0x144] sm:$0xf0] }
 0x547   : > { %v5157_v25 = vpop.eup %5156  ;;  %1947 = vmatpush.bf16.msrb.mxu0 %v4122_v22  ;;  %v4339_v22 = vor.u32 %v4816_v21, %v4338_v19  ;;  %v4809_v19 = vld [vmem:[#allocation5 + $0x124] sm:$0xf]  ;;  %v4806_v21 = vld [vmem:[#allocation5 + $0x10c] sm:$0xf] }
 0x548   : > { %v1698_v26 = vpack.c.bf16 %v5157_v25, %v5157_v25  ;;  %v1695_v27 = vsel %vm1309_vm0, %v5157_v25, 0.0  ;;  %v4760_v25 = vld [vmem:[#allocation19 + $0x14] sm:$0xf0] }
 0x549   : > { %1696 = vadd.xlane.f32.xlu1 %v1695_v27  ;;  %v4759_v27 = vld [vmem:[#allocation19 + $0x14] sm:$0xf]  ;;  %v4114_v29 = vor.u32 %v4760_v25, %v4113_v24  ;;  %v4817_v24 = vld [vmem:[#allocation5 + $0x160] sm:$0xf0] }
 0x54a   : > { %4069 = vmatmul.msk.bf16.vlgmr.msra.gmra.mxu1 %vm1309_vm0, %v1698_v26  ;;  %v5142_v26 = vld [vmem:[#allocation17] ss:$0 sm:$0xff]  ;;  %v4118_v32 = vor.u32 %v4759_v27, %v4115_v28  ;;  %v4347_v25 = vor.u32 %v4817_v24, %v4346_v23  ;;  %v4326_v27 = vld [vmem:[#allocation5 + $0x138] sm:$0xf]  ;;  %v4813_v28 = vld [vmem:[#allocation5 + $0x140] sm:$0xf0] }
 0x54b   : > { %1948 = vmatpush.bf16.msrb.mxu0 %v4114_v29  ;;  %v4327_v29 = vor.u32 %v4813_v28, %v4326_v27  ;;  %v4803_v24 = vld [vmem:[#allocation5 + $0xf4] sm:$0xf]  ;;  %v4800_v27 = vld [vmem:[#allocation5 + $0xdc] sm:$0xf]  ;;  %v4280_v28 = vld [vmem:[#allocation5 + $0xe4] sm:$0xf0] }
 0x54c   : > { %1961 = vmatpush.bf16.msrb.mxu1 %v4118_v32  ;;  %v4814_v32 = vld [vmem:[#allocation5 + $0x148] sm:$0xf0] }
 0x5bc   : > { %v1697_v35 = vpop.xlane.xlu1 %1696 }
 0x5bd   : > { %5158 = vrcp.f32 %v1697_v35  ;;  %v1730_v41 = vand.u32 2147483648, %v1697_v35  ;;  %v1728_v43 = vand.u32 2147483647, %v1697_v35  ;;  %vm1724_vm7 = vweird.f32 %v1697_v35 }
 0x5bf   : > { %v1731_v45 = vor.u32 1.1754944e-38, %v1730_v41  ;;  %vm1729_vm9 = vcmp.eq.f32.partialorder %v1728_v43, 8.507059e+37 }
 0x5c3   : > { %v5159_v37 = vpop.eup %5158 }
 0x5c4   : > { %v1720_v38 = vmul.f32 %v5159_v37, %v1697_v35  ;;  %vm1725_vm6 = vweird.f32 %v5159_v37 }
 0x5c5   : > { %vm1726_vm8 = vmor %vm1724_vm7, %vm1725_vm6 }
 0x5c6   : > { %v1721_v39 = vsub.f32 1.0, %v1720_v38  ;;  %v4105_v38 = vld [vmem:[#allocation19] sm:$0xf] }
 0x5c7   : > { %v1715_v40 = vpop.f32.mrf.mxu1 }
 0x5c8   : > { %v1722_v42 = vmul.f32 %v5159_v37, %v1721_v39  ;;  %v4758_v39 = vld [vmem:[#allocation19 + $0x4] sm:$0xf0] }
 0x5c9   : > { %v4106_v41 = vor.u32 %v4758_v39, %v4105_v38  ;;  %v4810_v38 = vld [vmem:[#allocation5 + $0x128] sm:$0xf0] }
 0x5ca   : > { %v1723_v44 = vadd.f32 %v5159_v37, %v1722_v42  ;;  %v4107_v42 = vld [vmem:[#allocation19 + $0x8] sm:$0xf0] }
 0x5cb   : > { %1949 = vmatpush.bf16.msrb.mxu0 %v4106_v41  ;;  %v4811_v41 = vld [vmem:[#allocation5 + $0x130] sm:$0xf0] }
 0x5cc   : > { %v1727_v46 = vsel %vm1726_vm8, %v5159_v37, %v1723_v44  ;;  %v4780_v44 = vld [vmem:[#allocation22 + $0x38] sm:$0xff] }
 0x5cd   : > { %v1732_v48 = vsel %vm1729_vm9, %v1731_v45, %v1727_v46  ;;  %v4788_v45 = vld [vmem:[#allocation22 + $0x78] sm:$0xff]  ;;  %v4787_v46 = vld [vmem:[#allocation22 + $0x70] sm:$0xff] }
 0x5ce   : > { %v1734_v49 = vmul.f32 %v1732_v48, %v1715_v40  ;;  %v4757_v40 = vld [vmem:[#allocation19 + $0x4] sm:$0xf]  ;;  %2117 = vmatpush.bf16.msrb.mxu2 %v4788_v45  ;;  %v4778_v48 = vld [vmem:[#allocation22 + $0x28] sm:$0xff]  ;;  %v4807_v45 = vld [vmem:[#allocation5 + $0x110] sm:$0xf0] }
 0x5cf   : > { %v1717_v50 = vpop.f32.mrf.mxu1  ;;  %v4110_v43 = vor.u32 %v4757_v40, %v4107_v42  ;;  %v4322_v40 = vld [vmem:[#allocation5 + $0x128] sm:$0xf] }
 0x5d0   : > { %v1752_v51 = vpack.c.bf16 %v1734_v49, %v1734_v49  ;;  %v4786_v49 = vld [vmem:[#allocation22 + $0x68] sm:$0xff]  ;;  %v4777_v50 = vld [vmem:[#allocation22 + $0x20] sm:$0xff]  ;;  %v4323_v42 = vor.u32 %v4811_v41, %v4322_v40 }
 0x5d1   : > { %1962 = vmatpush.bf16.msrb.mxu1 %v4110_v43  ;;  %v4792_v43 = vld [vmem:[#allocation25 + $0x18] sm:$0xff]  ;;  %v4799_v41 = vld [vmem:[#allocation5 + $0xd0] sm:$0xf0] }
 0x5d2   : > { %1812 = vmatmul.bf16.vlgmr.msra.gmra.mxu2 %v1752_v51  ;;  %v4785_v51 = vld [vmem:[#allocation22 + $0x60] sm:$0xff] }
 0x5d3   : > { %2118 = vmatpush.bf16.msrb.mxu2 %v4787_v46  ;;  %v4310_v46 = vld [vmem:[#allocation5 + $0x110] sm:$0xf] }
 0x5d5   : > { %2223 = vmatpush.bf16.msra.mxu1 %v4796_v12  ;;  %v4340_v12 = vld [vmem:[#allocation5 + $0x15c] sm:$0xf0] }
 0x5d7   : > { %2119 = vmatpush.bf16.msrb.mxu2 %v4786_v49 }
 0x5d9   : > { %2224 = vmatpush.bf16.msra.mxu1 %v4795_v18  ;;  %v4331_v18 = vor.u32 %v4812_v16, %v4328_v17  ;;  %v4825_v16 = vld [vmem:[#allocation8 + $0x60] sm:$0xff]  ;;  %v4824_v17 = vld [vmem:[#allocation8 + $0x58] sm:$0xff] }
 0x5db   : > { %2120 = vmatpush.bf16.msrb.mxu2 %v4785_v51  ;;  %v4290_v51 = vld [vmem:[#allocation5 + $0xf0] sm:$0xf] }
 0x5df   : > { %2121 = vmatpush.bf16.msrb.mxu2 %v4784_v53 }
 0x5e3   : > { %2122 = vmatpush.bf16.msrb.mxu2 %v4783_v55  ;;  %v4298_v55 = vld [vmem:[#allocation5 + $0xf8] sm:$0xf] }
 0x5e7   : > { %2123 = vmatpush.bf16.msrb.mxu2 %v4782_v60  ;;  %v4790_v60 = vld [vmem:[#allocation25 + $0x8] sm:$0xff] }
 0x5eb   : > { %2124 = vmatpush.bf16.msrb.mxu2 %v4781_v62  ;;  %v4801_v62 = vld [vmem:[#allocation5 + $0xe0] sm:$0xf0] }
 0x5ef   : > { %2434 = vmatpush.bf16.msra.mxu2 %v4359_v20  ;;  %v4316_v20 = vld [vmem:[#allocation5 + $0x12c] sm:$0xf0] }
 0x5f3   : > { %2435 = vmatpush.bf16.msra.mxu2 %v4347_v25  ;;  %v4292_v25 = vld [vmem:[#allocation5 + $0xfc] sm:$0xf0] }
 0x655   : > { %v1813_v31 = vpop.f32.mrf.mxu2 }
 0x656   : > { %v1814_v34 = vadd.f32 %v5142_v26, %v1813_v31  ;;  %v4794_v26 = vld [vmem:[#allocation25 + $0x28] sm:$0xff] }
 0x657   : > { %v4334_v31 = vld [vmem:[#allocation5 + $0x140] sm:$0xf]  ;;  %2225 = vmatpush.bf16.msra.mxu1 %v4794_v26  ;;  %v4295_v26 = vor.u32 %v4803_v24, %v4292_v25 }
 0x658   : > { %v1817_v35 = vadd.f32 %v1814_v34, %v6267_v47  ;;  %v4779_v47 = vld [vmem:[#allocation22 + $0x30] sm:$0xff]  ;;  %v4335_v34 = vor.u32 %v4814_v32, %v4334_v31  ;;  %v4798_v32 = vld [vmem:[#allocation5 + $0xc8] sm:$0xf0] }
 0x659   : > { %v4266_v31 = vld [vmem:[#allocation5 + $0xc0] sm:$0xf] }
 0x65a   : > { %1833 = vmatpush.msra.mxu3 %v1817_v35  ;;  %2436 = vmatpush.bf16.msra.mxu2 %v4335_v34  ;;  %v4797_v34 = vld [vmem:[#allocation5 + $0xc4] sm:$0xf] }
 0x65b   : > { %4102 = vmatmul.msk.f32.vlgmr.msra.gmra.mxu3 %vm1309_vm0, %v6257_v30 }
 0x65c   : > { %2104 = vmatpush.bf16.msrb.mxu3 %v4780_v44  ;;  %v4302_v44 = vld [vmem:[#allocation5 + $0x108] sm:$0xf] }
 0x65d   : > { %v1815_v37 = vpop.f32.mrf.mxu2 }
 0x65e   : > { %v4314_v37 = vld [vmem:[#allocation5 + $0x120] sm:$0xf]  ;;  %2437 = vmatpush.bf16.msra.mxu2 %v4323_v42 }
 0x65f   : > { %v4315_v39 = vor.u32 %v4810_v38, %v4314_v37  ;;  %v4267_v37 = vor.u32 %v4798_v32, %v4266_v31  ;;  %v4268_v38 = vld [vmem:[#allocation5 + $0xcc] sm:$0xf0] }
 0x660   : > { %2105 = vmatpush.bf16.msrb.mxu3 %v4779_v47  ;;  %v4303_v47 = vor.u32 %v4807_v45, %v4302_v44  ;;  %v4271_v40 = vor.u32 %v4797_v34, %v4268_v38  ;;  %v4485_v38 = vld [vmem:[#allocation14 + $0xf0] sm:$0xf] }
 0x664   : > { %2106 = vmatpush.bf16.msrb.mxu3 %v4778_v48  ;;  %v4808_v48 = vld [vmem:[#allocation5 + $0x118] sm:$0xf0] }
 0x665   : > { %v4311_v49 = vor.u32 %v4808_v48, %v4310_v46 }
 0x667   : > { %2438 = vmatpush.bf16.msra.mxu2 %v4311_v49  ;;  %v2271_v49 = vld [vmem:[#allocation7 + $0x3] sm:$0x7] }
 0x668   : > { %2107 = vmatpush.bf16.msrb.mxu3 %v4777_v50  ;;  %v4791_v50 = vld [vmem:[#allocation25 + $0x10] sm:$0xff] }
 0x66c   : > { %2108 = vmatpush.bf16.msrb.mxu3 %v4776_v52  ;;  %v4804_v52 = vld [vmem:[#allocation5 + $0xf8] sm:$0xf0] }
 0x66d   : > { %v4291_v53 = vor.u32 %v4804_v52, %v4290_v51 }
 0x670   : > { %2109 = vmatpush.bf16.msrb.mxu3 %v4775_v54  ;;  %v5143_v54 = vld [vmem:[#allocation23] ss:$0 sm:$0xff] }
 0x674   : > { %2110 = vmatpush.bf16.msrb.mxu3 %v4774_v59 }
 0x678   : > { %2111 = vmatpush.bf16.msrb.mxu3 %v4773_v61  ;;  %v4278_v61 = vld [vmem:[#allocation5 + $0xd8] sm:$0xf] }
 0x679   : > { %v4279_v63 = vor.u32 %v4801_v62, %v4278_v61 }
 0x67c   : > { %2408 = vmatpush.bf16.msra.mxu3 %v4351_v15 }
 0x680   : > { %2409 = vmatpush.bf16.msra.mxu3 %v4339_v22  ;;  %v4304_v22 = vld [vmem:[#allocation5 + $0x114] sm:$0xf0] }
 0x681   : > { %v4307_v23 = vor.u32 %v4806_v21, %v4304_v22 }
 0x684   : > { %2410 = vmatpush.bf16.msra.mxu3 %v4327_v29  ;;  %v4283_v29 = vor.u32 %v4800_v27, %v4280_v28 }
 0x688   : > { %2411 = vmatpush.bf16.msra.mxu3 %v4315_v39  ;;  %v4274_v39 = vld [vmem:[#allocation5 + $0xc8] sm:$0xf] }
 0x689   : > { %v4275_v42 = vor.u32 %v4799_v41, %v4274_v39  ;;  %v4852_v39 = vld [vmem:[#allocation14 + $0xf4] sm:$0xf0] }
 0x68a   : > { %v4486_v41 = vor.u32 %v4852_v39, %v4485_v38  ;;  %v4447_v38 = vld [vmem:[#allocation14 + $0xa8] sm:$0xf0] }
 0x68c   : > { %2412 = vmatpush.bf16.msra.mxu3 %v4303_v47 }
 0x690   : > { %2413 = vmatpush.bf16.msra.mxu3 %v4291_v53 }
 0x694   : > { %2414 = vmatpush.bf16.msra.mxu3 %v4279_v63 }
 0x698   : > { %2415 = vmatpush.bf16.msra.mxu3 %v4267_v37 }
 0x6de   : > { %v6282_v56 = vpop.f32.mrf.mxu3 }
 0x6df   : > { %v6285_v57 = vsub.f32 %v1817_v35, %v6282_v56  ;;  %v4793_v35 = vld [vmem:[#allocation25 + $0x20] sm:$0xff] }
 0x6e0   : > { %2226 = vmatpush.bf16.msra.mxu1 %v4793_v35  ;;  %v4789_v35 = vld [vmem:[#allocation25] sm:$0xff] }
 0x6e1   : > { %v1856_v58 = vpack.c.bf16 %v6285_v57, %v6285_v57 }
 0x6e3   : > { %1950 = vmatmul.bf16.vlgmr.msrb.gmra.mxu0 %v1856_v58  ;;  %1963 = vmatmul.bf16.vlgmr.msrb.gmra.mxu1 %v1856_v58  ;;  %v4805_v58 = vld [vmem:[#allocation5 + $0x100] sm:$0xf0] }
 0x6e4   : > { %2227 = vmatpush.bf16.msra.mxu1 %v4792_v43  ;;  %v4299_v59 = vor.u32 %v4805_v58, %v4298_v55  ;;  %v2152_v43 = vadd.f32 %v6282_v56, %v6264_v36  ;;  %v2276_v56 = vperm.slane %v2271_v49, 2 }
 0x6e6   : > { %2439 = vmatpush.bf16.msra.mxu2 %v4299_v59 }
 0x6e8   : > { %2228 = vmatpush.bf16.msra.mxu1 %v4791_v50  ;;  %v2275_v50 = vperm.slane %v2271_v49, 1 }
 0x6ec   : > { %2229 = vmatpush.bf16.msra.mxu1 %v4790_v60 }
 0x6f0   : > { %2230 = vmatpush.bf16.msra.mxu1 %v4789_v35 }
 0x760   : > { %v1951_v2 = vpop.f32.mrf.mxu0  ;;  %v1964_v3 = vpop.f32.mrf.mxu1 }
 0x761   : > { %v1952_v4 = vadd.f32 %v1951_v2, %v1858_v0  ;;  %v1965_v5 = vadd.f32 %v1964_v3, %v1859_v1  ;;  %v4286_v3 = vld [vmem:[#allocation5 + $0xe0] sm:$0xf] }
 0x763   : > { %v1968_v6 = vmax.f32 %v1952_v4, 0.0  ;;  %v1969_v7 = vmax.f32 %v1965_v5, 0.0  ;;  %v4802_v4 = vld [vmem:[#allocation5 + $0xe8] sm:$0xf0] }
 0x764   : > { %v4818_v5 = vld [vmem:[#allocation5 + $0x16c] sm:$0xf] }
 0x765   : > { %v2003_v8 = vpack.c.bf16 %v1968_v6, %v1968_v6  ;;  %v2004_v9 = vpack.c.bf16 %v1969_v7, %v1969_v7  ;;  %v4352_v6 = vld [vmem:[#allocation5 + $0x174] sm:$0xf0]  ;;  %v4287_v7 = vor.u32 %v4802_v4, %v4286_v3 }
 0x767   : > { %2112 = vmatmul.bf16.vlgmr.msrb.gmra.mxu3 %v2003_v8  ;;  %2125 = vmatmul.bf16.vlgmr.msrb.gmra.mxu2 %v2004_v9 }
 0x768   : > { %v1953_v10 = vpop.f32.mrf.mxu0  ;;  %v1966_v11 = vpop.f32.mrf.mxu1  ;;  %2440 = vmatpush.bf16.msra.mxu2 %v4287_v7  ;;  %v4828_v7 = vld [vmem:[#allocation8 + $0x78] sm:$0xff] }
 0x769   : > { %v4355_v10 = vor.u32 %v4818_v5, %v4352_v6  ;;  %v4815_v11 = vld [vmem:[#allocation5 + $0x154] sm:$0xf] }
 0x76a   : > { %v4343_v15 = vor.u32 %v4815_v11, %v4340_v12 }
 0x76c   : > { %2441 = vmatpush.bf16.msra.mxu2 %v4275_v42  ;;  %v4850_v42 = vld [vmem:[#allocation14 + $0xe4] sm:$0xf0] }
 0x7ea   : > { %v2113_v0 = vpop.f32.mrf.mxu3  ;;  %v2126_v1 = vpop.f32.mrf.mxu2 }
 0x7eb   : > { %v2114_v2 = vadd.f32 %v5143_v54, %v2113_v0  ;;  %v2274_v54 = vperm.slane %v2271_v49, 0 }
 0x7ed   : > { %v2127_v8 = vadd.f32 %v2126_v1, %v2114_v2 }
 0x7ef   : > { %v2130_v9 = vadd.f32 %v2127_v8, %v6285_v57  ;;  %v4319_v57 = vor.u32 %v4809_v19, %v4316_v20  ;;  %v4827_v8 = vld [vmem:[#allocation8 + $0x70] sm:$0xff]  ;;  %v4822_v19 = vld [vmem:[#allocation8 + $0x48] sm:$0xff]  ;;  %v4821_v20 = vld [vmem:[#allocation8 + $0x40] sm:$0xff] }
 0x7f1   : > { %2146 = vmatpush.msra.mxu0 %v2130_v9 }
 0x7f2   : > { %v2115_v13 = vpop.f32.mrf.mxu3  ;;  %v2128_v14 = vpop.f32.mrf.mxu2  ;;  %4231 = vmatmul.msk.f32.vlgmr.msra.gmra.mxu0 %vm1309_vm0, %v6257_v30 }
 0x7f3   : > { %2421 = vmatpush.bf16.msrb.mxu0 %v4355_v10 }
 0x7f7   : > { %2422 = vmatpush.bf16.msrb.mxu0 %v4343_v15 }
 0x7fb   : > { %2423 = vmatpush.bf16.msrb.mxu0 %v4331_v18  ;;  %v4823_v18 = vld [vmem:[#allocation8 + $0x50] sm:$0xff] }
 0x7ff   : > { %2424 = vmatpush.bf16.msrb.mxu0 %v4319_v57 }
 0x803   : > { %2425 = vmatpush.bf16.msrb.mxu0 %v4307_v23 }
 0x807   : > { %2426 = vmatpush.bf16.msrb.mxu0 %v4295_v26 }
 0x80b   : > { %2427 = vmatpush.bf16.msrb.mxu0 %v4283_v29 }
 0x80f   : > { %2428 = vmatpush.bf16.msrb.mxu0 %v4271_v40  ;;  %v4477_v40 = vld [vmem:[#allocation14 + $0xe0] sm:$0xf] }
 0x813   : > { %2579 = vmatpush.bf16.msra.mxu0 %v4828_v7  ;;  %v4830_v7 = vld [vmem:[#allocation11 + $0x48] sm:$0xff] }
 0x817   : > { %2580 = vmatpush.bf16.msra.mxu0 %v4827_v8 }
 0x86f   : > { %v2148_v44 = vpop.f32.mrf.mxu0 }
 0x870   : > { %v6294_v45 = vsub.f32 %v2130_v9, %v2148_v44  ;;  %v2153_v47 = vadd.f32 %v2152_v43, %v2148_v44  ;;  %v4826_v9 = vld [vmem:[#allocation8 + $0x68] sm:$0xff]  ;;  %v4836_v43 = vld [vmem:[#allocation11 + $0x78] sm:$0xff]  ;;  %v4478_v44 = vor.u32 %v4850_v42, %v4477_v40  ;;  %v5146_v42 = vld [vmem:[#allocation13 + $0x1] ss:$0 sm:$0xff] }
 0x871   : > { %2581 = vmatpush.bf16.msra.mxu0 %v4826_v9  ;;  %2685 = vmatpush.bf16.msrb.mxu2 %v4836_v43  ;;  %v4839_v40 = vld [vmem:[#allocation14 + $0x94] sm:$0xf] }
 0x872   : > { %v2171_v46 = vpack.c.bf16 %v2153_v47, %v2153_v47  ;;  %v2272_v48 = vpack.c.bf16 %v6294_v45, %v6294_v45  ;;  %v4469_v47 = vld [vmem:[#allocation14 + $0xd0] sm:$0xf] }
 0x874   : > { %2231 = vmatmul.bf16.vlgmr.msra.gmra.mxu1 %v2171_v46  ;;  %2416 = vmatmul.bf16.vlgmr.msra.gmra.mxu3 %v2272_v48  ;;  %v4848_v46 = vld [vmem:[#allocation14 + $0xd4] sm:$0xf0] }
 0x875   : > { %2429 = vmatmul.bf16.vlgmr.msrb.gmra.mxu0 %v2272_v48  ;;  %2442 = vmatmul.bf16.vlgmr.msra.gmra.mxu2 %v2272_v48  ;;  %v4835_v48 = vld [vmem:[#allocation11 + $0x70] sm:$0xff]  ;;  %v4470_v49 = vor.u32 %v4848_v46, %v4469_v47  ;;  %v4837_v47 = vld [vmem:[#allocation14 + $0x84] sm:$0xf] }
 0x876   : > { %2582 = vmatpush.bf16.msra.mxu0 %v4825_v16  ;;  %2686 = vmatpush.bf16.msrb.mxu2 %v4835_v48  ;;  %v4431_v46 = vld [vmem:[#allocation14 + $0x88] sm:$0xf0] }
 0x87a   : > { %2583 = vmatpush.bf16.msra.mxu0 %v4824_v17 }
 0x87e   : > { %2584 = vmatpush.bf16.msra.mxu0 %v4823_v18 }
 0x882   : > { %2585 = vmatpush.bf16.msra.mxu0 %v4822_v19 }
 0x886   : > { %2586 = vmatpush.bf16.msra.mxu0 %v4821_v20  ;;  %v4851_v20 = vld [vmem:[#allocation14 + $0xf4] sm:$0xf] }
 0x8f1   : > { %v6298_v51 = vpop.f32.mrf.mxu1 }
 0x8f2   : > { %v2430_v52 = vpop.f32.mrf.mxu0 }
 0x8f3   : > { %v2431_v53 = vadd.f32 %v2430_v52, %v2275_v50  ;;  %v4461_v50 = vld [vmem:[#allocation14 + $0xc0] sm:$0xf]  ;;  %v4846_v52 = vld [vmem:[#allocation14 + $0xc4] sm:$0xf0] }
 0x8f5   : > { %v2448_v36 = vpack.c.bf16 %v2431_v53, %v2431_v53  ;;  %v4834_v53 = vld [vmem:[#allocation11 + $0x68] sm:$0xff] }
 0x8f6   : > { %2687 = vmatpush.bf16.msrb.mxu2 %v4834_v53 }
 0x8f7   : > { %2456 = vmatpush.bf16.xpose.msrb.mxu1 %v2448_v36  ;;  %v2417_v55 = vpop.f32.mrf.mxu3  ;;  %v4453_v36 = vld [vmem:[#allocation14 + $0xb0] sm:$0xf] }
 0x8f8   : > { %v2418_v58 = vadd.f32 %v2417_v55, %v2274_v54  ;;  %v2443_v59 = vpop.f32.mrf.mxu2  ;;  %v4462_v54 = vor.u32 %v4846_v52, %v4461_v50  ;;  %v4833_v55 = vld [vmem:[#allocation11 + $0x60] sm:$0xff]  ;;  %v4434_v50 = vor.u32 %v4837_v47, %v4431_v46 }
 0x8f9   : > { %v2444_v60 = vadd.f32 %v2443_v59, %v2276_v56  ;;  %v2234_v61 = vpop.f32.mrf.mxu1  ;;  %v4844_v56 = vld [vmem:[#allocation14 + $0xb4] sm:$0xf0]  ;;  %v4445_v59 = vld [vmem:[#allocation14 + $0xa0] sm:$0xf] }
 0x8fa   : > { %v2447_v62 = vpack.c.bf16 %v2418_v58, %v2418_v58  ;;  %v2432_v63 = vpop.f32.mrf.mxu0  ;;  %v4454_v58 = vor.u32 %v4844_v56, %v4453_v36  ;;  %2688 = vmatpush.bf16.msrb.mxu2 %v4833_v55  ;;  %v4832_v61 = vld [vmem:[#allocation11 + $0x58] sm:$0xff]  ;;  %v4559_v46 = vld [vmem:[#allocation19 + $0xc0] sm:$0xf] }
 0x8fb   : > { %v2472_v0 = vpack.c.bf16 %v2444_v60, %v2444_v60  ;;  %v4842_v60 = vld [vmem:[#allocation14 + $0xa4] sm:$0xf0]  ;;  %v4437_v63 = vld [vmem:[#allocation14 + $0x90] sm:$0xf] }
 0x8fd   : > { %v2477_v1 = vsel %vm1324_vm1, %v2472_v0, 0  ;;  %v4840_v0 = vld [vmem:[#allocation14 + $0x94] sm:$0xf0] }
 0x8fe   : > { %2457 = vmatmul.bf16.vlgmr.msrb.gmra.mxu1 %v2447_v62  ;;  %2486 = vmatpush.bf16.msrb.mxu3 %v2477_v1  ;;  %v4446_v62 = vor.u32 %v4842_v60, %v4445_v59  ;;  %v4831_v1 = vld [vmem:[#allocation11 + $0x50] sm:$0xff] }
 0x8ff   : > { %v2419_v2 = vpop.f32.mrf.mxu3  ;;  %2689 = vmatpush.bf16.msrb.mxu2 %v4832_v61 }
 0x900   : > { %v2445_v3 = vpop.f32.mrf.mxu2  ;;  %v5145_v2 = vld [vmem:[#allocation10 + $0x1] ss:$0 sm:$0xff] }
 0x901   : > { %v4438_v3 = vor.u32 %v4840_v0, %v4437_v63  ;;  %v4859_v63 = vld [vmem:[#allocation16 + $0x70] sm:$0xff]  ;;  %v4858_v0 = vld [vmem:[#allocation16 + $0x68] sm:$0xff] }
 0x902   : > { %2802 = vmatpush.bf16.msra.mxu3 %v4486_v41  ;;  %v4439_v41 = vld [vmem:[#allocation14 + $0x98] sm:$0xf0] }
 0x903   : > { %2690 = vmatpush.bf16.msrb.mxu2 %v4831_v1  ;;  %v4442_v43 = vor.u32 %v4839_v40, %v4439_v41  ;;  %v4567_v40 = vld [vmem:[#allocation19 + $0xd0] sm:$0xf]  ;;  %v4872_v41 = vld [vmem:[#allocation19 + $0xd4] sm:$0xf0] }
 0x906   : > { %2803 = vmatpush.bf16.msra.mxu3 %v4478_v44 }
 0x907   : > { %2691 = vmatpush.bf16.msrb.mxu2 %v4830_v7  ;;  %v4856_v7 = vld [vmem:[#allocation16 + $0x58] sm:$0xff] }
 0x90a   : > { %2804 = vmatpush.bf16.msra.mxu3 %v4470_v49 }
 0x90e   : > { %2805 = vmatpush.bf16.msra.mxu3 %v4462_v54 }
 0x912   : > { %2806 = vmatpush.bf16.msra.mxu3 %v4454_v58 }
 0x916   : > { %2807 = vmatpush.bf16.msra.mxu3 %v4446_v62  ;;  %v4860_v62 = vld [vmem:[#allocation16 + $0x78] sm:$0xff] }
 0x91a   : > { %2808 = vmatpush.bf16.msra.mxu3 %v4438_v3 }
 0x97b   : > { %v2458_v4 = vpop.f32.mrf.mxu1 }
 0x97c   : > { %v2462_v5 = vsel %vm1309_vm0, %v2458_v4, -inf }
 0x97d   : > { %2463 = vmax.xlane.f32.xlu2 %v2462_v5  ;;  %v4429_v5 = vld [vmem:[#allocation14 + $0x80] sm:$0xf] }
 0x983   : > { %v2460_v6 = vpop.f32.mrf.mxu1 }
 0x984   : > { %v4838_v6 = vld [vmem:[#allocation14 + $0x84] sm:$0xf0] }
 0x9f0   : > { %v2464_v10 = vpop.xlane.xlu2 %2463 }
 0x9f1   : > { %v2465_v11 = vsub.f32 %v2458_v4, %v2464_v10  ;;  %v4430_v10 = vor.u32 %v4838_v6, %v4429_v5  ;;  %v4857_v6 = vld [vmem:[#allocation16 + $0x60] sm:$0xff] }
 0x9f3   : > { %v2466_v12 = vmul.f32 1.442695, %v2465_v11  ;;  %2809 = vmatpush.bf16.msra.mxu3 %v4430_v10  ;;  %v4853_v10 = vld [vmem:[#allocation16 + $0x40] sm:$0xff] }
 0x9f5   : > { %5160 = vpow2.f32 %v2466_v12  ;;  %v4829_v12 = vld [vmem:[#allocation11 + $0x40] sm:$0xff] }
 0x9f6   : > { %2692 = vmatpush.bf16.msrb.mxu2 %v4829_v12 }
 0x9fb   : > { %v5161_v13 = vpop.eup %5160 }
 0x9fc   : > { %v2471_v14 = vpack.c.bf16 %v5161_v13, %v5161_v13  ;;  %v2468_v15 = vsel %vm1309_vm0, %v5161_v13, 0.0 }
 0x9fd   : > { %2469 = vadd.xlane.f32.xlu2 %v2468_v15  ;;  %v4426_v15 = vld [vmem:[%s6408_s11 + $0x2] sm:$0x3] }
 0x9fe   : > { %4360 = vmatmul.msk.bf16.vlgmr.msrb.gmra.mxu3 %vm1309_vm0, %v2471_v14  ;;  %v2719_v55 = vperm.slane %v4426_v15, 1 }
 0x9ff   : > { %2960 = vmatpush.bf16.msrb.mxu3 %v4860_v62  ;;  %v4865_v62 = vld [vmem:[#allocation19 + $0xa4] sm:$0xf] }
 0xa03   : > { %2961 = vmatpush.bf16.msrb.mxu3 %v4859_v63  ;;  %v4545_v63 = vld [vmem:[#allocation19 + $0xa8] sm:$0xf0] }
 0xa07   : > { %2962 = vmatpush.bf16.msrb.mxu3 %v4858_v0 }
 0xa0b   : > { %2963 = vmatpush.bf16.msrb.mxu3 %v4857_v6 }
 0xa0e   : > { %2810 = vmatmul.bf16.vlgmr.msra.gmra.mxu3 %v6261_v33 }
 0xa0f   : > { %2964 = vmatpush.bf16.msrb.mxu3 %v4856_v7 }
 0xa70   : > { %v2470_v57 = vpop.xlane.xlu2 %2469 }
 0xa71   : > { %5162 = vrcp.f32 %v2470_v57  ;;  %v2503_v24 = vand.u32 2147483648, %v2470_v57  ;;  %v2501_v26 = vand.u32 2147483647, %v2470_v57  ;;  %vm2497_vm11 = vweird.f32 %v2470_v57 }
 0xa73   : > { %v2504_v28 = vor.u32 1.1754944e-38, %v2503_v24  ;;  %vm2502_vm13 = vcmp.eq.f32.partialorder %v2501_v26, 8.507059e+37  ;;  %v4471_v26 = vld [vmem:[#allocation14 + $0xd8] sm:$0xf0] }
 0xa77   : > { %v5163_v21 = vpop.eup %5162 }
 0xa78   : > { %v2493_v22 = vmul.f32 %v5163_v21, %v2470_v57  ;;  %vm2498_vm10 = vweird.f32 %v5163_v21  ;;  %v4487_v57 = vld [vmem:[#allocation14 + $0xf8] sm:$0xf0] }
 0xa79   : > { %vm2499_vm12 = vmor %vm2497_vm11, %vm2498_vm10 }
 0xa7a   : > { %v2494_v23 = vsub.f32 1.0, %v2493_v22  ;;  %v4490_v22 = vor.u32 %v4851_v20, %v4487_v57 }
 0xa7c   : > { %v2495_v25 = vmul.f32 %v5163_v21, %v2494_v23  ;;  %v4479_v23 = vld [vmem:[#allocation14 + $0xe8] sm:$0xf0] }
 0xa7e   : > { %v2496_v27 = vadd.f32 %v5163_v21, %v2495_v25  ;;  %v4847_v25 = vld [vmem:[#allocation14 + $0xd4] sm:$0xf] }
 0xa80   : > { %v2500_v29 = vsel %vm2499_vm12, %v5163_v21, %v2496_v27  ;;  %v4849_v21 = vld [vmem:[#allocation14 + $0xe4] sm:$0xf]  ;;  %v4474_v27 = vor.u32 %v4847_v25, %v4471_v26  ;;  %v4583_v25 = vld [vmem:[#allocation19 + $0xf0] sm:$0xf]  ;;  %v4876_v26 = vld [vmem:[#allocation19 + $0xf4] sm:$0xf0] }
 0xa81   : > { %v2488_v31 = vpop.f32.mrf.mxu3  ;;  %v2505_v32 = vsel %vm2502_vm13, %v2504_v28, %v2500_v29  ;;  %v4482_v24 = vor.u32 %v4849_v21, %v4479_v23  ;;  %v4845_v28 = vld [vmem:[#allocation14 + $0xc4] sm:$0xf]  ;;  %v4463_v29 = vld [vmem:[#allocation14 + $0xc8] sm:$0xf0] }
 0xa82   : > { %v2507_v34 = vmul.f32 %v2505_v32, %v2488_v31  ;;  %v4466_v31 = vor.u32 %v4845_v28, %v4463_v29  ;;  %v4843_v32 = vld [vmem:[#allocation14 + $0xb4] sm:$0xf]  ;;  %v4584_v28 = vor.u32 %v4876_v26, %v4583_v25  ;;  %v4585_v29 = vld [vmem:[#allocation19 + $0xf8] sm:$0xf0] }
 0xa83   : > { %v4880_v25 = vld [vmem:[#allocation22 + $0x98] sm:$0xff] }
 0xa84   : > { %v2527_v35 = vpack.c.bf16 %v2507_v34, %v2507_v34  ;;  %v4455_v34 = vld [vmem:[#allocation14 + $0xb8] sm:$0xf0] }
 0xa85   : > { %v4888_v26 = vld [vmem:[#allocation22 + $0xd8] sm:$0xff] }
 0xa86   : > { %2587 = vmatmul.bf16.vlgmr.msra.gmra.mxu0 %v2527_v35  ;;  %v4458_v35 = vor.u32 %v4843_v32, %v4455_v34  ;;  %v4874_v32 = vld [vmem:[#allocation19 + $0xe4] sm:$0xf0] }
 0xa89   : > { %v2490_v37 = vpop.f32.mrf.mxu3 }
 0xa8a   : > { %v4841_v37 = vld [vmem:[#allocation14 + $0xa4] sm:$0xf] }
 0xa8b   : > { %v4450_v39 = vor.u32 %v4841_v37, %v4447_v38  ;;  %v4577_v37 = vld [vmem:[#allocation19 + $0xe8] sm:$0xf0] }
 0xa91   : > { %v2811_v16 = vpop.f32.mrf.mxu3 }
 0xa99   : > { %v2813_v19 = vpop.f32.mrf.mxu3 }
 0xb03   : > { %v2588_v4 = vpop.f32.mrf.mxu0 }
 0xb04   : > { %v2589_v8 = vadd.f32 %v5145_v2, %v2588_v4 }
 0xb06   : > { %v2592_v9 = vadd.f32 %v2589_v8, %v6294_v45  ;;  %v4855_v8 = vld [vmem:[#allocation16 + $0x50] sm:$0xff] }
 0xb07   : > { %2965 = vmatpush.bf16.msrb.mxu3 %v4855_v8 }
 0xb08   : > { %2608 = vmatpush.msra.mxu1 %v2592_v9 }
 0xb09   : > { %4393 = vmatmul.msk.f32.vlgmr.msra.gmra.mxu1 %vm1309_vm0, %v6257_v30  ;;  %v2718_v30 = vperm.slane %v4426_v15, 0 }
 0xb0a   : > { %2815 = vmatpush.bf16.msrb.mxu1 %v4490_v22 }
 0xb0b   : > { %v2590_v11 = vpop.f32.mrf.mxu0  ;;  %v2812_v17 = vadd.f32 %v2811_v16, %v2718_v30 }
 0xb0d   : > { %v2829_v18 = vpack.c.bf16 %v2812_v17, %v2812_v17 }
 0xb0e   : > { %2816 = vmatpush.bf16.msrb.mxu1 %v4482_v24 }
 0xb0f   : > { %2837 = vmatpush.bf16.xpose.msrb.mxu0 %v2829_v18 }
 0xb12   : > { %2817 = vmatpush.bf16.msrb.mxu1 %v4474_v27  ;;  %v4875_v27 = vld [vmem:[#allocation19 + $0xf4] sm:$0xf] }
 0xb13   : > { %v4588_v34 = vor.u32 %v4875_v27, %v4585_v29  ;;  %v4879_v27 = vld [vmem:[#allocation22 + $0x90] sm:$0xff] }
 0xb15   : > { %3113 = vmatpush.bf16.msra.mxu2 %v4588_v34  ;;  %v4887_v34 = vld [vmem:[#allocation22 + $0xd0] sm:$0xff] }
 0xb16   : > { %2818 = vmatpush.bf16.msrb.mxu1 %v4466_v31  ;;  %v4575_v31 = vld [vmem:[#allocation19 + $0xe0] sm:$0xf] }
 0xb17   : > { %v4576_v38 = vor.u32 %v4874_v32, %v4575_v31  ;;  %v4878_v32 = vld [vmem:[#allocation22 + $0x88] sm:$0xff] }
 0xb1a   : > { %2819 = vmatpush.bf16.msrb.mxu1 %v4458_v35  ;;  %v4873_v35 = vld [vmem:[#allocation19 + $0xe4] sm:$0xf] }
 0xb1e   : > { %2820 = vmatpush.bf16.msrb.mxu1 %v4450_v39  ;;  %v4580_v39 = vor.u32 %v4873_v35, %v4577_v37  ;;  %v4877_v35 = vld [vmem:[#allocation22 + $0x80] sm:$0xff]  ;;  %v4886_v37 = vld [vmem:[#allocation22 + $0xc8] sm:$0xff] }
 0xb20   : > { %3114 = vmatpush.bf16.msra.mxu2 %v4580_v39  ;;  %v3013_v39 = vld [vmem:[#allocation20 + $0x2] sm:$0x3] }
 0xb22   : > { %2821 = vmatpush.bf16.msrb.mxu1 %v4442_v43  ;;  %v4569_v43 = vld [vmem:[#allocation19 + $0xd8] sm:$0xf0] }
 0xb26   : > { %2822 = vmatpush.bf16.msrb.mxu1 %v4434_v50  ;;  %v4561_v50 = vld [vmem:[#allocation19 + $0xc8] sm:$0xf0] }
 0xb29   : > { %2823 = vmatmul.bf16.vlgmr.msrb.gmra.mxu1 %v6261_v33 }
 0xb86   : > { %v6308_v13 = vpop.f32.mrf.mxu1 }
 0xb87   : > { %v6311_v14 = vsub.f32 %v2592_v9, %v6308_v13  ;;  %v4854_v9 = vld [vmem:[#allocation16 + $0x48] sm:$0xff] }
 0xb88   : > { %2966 = vmatpush.bf16.msrb.mxu3 %v4854_v9 }
 0xb89   : > { %v2633_v45 = vpack.c.bf16 %v6311_v14, %v6311_v14 }
 0xb8b   : > { %2693 = vmatmul.bf16.vlgmr.msrb.gmra.mxu2 %v2633_v45 }
 0xb8c   : > { %2967 = vmatpush.bf16.msrb.mxu3 %v4853_v10 }
 0xba6   : > { %v2824_v56 = vpop.f32.mrf.mxu1 }
 0xba7   : > { %v2825_v58 = vadd.f32 %v2824_v56, %v2719_v55  ;;  %v4867_v56 = vld [vmem:[#allocation19 + $0xb4] sm:$0xf]  ;;  %v4553_v55 = vld [vmem:[#allocation19 + $0xb8] sm:$0xf0] }
 0xba9   : > { %v2853_v59 = vpack.c.bf16 %v2825_v58, %v2825_v58 }
 0xbab   : > { %v2858_v60 = vsel %vm1324_vm1, %v2853_v59, 0  ;;  %v4556_v59 = vor.u32 %v4867_v56, %v4553_v55  ;;  %v4898_v56 = vld [vmem:[#allocation25 + $0x68] sm:$0xff]  ;;  %v4897_v55 = vld [vmem:[#allocation25 + $0x60] sm:$0xff] }
 0xbac   : > { %2867 = vmatpush.bf16.msra.mxu1 %v2858_v60  ;;  %v4543_v60 = vld [vmem:[#allocation19 + $0xa0] sm:$0xf] }
 0xbae   : > { %v2826_v61 = vpop.f32.mrf.mxu1 }
 0xbaf   : > { %v4866_v61 = vld [vmem:[#allocation19 + $0xa4] sm:$0xf0] }
 0xbb0   : > { %3100 = vmatpush.bf16.msrb.mxu1 %v4584_v28  ;;  %v4544_v0 = vor.u32 %v4866_v61, %v4543_v60  ;;  %v4895_v60 = vld [vmem:[#allocation25 + $0x50] sm:$0xff]  ;;  %v5148_v61 = vld [vmem:[#allocation23 + $0x1] ss:$0 sm:$0xff] }
 0xbb4   : > { %3101 = vmatpush.bf16.msrb.mxu1 %v4576_v38  ;;  %v4885_v38 = vld [vmem:[#allocation22 + $0xc0] sm:$0xff] }
 0xc0e   : > { %v2694_v44 = vpop.f32.mrf.mxu2 }
 0xc0f   : > { %v2695_v48 = vadd.f32 %v5146_v42, %v2694_v44  ;;  %v4871_v42 = vld [vmem:[#allocation19 + $0xd4] sm:$0xf]  ;;  %v4568_v44 = vor.u32 %v4872_v41, %v4567_v40  ;;  %v3016_v40 = vperm.slane %v3013_v39, 0 }
 0xc10   : > { %v4572_v47 = vor.u32 %v4871_v42, %v4569_v43 }
 0xc11   : > { %v2828_v49 = vpack.c.bf16 %v2695_v48, %v2695_v48  ;;  %v4870_v48 = vld [vmem:[#allocation19 + $0xc4] sm:$0xf0]  ;;  %3102 = vmatpush.bf16.msrb.mxu1 %v4568_v44  ;;  %v3017_v44 = vperm.slane %v3013_v39, 1 }
 0xc12   : > { %3115 = vmatpush.bf16.msra.mxu2 %v4572_v47 }
 0xc13   : > { %2838 = vmatmul.bf16.vlgmr.msrb.gmra.mxu0 %v2828_v49  ;;  %v4869_v49 = vld [vmem:[#allocation19 + $0xc4] sm:$0xf] }
 0xc16   : > { %v2696_v52 = vpop.f32.mrf.mxu2 }
 0xc17   : > { %v4560_v52 = vor.u32 %v4870_v48, %v4559_v46 }
 0xc19   : > { %3103 = vmatpush.bf16.msrb.mxu1 %v4560_v52 }
 0xc90   : > { %v2839_v53 = vpop.f32.mrf.mxu0 }
 0xc91   : > { %v2843_v54 = vsel %vm1309_vm0, %v2839_v53, -inf }
 0xc92   : > { %2844 = vmax.xlane.f32.xlu0 %v2843_v54  ;;  %v4551_v54 = vld [vmem:[#allocation19 + $0xb0] sm:$0xf] }
 0xc98   : > { %v2841_v36 = vpop.f32.mrf.mxu0 }
 0xc99   : > { %v4868_v36 = vld [vmem:[#allocation19 + $0xb4] sm:$0xf0] }
 0xc9a   : > { %v4552_v58 = vor.u32 %v4868_v36, %v4551_v54  ;;  %v4900_v54 = vld [vmem:[#allocation25 + $0x78] sm:$0xff]  ;;  %v4899_v36 = vld [vmem:[#allocation25 + $0x70] sm:$0xff] }
 0xc9c   : > { %3104 = vmatpush.bf16.msrb.mxu1 %v4552_v58 }
 0xca0   : > { %3105 = vmatpush.bf16.msrb.mxu1 %v4544_v0 }
 0xd05   : > { %v2845_v33 = vpop.xlane.xlu0 %2844 }
 0xd06   : > { %v2846_v1 = vsub.f32 %v2839_v53, %v2845_v33  ;;  %v4564_v53 = vor.u32 %v4869_v49, %v4561_v50  ;;  %v4548_v33 = vor.u32 %v4865_v62, %v4545_v63  ;;  %v4894_v63 = vld [vmem:[#allocation25 + $0x48] sm:$0xff] }
 0xd08   : > { %v2847_v2 = vmul.f32 1.442695, %v2846_v1  ;;  %3116 = vmatpush.bf16.msra.mxu2 %v4564_v53  ;;  %v4535_v1 = vld [vmem:[#allocation19 + $0x90] sm:$0xf] }
 0xd0a   : > { %5164 = vpow2.f32 %v2847_v2  ;;  %v4864_v2 = vld [vmem:[#allocation19 + $0x94] sm:$0xf0] }
 0xd0b   : > { %v4536_v6 = vor.u32 %v4864_v2, %v4535_v1 }
 0xd0c   : > { %3117 = vmatpush.bf16.msra.mxu2 %v4556_v59  ;;  %v4896_v59 = vld [vmem:[#allocation25 + $0x58] sm:$0xff] }
 0xd0d   : > { %3106 = vmatpush.bf16.msrb.mxu1 %v4536_v6 }
 0xd10   : > { %v5165_v3 = vpop.eup %5164  ;;  %3118 = vmatpush.bf16.msra.mxu2 %v4548_v33 }
 0xd11   : > { %v2852_v4 = vpack.c.bf16 %v5165_v3, %v5165_v3  ;;  %v2849_v5 = vsel %vm1309_vm0, %v5165_v3, 0.0  ;;  %v5147_v3 = vld [vmem:[#allocation17 + $0x1] ss:$0 sm:$0xff] }
 0xd12   : > { %2850 = vadd.xlane.f32.xlu1 %v2849_v5  ;;  %v4537_v5 = vld [vmem:[#allocation19 + $0x98] sm:$0xf0] }
 0xd13   : > { %4491 = vmatmul.msk.bf16.vlgmr.msra.gmra.mxu1 %vm1309_vm0, %v2852_v4  ;;  %v4863_v4 = vld [vmem:[#allocation19 + $0x94] sm:$0xf] }
 0xd14   : > { %v4540_v8 = vor.u32 %v4863_v4, %v4537_v5  ;;  %v4893_v4 = vld [vmem:[#allocation25 + $0x40] sm:$0xff] }
 0xd16   : > { %3119 = vmatpush.bf16.msra.mxu2 %v4540_v8 }
 0xd85   : > { %v2851_v11 = vpop.xlane.xlu1 %2850 }
 0xd86   : > { %5166 = vrcp.f32 %v2851_v11  ;;  %v2884_v30 = vand.u32 2147483648, %v2851_v11  ;;  %v2882_v18 = vand.u32 2147483647, %v2851_v11  ;;  %vm2878_vm15 = vweird.f32 %v2851_v11 }
 0xd88   : > { %v2885_v20 = vor.u32 1.1754944e-38, %v2884_v30  ;;  %vm2883_vm2 = vcmp.eq.f32.partialorder %v2882_v18, 8.507059e+37  ;;  %v4861_v30 = vld [vmem:[#allocation19 + $0x84] sm:$0xf] }
 0xd8c   : > { %v5167_v12 = vpop.eup %5166 }
 0xd8d   : > { %v2874_v45 = vmul.f32 %v5167_v12, %v2851_v11  ;;  %vm2879_vm14 = vweird.f32 %v5167_v12  ;;  %v6324_v11 = vld [vmem:[#allocation2] sm:$0xff] }
 0xd8e   : > { %vm2880_vm1 = vmor %vm2878_vm15, %vm2879_vm14 }
 0xd8f   : > { %v2875_v15 = vsub.f32 1.0, %v2874_v45  ;;  %v4527_v45 = vld [vmem:[#allocation19 + $0x80] sm:$0xf] }
 0xd90   : > { %v2869_v16 = vpop.f32.mrf.mxu1 }
 0xd91   : > { %v2876_v17 = vmul.f32 %v5167_v12, %v2875_v15  ;;  %v4862_v15 = vld [vmem:[#allocation19 + $0x84] sm:$0xf0] }
 0xd93   : > { %v2877_v19 = vadd.f32 %v5167_v12, %v2876_v17  ;;  %v4529_v17 = vld [vmem:[#allocation19 + $0x88] sm:$0xf0] }
 0xd94   : > { %v4532_v18 = vor.u32 %v4861_v30, %v4529_v17 }
 0xd95   : > { %v2881_v57 = vsel %vm2880_vm1, %v5167_v12, %v2877_v19  ;;  %v4884_v19 = vld [vmem:[#allocation22 + $0xb8] sm:$0xff] }
 0xd96   : > { %v2886_v21 = vsel %vm2883_vm2, %v2885_v20, %v2881_v57  ;;  %3120 = vmatpush.bf16.msra.mxu2 %v4532_v18  ;;  %v4892_v20 = vld [vmem:[#allocation22 + $0xf8] sm:$0xff]  ;;  %v4891_v57 = vld [vmem:[#allocation22 + $0xf0] sm:$0xff] }
 0xd97   : > { %v2888_v22 = vmul.f32 %v2886_v21, %v2869_v16  ;;  %v4528_v16 = vor.u32 %v4862_v15, %v4527_v45  ;;  %3277 = vmatpush.bf16.msra.mxu3 %v4892_v20  ;;  %v4882_v21 = vld [vmem:[#allocation22 + $0xa8] sm:$0xff]  ;;  %v5144_v20 = vld [vmem:[#allocation26] ss:$0 sm:$0xff] }
 0xd98   : > { %v2871_v23 = vpop.f32.mrf.mxu1 }
 0xd99   : > { %v2908_v24 = vpack.c.bf16 %v2888_v22, %v2888_v22  ;;  %3107 = vmatpush.bf16.msrb.mxu1 %v4528_v16  ;;  %v4890_v22 = vld [vmem:[#allocation22 + $0xe8] sm:$0xff]  ;;  %v4881_v23 = vld [vmem:[#allocation22 + $0xa0] sm:$0xff] }
 0xd9a   : > { %3385 = vmatpush.bf16.msrb.mxu2 %v4900_v54 }
 0xd9b   : > { %2968 = vmatmul.bf16.vlgmr.msrb.gmra.mxu3 %v2908_v24  ;;  %v4889_v24 = vld [vmem:[#allocation22 + $0xe0] sm:$0xff] }
 0xd9c   : > { %3278 = vmatpush.bf16.msra.mxu3 %v4891_v57  ;;  %v5149_v57 = vld [vmem:[#allocation26 + $0x1] ss:$0 sm:$0xff] }
 0xd9e   : > { %3386 = vmatpush.bf16.msrb.mxu2 %v4899_v36 }
 0xda0   : > { %3279 = vmatpush.bf16.msra.mxu3 %v4890_v22 }
 0xda2   : > { %3387 = vmatpush.bf16.msrb.mxu2 %v4898_v56 }
 0xda4   : > { %3280 = vmatpush.bf16.msra.mxu3 %v4889_v24 }
 0xda6   : > { %3388 = vmatpush.bf16.msrb.mxu2 %v4897_v55 }
 0xda8   : > { %3281 = vmatpush.bf16.msra.mxu3 %v4888_v26 }
 0xdaa   : > { %3389 = vmatpush.bf16.msrb.mxu2 %v4896_v59 }
 0xdac   : > { %3282 = vmatpush.bf16.msra.mxu3 %v4887_v34 }
 0xdae   : > { %3390 = vmatpush.bf16.msrb.mxu2 %v4895_v60 }
 0xdb0   : > { %3283 = vmatpush.bf16.msra.mxu3 %v4886_v37 }
 0xdb2   : > { %3391 = vmatpush.bf16.msrb.mxu2 %v4894_v63 }
 0xdb4   : > { %3284 = vmatpush.bf16.msra.mxu3 %v4885_v38 }
 0xdb6   : > { %3392 = vmatpush.bf16.msrb.mxu2 %v4893_v4 }
 0xe1e   : > { %v2969_v7 = vpop.f32.mrf.mxu3 }
 0xe1f   : > { %v2970_v9 = vadd.f32 %v5147_v3, %v2969_v7 }
 0xe21   : > { %v2973_v10 = vadd.f32 %v2970_v9, %v6311_v14  ;;  %v4883_v14 = vld [vmem:[#allocation22 + $0xb0] sm:$0xff] }
 0xe23   : > { %2989 = vmatpush.msra.mxu0 %v2973_v10 }
 0xe24   : > { %4524 = vmatmul.msk.f32.vlgmr.msra.gmra.mxu0 %vm1309_vm0, %v6324_v11 }
 0xe25   : > { %3264 = vmatpush.bf16.msrb.mxu0 %v4884_v19 }
 0xe26   : > { %v2971_v12 = vpop.f32.mrf.mxu3 }
 0xe29   : > { %3265 = vmatpush.bf16.msrb.mxu0 %v4883_v14  ;;  %v2233_v14 = vadd.f32 %v5144_v20, %v6298_v51 }
 0xe2d   : > { %3266 = vmatpush.bf16.msrb.mxu0 %v4882_v21  ;;  %v1084_v21 = vld [vmem:[%s1075_s26] sm:$0xff]  ;;  %s5729_s26 = scalar_lea.hbm %s5728_s7, 16 }
 0xe2e   : > { %p5730_p0 = scmp.ne.s32.totalorder %s5728_s7, %s5729_s26  ;;  %p5735_p4 = scmp.lt.s32.totalorder %s5733_s9, %s5729_s26 }
 0xe30   : > { %p5731_p1 = pnand %p5730_p0, %p6043_p5  ;;  %p5736_p7 = por %p5735_p4, %p5734_p3 }
 0xe31   : > { %3267 = vmatpush.bf16.msrb.mxu0 %v4881_v23  ;;  %v2236_v23 = vadd.f32 %v2233_v14, %v1084_v21 }
 0xe32   : > { %p5732_p2 = pneg %p5731_p1 }
 0xe34   : > { %p5737_p8 = pnand %p5736_p7, %p5732_p2 }
 0xe35   : > { %3268 = vmatpush.bf16.msrb.mxu0 %v4880_v25 }
 0xe39   : > { %3269 = vmatpush.bf16.msrb.mxu0 %v4879_v27 }
 0xe3d   : > { %3270 = vmatpush.bf16.msrb.mxu0 %v4878_v32 }
 0xe41   : > { %3271 = vmatpush.bf16.msrb.mxu0 %v4877_v35 }
 0xea1   : > { %v2991_v28 = vpop.f32.mrf.mxu0 }
 0xea2   : > { %v2994_v29 = vsub.f32 %v2973_v10, %v2991_v28  ;;  %v3312_v5 = vadd.f32 %v2991_v28, %v6308_v13  ;;  %v5879_v10 = vmov 128.0  }
 0xea3   : > { %5168 = vrcp.f32 %v5879_v10 }
 0xea4   : > { %v3014_v31 = vpack.c.bf16 %v2994_v29, %v2994_v29 }
 0xea6   : > { %3108 = vmatmul.bf16.vlgmr.msrb.gmra.mxu1 %v3014_v31  ;;  %3121 = vmatmul.bf16.vlgmr.msra.gmra.mxu2 %v3014_v31 }
 0xea9   : > { %v5169_v12 = vpop.eup %5168 }
 0xeaa   : > { %v3402_v45 = vmul.f32 128.0, %v5169_v12 }
 0xeac   : > { %v3403_v15 = vsub.f32 1.0, %v3402_v45 }
 0xeae   : > { %v3404_v30 = vmul.f32 %v5169_v12, %v3403_v15 }
 0xeb0   : > { %v3405_v16 = vadd.f32 %v5169_v12, %v3404_v30 }
 0xf23   : > { %v3109_v41 = vpop.f32.mrf.mxu1 }
 0xf24   : > { %v3110_v42 = vadd.f32 %v3109_v41, %v3016_v40 }
 0xf26   : > { %v3126_v43 = vmax.f32 %v3110_v42, 0.0 }
 0xf28   : > { %v3163_v47 = vpack.c.bf16 %v3126_v43, %v3126_v43  ;;  %3438 = vst [vmem:[%s6332_s24] sm:$0xff] %v3126_v43 }
 0xf29   : > { %v3122_v46 = vpop.f32.mrf.mxu2 }
 0xf2a   : > { %v3123_v48 = vadd.f32 %v3122_v46, %v3017_v44  ;;  %3272 = vmatmul.bf16.vlgmr.msrb.gmra.mxu0 %v3163_v47 }
 0xf2b   : > { %v3111_v49 = vpop.f32.mrf.mxu1 }
 0xf2c   : > { %v3127_v50 = vmax.f32 %v3123_v48, 0.0 }
 0xf2e   : > { %v3164_v52 = vpack.c.bf16 %v3127_v50, %v3127_v50  ;;  %3439 = vst [vmem:[%s6332_s24 + $0x8] sm:$0xff] %v3127_v50 }
 0xf30   : > { %3285 = vmatmul.bf16.vlgmr.msra.gmra.mxu3 %v3164_v52 }
 0xf31   : > { %v3124_v53 = vpop.f32.mrf.mxu2 }
 0xfa7   : > { %v3273_v58 = vpop.f32.mrf.mxu0 }
 0xfa8   : > { %v3274_v0 = vadd.f32 %v5148_v61, %v3273_v58 }
 0xfaf   : > { %v3275_v62 = vpop.f32.mrf.mxu0 }
 0xfb3   : > { %v3286_v33 = vpop.f32.mrf.mxu3 }
 0xfb4   : > { %v3287_v1 = vadd.f32 %v3286_v33, %v3274_v0 }
 0xfb6   : > { %v3290_v2 = vadd.f32 %v3287_v1, %v2994_v29 }
 0xfb8   : > { %3306 = vmatpush.msra.mxu1 %v3290_v2 }
 0xfb9   : > { %4653 = vmatmul.msk.f32.vlgmr.msra.gmra.mxu1 %vm1309_vm0, %v6324_v11  ;;  %vm3406_vm0 = vweird.f32 %v5169_v12 }
 0xfba   : > { %v3407_v11 = vsel %vm3406_vm0, %v5169_v12, %v3405_v16 }
 0xfbb   : > { %v3288_v3 = vpop.f32.mrf.mxu3 }
0x1036   : > { %v3308_v6 = vpop.f32.mrf.mxu1 }
0x1037   : > { %v3311_v7 = vsub.f32 %v3290_v2, %v3308_v6  ;;  %v3313_v8 = vadd.f32 %v3312_v5, %v3308_v6 }
0x1039   : > { %v3333_v9 = vpack.c.bf16 %v3313_v8, %v3313_v8  ;;  %3399 = vadd.xlane.f32.xlu2 %v3311_v7 }
0x103b   : > { %3393 = vmatmul.bf16.vlgmr.msrb.gmra.mxu2 %v3333_v9 }
0x10ac   : > { %v3400_v17 = vpop.xlane.xlu2 %3399 }
0x10ad   : > { %v3408_v13 = vmul.f32 %v3407_v11, %v3400_v17 }
0x10af   : > { %v3409_v18 = vsub.f32 %v3311_v7, %v3408_v13 }
0x10b1   : > { %v3410_v19 = vmul.f32 %v3409_v18, %v3409_v18 }
0x10b3   : > { %3411 = vadd.xlane.f32.xlu0 %v3410_v19 }
0x10be   : > { %v3394_v22 = vpop.f32.mrf.mxu2 }
0x10bf   : > { %v3395_v24 = vadd.f32 %v5149_v57, %v3394_v22 }
0x10c1   : > { %v3398_v25 = vadd.f32 %v3395_v24, %v2236_v23 }
0x10c3   : > { %3437 = vst [vmem:[%s1079_s29] sm:$0xff] %v3398_v25 }
0x10c6   : > { %v3396_v51 = vpop.f32.mrf.mxu2 }
0x10c7   : > { %5740 = shalt.err (!%p5737_p8)
}
0x10c8   : > { %4975 = dma.vmem_to_hbm [thread:$0]  (%p6043_p5), %s3481_s22, 256, %s3483_s27, %s3450_s3   ;;  %v5150_v38 = vld [vmem:[#allocation28] ss:$0 sm:$0xff]  ;;  %v5151_v41 = vld [vmem:[#allocation29] ss:$0 sm:$0xff] }
0x10c9   : > { %s3837_s24 = sshll.u32 %s6329_s5, 3  ;;  %s4688_s4 = sshll.u32 %s6026_s6, 3 }
0x10ca   : > { %s6488_s1 = sld [smem:[#allocation64_spill]]  ;;  %s1050_s27 = scalar_lea.vmem [#allocation31], %s3837_s24 }
0x10cb   : > { %s3462_s3 = sshll.u32 %s1050_s27, 4  ;;  %s3441_s6 = scalar_lea.sflag [#allocation4], %s6329_s5  ;;  %s3463_s3 = int_to_ptr.vmem [resolvable:$true] %s3462_s3 }
0x10d0   : > { %s3460_s22 = scalar_lea.hbm %s6488_s1, %s4688_s4  ;;  %s5761_s2 = scalar_lea.hbm %s6488_s1, 16 }
0x10d1   : > { %s3464_s7 = sshll.u32 %s3460_s22, 4  ;;  %s3465_s7 = int_to_ptr.hbm [resolvable:$true] %s3464_s7 }
0x10d2   : > { %s5755_s26 = sshra.s32 %s3465_s7, 4  ;;  %s5756_s26 = int_to_ptr.hbm [resolvable:$true] %s5755_s26 }
0x10d3   : > { %s5757_s8 = scalar_lea.hbm %s5756_s26, 8  ;;  %p5762_p12 = scmp.lt.s32.totalorder %s5756_s26, %s6488_s1 }
0x10d4   : > { %p5758_p9 = scmp.ne.s32.totalorder %s5756_s26, %s5757_s8  ;;  %p5763_p13 = scmp.lt.s32.totalorder %s5761_s2, %s5757_s8 }
0x10d6   : > { %p5759_p10 = pnand %p5758_p9, %p6043_p5  ;;  %p5764_p0 = por %p5763_p13, %p5762_p12 }
0x10d8   : > { %p5760_p11 = pneg %p5759_p10 }
0x10da   : > { %p5765_p1 = pnand %p5764_p0, %p5760_p11 }
0x1126   : > { %v3412_v26 = vpop.xlane.xlu0 %3411 }
0x1127   : > { %v3413_v27 = vmul.f32 %v3412_v26, %v3407_v11 }
0x1129   : > { %v3414_v28 = vadd.f32 1e-05, %v3413_v27 }
0x112b   : > { %5170 = vrsqrt.f32 %v3414_v28  ;;  %vm3421_vm4 = vweird.f32 %v3414_v28 }
0x1131   : > { %v5171_v29 = vpop.eup %5170 }
0x1132   : > { %v3416_v31 = vmul.f32 %v5171_v29, %v3414_v28  ;;  %vm3422_vm3 = vweird.f32 %v5171_v29 }
0x1133   : > { %vm3423_vm5 = vmor %vm3421_vm4, %vm3422_vm3 }
0x1134   : > { %v3417_v32 = vmul.f32 %v5171_v29, %v3416_v31 }
0x1136   : > { %v3418_v34 = vmul.f32 0.5, %v3417_v32 }
0x1138   : > { %v3419_v35 = vsub.f32 1.5, %v3418_v34 }
0x113a   : > { %v3420_v37 = vmul.f32 %v5171_v29, %v3419_v35 }
0x113c   : > { %v3424_v39 = vsel %vm3423_vm5, %v5171_v29, %v3420_v37 }
0x113d   : > { %v3425_v40 = vmul.f32 %v3424_v39, %v3409_v18 }
0x113f   : > { %v3430_v42 = vmul.f32 %v5150_v38, %v3425_v40 }
0x1141   : > { %v3435_v43 = vadd.f32 %v5151_v41, %v3430_v42 }
0x1143   : > { %3436 = vst [vmem:[%s1050_s27] sm:$0xff] %v3435_v43 }
0x1144   : > { %5768 = shalt.err (!%p5765_p1)
}
0x1145   : > { %4974 = dma.vmem_to_hbm [thread:$0]  (%p6043_p5), %s3463_s3, 128, %s3465_s7, %s3441_s6  }
0x1146 PF: > { %s6489_s5 = sld [smem:[#allocation49_spill]] }
0x1147   : > { %s6490_s4 = sld [smem:[#allocation46_spill]] }
0x114c   : > { %p5076_p2 = scmp.ge.s32.totalorder %s6489_s5, 2 }
0x114d   : > { %s3494_s30 = sand.u32 1, %s6490_s4  }
0x114e   : > { %p5034_p3 = pnand %p5076_p2, %p6047_p6  ;;  %s3495_s22 = scalar_lea.sflag [#allocation4], %s3494_s30 }
0x1150   : > { %p5035_p4 = pneg %p5034_p3 }
0x1152   : > { %5826 = dma.done.wait (%p5035_p4), %s3495_s22, 128  }
0x1153   : > { %5828 = vsyncadd (%p5035_p4), %s3495_s22, 4294967168  ;;  %s3512_s27 = scalar_lea.sflag [#allocation33], %s3494_s30 }
0x1154   : > { %5830 = dma.done.wait (%p5035_p4), %s3512_s27, 256  }
0x1155   : > { %5832 = vsyncadd (%p5035_p4), %s3512_s27, 4294967040  ;;  %s6492_s28 = sld [smem:[#allocation50_spill]] }
0x1156   : > { %s6493_s5 = sld [smem:[#allocation47_spill]] }
0x1157   : > { %s6494_s26 = sld [smem:[#allocation48_spill]] }
0x1158   : > { %s6495_s27 = sld [smem:[#allocation51_spill]] }
0x115b   : > { %p48_p5 = scmp.ge.s32.totalorder %s6492_s28, 4  }
0x115d   :  { %50 = sbr.rel (!%p48_p5) target bundleno = 29 (0x1d), region = 267 }
0x1162   :  { %3518 = vsyncpa [#allocation3], 1 }
0x1163   :  { %3520 = vsyncpa [#allocation3 + $0x1], 1 }
0x1164   :  { %3521 = vsyncpa [#allocation6], 1 }
0x1165   :  { %3522 = vsyncpa [#allocation9], 1 }
0x1166   :  { %3523 = vsyncpa [#allocation12], 1 }
0x1167   :  { %3524 = vsyncpa [#allocation15], 1 }
0x1168   :  { %3525 = vsyncpa [#allocation18], 1 }
0x1169   :  { %3526 = vsyncpa [#allocation21], 1 }
0x116a   :  { %3527 = vsyncpa [#allocation24], 1 }
0x116b   :  { %3528 = vsyncpa [#allocation27], 1 }
0x116c   :  { %3529 = vsyncpa [#allocation30], 1 }
0x116d   :  { %3530 = vsyncpa [#allocation4], 1 }
0x116e   :  { %3532 = vsyncpa [#allocation4 + $0x1], 1 }
0x116f   :  { %3533 = vsyncpa [#allocation33], 1 }
0x1170   :  { %3535 = vsyncpa [#allocation33 + $0x1], 1 }

</bundles_post_ra>
